<compile_context>
chip_gen: v7x
topology: tpu7x:2x2x1
jax: 0.10.0
libtpu: 0.0.40
codegen_flags: <defaults>
</compile_context>

<pallas_src>
import functools
import math

import jax
import jax.numpy as jnp
import numpy as np
from jax.experimental import pallas as pl
from jax.experimental.pallas import tpu as pltpu

D_MODEL = 531                 # transformer d_model
N_HEAD = 3
HEAD_DIM = D_MODEL // N_HEAD  # 177
FFN = 2048                    # TransformerEncoderLayer default dim_feedforward
NFEAT_T5 = 2304               # t5 features (other 531 come from the transformer)
LN_EPS = 1e-5


def _const1(shape):
    nd = len(shape)
    return pl.BlockSpec(shape, lambda i, _n=nd: (0,) * _n)


def _const2(shape):
    nd = len(shape)
    return pl.BlockSpec(shape, lambda i, j, _n=nd: (0,) * _n)


def _mm(a, w_bf16):
    """bf16 x bf16 matmul with f32 accumulation (used in kernels AND reference)."""
    return jnp.dot(a.astype(jnp.bfloat16), w_bf16,
                   preferred_element_type=jnp.float32)


def _layernorm(y, g, b):
    mu = jnp.mean(y, axis=-1, keepdims=True)
    var = jnp.mean(jnp.square(y - mu), axis=-1, keepdims=True)
    return (y - mu) * jax.lax.rsqrt(var + LN_EPS) * g + b


def _lrelu(y):
    return jnp.where(y >= 0.0, y, 0.1 * y)


# -----------------------------------------------------------------------------
# Kernel 1: full transformer encoder layer (fused QKV attention + LN1 + tiled FFN
# + LN2) in one pallas_call.  Grid axis = FFN column tiles (reduction, resident
# attention weights, streamed FFN weight tiles).
# -----------------------------------------------------------------------------
def _transformer_kernel(x_ref, wqkv_ref, bqkv_ref, wo_ref, bo_ref, g1_ref,
                        be1_ref, w1_ref, b1_ref, w2_ref, b2_ref, g2_ref,
                        be2_ref, o_ref, x1_scr, ff_scr, *, scale):
    s = pl.program_id(0)

    @pl.when(s == 0)
    def _():
        x = x_ref[...]                                            # (N, D) f32
        qkv = _mm(x, wqkv_ref[...]) + bqkv_ref[...]               # (N, 3D)
        outs = []
        for h in range(N_HEAD):
            q = qkv[:, h * HEAD_DIM:(h + 1) * HEAD_DIM]
            k = qkv[:, D_MODEL + h * HEAD_DIM:D_MODEL + (h + 1) * HEAD_DIM]
            v = qkv[:, 2 * D_MODEL + h * HEAD_DIM:
                    2 * D_MODEL + (h + 1) * HEAD_DIM]
            sc = jax.lax.dot_general(q * scale, k, (((1,), (1,)), ((), ())),
                                     preferred_element_type=jnp.float32)
            sc = sc - jnp.max(sc, axis=-1, keepdims=True)
            p = jnp.exp(sc)
            p = p * pl.reciprocal(jnp.sum(p, axis=-1, keepdims=True),
                                  approx=True)
            outs.append(_mm(p, v.astype(jnp.bfloat16)))           # (N, HEAD_DIM)
        attn = _mm(jnp.concatenate(outs, axis=1), wo_ref[...]) + bo_ref[...]
        x1_scr[...] = _layernorm(x + attn, g1_ref[...], be1_ref[...])
        ff_scr[...] = jnp.zeros_like(ff_scr)

    # FFN tile: relu(x1 @ w1[:, tile] + b1[tile]) @ w2[tile, :], accumulated.
    hcol = jnp.maximum(_mm(x1_scr[...], w1_ref[...]) + b1_ref[...], 0.0)
    ff_scr[...] += _mm(hcol, w2_ref[...])

    @pl.when(s == pl.num_programs(0) - 1)
    def _():
        y = x1_scr[...] + ff_scr[...] + b2_ref[...]
        o_ref[...] = _layernorm(y, g2_ref[...], be2_ref[...])


def pallas_transformer(x, prep, *, t_ff=512):
    n, d = x.shape
    dff = prep["w_ff1"].shape[1]
    assert dff % t_ff == 0, (dff, t_ff)
    return pl.pallas_call(
        functools.partial(_transformer_kernel,
                          scale=1.0 / math.sqrt(HEAD_DIM)),
        grid=(dff // t_ff,),
        in_specs=[
            _const1((n, d)),                                      # x (resident)
            _const1((d, 3 * d)), _const1((1, 3 * d)),             # fused QKV
            _const1((d, d)), _const1((1, d)),                     # out-proj
            _const1((1, d)), _const1((1, d)),                     # LN1
            pl.BlockSpec((d, t_ff), lambda s: (0, s)),            # w_ff1 tile
            pl.BlockSpec((1, t_ff), lambda s: (0, s)),            # b_ff1 tile
            pl.BlockSpec((t_ff, d), lambda s: (s, 0)),            # w_ff2 tile
            _const1((1, d)),                                      # b_ff2
            _const1((1, d)), _const1((1, d)),                     # LN2
        ],
        out_specs=_const1((n, d)),
        out_shape=jax.ShapeDtypeStruct((n, d), jnp.float32),
        scratch_shapes=[pltpu.VMEM((n, d), jnp.float32),          # x1
                        pltpu.VMEM((n, d), jnp.float32)],         # ffn accum
        compiler_params=pltpu.CompilerParams(
            dimension_semantics=("arbitrary",)),
    )(x, prep["wqkv"], prep["bqkv"], prep["wo"], prep["bo"],
      prep["ln1_g"], prep["ln1_b"],
      prep["w_ff1"], prep["b_ff1"], prep["w_ff2"], prep["b_ff2"],
      prep["ln2_g"], prep["ln2_b"])


# -----------------------------------------------------------------------------
# Kernel 2: GCN input projection (replaces concat + fcs[0])
#   h0 = relu(t5 @ W_t5 + w_tr @ W_tr + b),  grid over output columns (2 steps).
# -----------------------------------------------------------------------------
def _gcn_input_kernel(t5_ref, wt5_ref, tr_ref, wtr_ref, b_ref, o_ref):
    y = _mm(t5_ref[...], wt5_ref[...]) + _mm(tr_ref[...], wtr_ref[...]) \
        + b_ref[...]
    o_ref[...] = jnp.maximum(y, 0.0)


def pallas_gcn_input(t5, tr_act, prep, *, tj=512):
    n, kt5 = t5.shape
    dtr = tr_act.shape[1]
    dout = prep["w_fc0_t5"].shape[1]
    assert dout % tj == 0, (dout, tj)
    return pl.pallas_call(
        _gcn_input_kernel,
        grid=(dout // tj,),
        in_specs=[
            _const1((n, kt5)),                                    # t5 (resident)
            pl.BlockSpec((kt5, tj), lambda j: (0, j)),            # W_t5 slab
            _const1((n, dtr)),                                    # w_tr (resident)
            pl.BlockSpec((dtr, tj), lambda j: (0, j)),            # W_tr slab
            pl.BlockSpec((1, tj), lambda j: (0, j)),              # bias slab
        ],
        out_specs=pl.BlockSpec((n, tj), lambda j: (0, j)),
        out_shape=jax.ShapeDtypeStruct((n, dout), jnp.float32),
        compiler_params=pltpu.CompilerParams(
            dimension_semantics=("parallel",)),
    )(t5, prep["w_fc0_t5"], tr_act, prep["w_fc0_tr"], prep["b_fc0"])


# -----------------------------------------------------------------------------
# Kernel 3: all GraphConvolution layers + fused fc head in one call.
#   grid=(nlayers, nhidden // tk): layer axis serial, inner axis K-tiles the
#   per-layer weight stream; fc head runs on the final grid step.
# -----------------------------------------------------------------------------
def _gcn_fc_kernel(*refs, alpha, variant):
    if variant:
        (theta_ref, adj_ref, h0_ref, wa_ref, wb_ref,
         wf1_ref, bf1_ref, wf2_ref, bf2_ref, wf3_ref, bf3_ref,
         o_ref, h_scr, hi_scr, acc_scr, hit_scr, h0t_scr) = refs
    else:
        (theta_ref, adj_ref, h0_ref, wa_ref,
         wf1_ref, bf1_ref, wf2_ref, bf2_ref, wf3_ref, bf3_ref,
         o_ref, h_scr, hi_scr, acc_scr, hit_scr, h0t_scr) = refs
        wb_ref = None

    l = pl.program_id(0)
    k = pl.program_id(1)
    last_k = pl.num_programs(1) - 1
    last_l = pl.num_programs(0) - 1
    nk, _, tk = hit_scr.shape                     # static

    @pl.when(jnp.logical_and(l == 0, k == 0))
    def _():
        h_scr[...] = h0_ref[...]
        for kk in range(nk):                      # static K-tiles of h0
            h0t_scr[kk] = h0_ref[:, kk * tk:(kk + 1) * tk]

    @pl.when(k == 0)
    def _():
        hi = _mm(adj_ref[...], h_scr[...].astype(jnp.bfloat16))   # adj @ h
        hi_scr[...] = hi
        for kk in range(nk):                      # static K-tiles of hi
            hit_scr[kk] = hi[:, kk * tk:(kk + 1) * tk]
        acc_scr[...] = jnp.zeros_like(acc_scr)

    hi_tile = hit_scr[k]                          # (N, tk)
    h0_tile = h0t_scr[k]
    if variant:
        # support = [hi | h0]  ->  split-weight matmul, no concat materialized
        acc_scr[...] += _mm(hi_tile, wa_ref[0]) + _mm(h0_tile, wb_ref[0])
    else:
        acc_scr[...] += _mm((1.0 - alpha) * hi_tile + alpha * h0_tile,
                            wa_ref[0])

    @pl.when(k == last_k)
    def _():
        theta = theta_ref[l]
        r = (1.0 - alpha) * hi_scr[...] + alpha * h0_ref[...]
        out = theta * acc_scr[...] + (1.0 - theta) * r + h_scr[...]  # residual
        h_scr[...] = jnp.maximum(out, 0.0)                           # deepGCN ReLU

    @pl.when(jnp.logical_and(l == last_l, k == last_k))
    def _():
        a = _lrelu(_mm(h_scr[...], wf1_ref[...]) + bf1_ref[...])
        a = _lrelu(_mm(a, wf2_ref[...]) + bf2_ref[...])
        o_ref[...] = _mm(a, wf3_ref[...]) + bf3_ref[...]


def pallas_gcn_fc(h0, adj, prep, *, alpha, variant, tk=512):
    n, nh = h0.shape
    nlayers = prep["theta"].shape[0]
    assert nh % tk == 0, (nh, tk)
    nk = nh // tk
    d1 = prep["w_fc1"].shape[1]
    d2 = prep["w_fc2"].shape[1]
    nclass = prep["w_fc3"].shape[1]

    in_specs = [
        pl.BlockSpec(memory_space=pltpu.MemorySpace.SMEM),        # theta table
        _const2((n, n)),                                          # adj (resident)
        _const2((n, nh)),                                         # h0  (resident)
        pl.BlockSpec((1, tk, nh), lambda l, k: (l, k, 0)),        # W (hi part)
    ]
    args = [prep["theta"], adj, h0, prep["w_gcn_a"]]
    if variant:
        in_specs.append(pl.BlockSpec((1, tk, nh), lambda l, k: (l, k, 0)))
        args.append(prep["w_gcn_b"])                              # W (h0 part)
    in_specs += [
        _const2((nh, d1)), _const2((1, d1)),
        _const2((d1, d2)), _const2((1, d2)),
        _const2((d2, nclass)), _const2((1, nclass)),
    ]
    args += [prep["w_fc1"], prep["b_fc1"], prep["w_fc2"], prep["b_fc2"],
             prep["w_fc3"], prep["b_fc3"]]

    return pl.pallas_call(
        functools.partial(_gcn_fc_kernel, alpha=float(alpha),
                          variant=bool(variant)),
        grid=(nlayers, nk),
        in_specs=in_specs,
        out_specs=_const2((n, nclass)),
        out_shape=jax.ShapeDtypeStruct((n, nclass), jnp.float32),
        scratch_shapes=[pltpu.VMEM((n, nh), jnp.float32),         # running h
                        pltpu.VMEM((n, nh), jnp.float32),         # hi (full)
                        pltpu.VMEM((n, nh), jnp.float32),         # accumulator
                        pltpu.VMEM((nk, n, tk), jnp.float32),     # hi K-tiles
                        pltpu.VMEM((nk, n, tk), jnp.float32)],    # h0 K-tiles
        compiler_params=pltpu.CompilerParams(
            dimension_semantics=("arbitrary", "arbitrary")),
    )(*args)


# -----------------------------------------------------------------------------
# Parameters: synthetic torch-layout init, then one-time kernel-friendly prep
# -----------------------------------------------------------------------------
def init_params(key, nlayers, nhidden, variant):
    def nrm(k, shape, scale=0.02):
        return scale * jax.random.normal(k, shape, jnp.float32)

    keys = iter(jax.random.split(key, 40))
    p = {}
    # nn.TransformerEncoderLayer(d_model=531, nhead=3)  (torch weight layouts)
    p["in_proj_w"] = nrm(next(keys), (3 * D_MODEL, D_MODEL))
    p["in_proj_b"] = nrm(next(keys), (3 * D_MODEL,))
    p["out_proj_w"] = nrm(next(keys), (D_MODEL, D_MODEL))
    p["out_proj_b"] = nrm(next(keys), (D_MODEL,))
    p["lin1_w"] = nrm(next(keys), (FFN, D_MODEL))
    p["lin1_b"] = nrm(next(keys), (FFN,))
    p["lin2_w"] = nrm(next(keys), (D_MODEL, FFN))
    p["lin2_b"] = nrm(next(keys), (D_MODEL,))
    p["norm1_g"] = jnp.ones((D_MODEL,), jnp.float32)
    p["norm1_b"] = jnp.zeros((D_MODEL,), jnp.float32)
    p["norm2_g"] = jnp.ones((D_MODEL,), jnp.float32)
    p["norm2_b"] = jnp.zeros((D_MODEL,), jnp.float32)
    # deep_gcn_t5: fcs[0] = Linear(2835, nhidden); convs: GraphConvolution
    p["gcn_fc0_w"] = nrm(next(keys), (nhidden, NFEAT_T5 + D_MODEL))
    p["gcn_fc0_b"] = nrm(next(keys), (nhidden,))
    conv_in = 2 * nhidden if variant else nhidden
    p["gcn_conv_w"] = [nrm(next(keys), (conv_in, nhidden),
                           scale=1.0 / math.sqrt(nhidden))
                       for _ in range(nlayers)]
    # fc head: 1024 -> 256 -> 64 -> 2
    p["fc1_w"] = nrm(next(keys), (256, 1024)); p["fc1_b"] = nrm(next(keys), (256,))
    p["fc2_w"] = nrm(next(keys), (64, 256));   p["fc2_b"] = nrm(next(keys), (64,))
    p["fc3_w"] = nrm(next(keys), (2, 64));     p["fc3_b"] = nrm(next(keys), (2,))
    return p


def prepare_params(p, *, nlayers, lamda, variant):
    """One-time transpose / QKV fuse / hi-h0 weight split / bf16 cast."""
    f32, bf16 = jnp.float32, jnp.bfloat16
    prep = {}

    # Fused QKV: torch in_proj_weight rows are [q; k; v], (out, in) layout.
    # Transposed -> (in=D, out=3D) with columns [q | k | v].
    prep["wqkv"] = p["in_proj_w"].T.astype(bf16)                 # (D, 3D)
    prep["bqkv"] = p["in_proj_b"].reshape(1, 3 * D_MODEL).astype(f32)
    prep["wo"] = p["out_proj_w"].T.astype(bf16)                  # (D, D)
    prep["bo"] = p["out_proj_b"].reshape(1, D_MODEL).astype(f32)
    prep["ln1_g"] = p["norm1_g"].reshape(1, D_MODEL).astype(f32)
    prep["ln1_b"] = p["norm1_b"].reshape(1, D_MODEL).astype(f32)
    prep["ln2_g"] = p["norm2_g"].reshape(1, D_MODEL).astype(f32)
    prep["ln2_b"] = p["norm2_b"].reshape(1, D_MODEL).astype(f32)
    prep["w_ff1"] = p["lin1_w"].T.astype(bf16)                   # (D, FFN)
    prep["b_ff1"] = p["lin1_b"].reshape(1, FFN).astype(f32)
    prep["w_ff2"] = p["lin2_w"].T.astype(bf16)                   # (FFN, D)
    prep["b_ff2"] = p["lin2_b"].reshape(1, D_MODEL).astype(f32)

    # deep_gcn_t5.fcs[0] split by the (t5 | w_tr) concat -> no HBM concat needed
    w_fc0 = p["gcn_fc0_w"].T                                     # (2835, nhidden)
    nhidden = w_fc0.shape[1]
    prep["w_fc0_t5"] = w_fc0[:NFEAT_T5].astype(bf16)             # (2304, nhidden)
    prep["w_fc0_tr"] = w_fc0[NFEAT_T5:].astype(bf16)             # (531,  nhidden)
    prep["b_fc0"] = p["gcn_fc0_b"].reshape(1, nhidden).astype(f32)

    # GraphConvolution weights (in_features, out_features); split the hi / h0
    # halves for variant=True so the kernel never materializes the concat.
    if variant:
        prep["w_gcn_a"] = jnp.stack(
            [w[:nhidden] for w in p["gcn_conv_w"]]).astype(bf16)  # (L, nh, nh)
        prep["w_gcn_b"] = jnp.stack(
            [w[nhidden:] for w in p["gcn_conv_w"]]).astype(bf16)  # (L, nh, nh)
    else:
        prep["w_gcn_a"] = jnp.stack(p["gcn_conv_w"]).astype(bf16)
    prep["theta"] = jnp.array(
        [min(1.0, math.log(lamda / (i + 1) + 1.0)) for i in range(nlayers)], f32)

    prep["w_fc1"] = p["fc1_w"].T.astype(bf16)
    prep["b_fc1"] = p["fc1_b"].reshape(1, -1).astype(f32)
    prep["w_fc2"] = p["fc2_w"].T.astype(bf16)
    prep["b_fc2"] = p["fc2_b"].reshape(1, -1).astype(f32)
    prep["w_fc3"] = p["fc3_w"].T.astype(bf16)
    prep["b_fc3"] = p["fc3_b"].reshape(1, -1).astype(f32)
    return prep


# -----------------------------------------------------------------------------
# GraphPPIS forward (Pallas path): 3 pallas_calls total
# -----------------------------------------------------------------------------
def graphppis_forward(prep, esmfea, t5fea, adj, w_embedding, *, alpha, variant):
    del esmfea                                   # unused by GraphPPIS.forward
    x = w_embedding.astype(jnp.float32)          # torch.squeeze is a no-op here
    w_tr = pallas_transformer(x, prep)                           # MHA+LN1+FFN+LN2
    h0 = pallas_gcn_input(t5fea.astype(jnp.float32), w_tr, prep)  # fcs[0]+ReLU
    return pallas_gcn_fc(h0, adj.astype(jnp.float32), prep,
                         alpha=alpha, variant=variant)            # GCN + fc head


# -----------------------------------------------------------------------------
# Pure-JAX reference (same math, same bf16 weight/operand casts)
# -----------------------------------------------------------------------------
def reference_forward(prep, esmfea, t5fea, adj, w_embedding, *, alpha, variant):
    del esmfea
    x = w_embedding.astype(jnp.float32)
    scale = 1.0 / math.sqrt(HEAD_DIM)

    qkv = _mm(x, prep["wqkv"]) + prep["bqkv"]
    outs = []
    for h in range(N_HEAD):
        q = qkv[:, h * HEAD_DIM:(h + 1) * HEAD_DIM]
        k = qkv[:, D_MODEL + h * HEAD_DIM:D_MODEL + (h + 1) * HEAD_DIM]
        v = qkv[:, 2 * D_MODEL + h * HEAD_DIM:2 * D_MODEL + (h + 1) * HEAD_DIM]
        s = (q * scale) @ k.T
        pr = jax.nn.softmax(s, axis=-1)
        outs.append(_mm(pr, v.astype(jnp.bfloat16)))
    attn = _mm(jnp.concatenate(outs, axis=1), prep["wo"]) + prep["bo"]
    x1 = _layernorm(x + attn, prep["ln1_g"], prep["ln1_b"])

    ffh = jnp.maximum(_mm(x1, prep["w_ff1"]) + prep["b_ff1"], 0.0)
    w_tr = _layernorm(x1 + _mm(ffh, prep["w_ff2"]) + prep["b_ff2"],
                      prep["ln2_g"], prep["ln2_b"])

    t5 = t5fea.astype(jnp.float32)
    h0 = jnp.maximum(_mm(t5, prep["w_fc0_t5"]) + _mm(w_tr, prep["w_fc0_tr"])
                     + prep["b_fc0"], 0.0)
    hcur = h0
    adj_f = adj.astype(jnp.float32)
    nlayers = prep["theta"].shape[0]
    for i in range(nlayers):
        theta = prep["theta"][i]
        hi = _mm(adj_f, hcur.astype(jnp.bfloat16))
        if variant:
            sw = _mm(hi, prep["w_gcn_a"][i]) + _mm(h0, prep["w_gcn_b"][i])
            r = (1.0 - alpha) * hi + alpha * h0
        else:
            r = (1.0 - alpha) * hi + alpha * h0
            sw = _mm(r, prep["w_gcn_a"][i])
        hcur = jnp.maximum(theta * sw + (1.0 - theta) * r + hcur, 0.0)

    a = _lrelu(_mm(hcur, prep["w_fc1"]) + prep["b_fc1"])
    a = _lrelu(_mm(a, prep["w_fc2"]) + prep["b_fc2"])
    return _mm(a, prep["w_fc3"]) + prep["b_fc3"]


# -----------------------------------------------------------------------------
if __name__ == "__main__":
    key = jax.random.PRNGKey(0)
    kp, k1, k2, k3, k4 = jax.random.split(key, 5)

    N = 16                                      # residues / sequence positions
    nlayers, nhidden, nclass = 2, 1024, 2       # fc head requires nhidden == 1024
    lamda, alpha, variant = 1.5, 0.7, True

    torch_params = init_params(kp, nlayers=nlayers, nhidden=nhidden,
                               variant=variant)
    prep = prepare_params(torch_params, nlayers=nlayers, lamda=lamda,
                          variant=variant)

    esmfea = jax.random.normal(k1, (N, 1280), jnp.float32)       # unused in forward
    t5fea = jax.random.normal(k2, (N, NFEAT_T5), jnp.float32)
    w_embedding = jax.random.normal(k3, (N, D_MODEL), jnp.float32)
    adj_raw = jax.random.uniform(k4, (N, N), jnp.float32)
    adj = adj_raw / jnp.sum(adj_raw, axis=1, keepdims=True)      # row-normalized

    out = graphppis_forward(prep, esmfea, t5fea, adj, w_embedding,
                            alpha=alpha, variant=variant)
    out = jax.block_until_ready(out)
    assert out.shape == (N, nclass), out.shape

    ref = reference_forward(prep, esmfea, t5fea, adj, w_embedding,
                            alpha=alpha, variant=variant)
    np.testing.assert_allclose(np.asarray(out), np.asarray(ref),
                               rtol=5e-2, atol=5e-2)
    print("KERNEL_OK")
</pallas_src>

<mosaic_0001>
module attributes {stable_mosaic.version = 11 : i64} {
  func.func @_transformer_kernel(%arg0: i32, %arg1: memref<16x531xf32, #tpu.memory_space<vmem>>, %arg2: memref<531x1593xbf16, #tpu.memory_space<vmem>>, %arg3: memref<1x1593xf32, #tpu.memory_space<vmem>>, %arg4: memref<531x531xbf16, #tpu.memory_space<vmem>>, %arg5: memref<1x531xf32, #tpu.memory_space<vmem>>, %arg6: memref<1x531xf32, #tpu.memory_space<vmem>>, %arg7: memref<1x531xf32, #tpu.memory_space<vmem>>, %arg8: memref<531x512xbf16, #tpu.memory_space<vmem>>, %arg9: memref<1x512xf32, #tpu.memory_space<vmem>>, %arg10: memref<512x531xbf16, #tpu.memory_space<vmem>>, %arg11: memref<1x531xf32, #tpu.memory_space<vmem>>, %arg12: memref<1x531xf32, #tpu.memory_space<vmem>>, %arg13: memref<1x531xf32, #tpu.memory_space<vmem>>, %arg14: memref<16x531xf32, #tpu.memory_space<vmem>>, %arg15: memref<16x531xf32, #tpu.memory_space<vmem>>, %arg16: memref<16x531xf32, #tpu.memory_space<vmem>>) attributes {dimension_semantics = [#tpu.dimension_semantics<arbitrary>], iteration_bounds = array<i64: 4>, scalar_prefetch = 0 : i64, scratch_operands = 2 : i64, tpu.core_type = #tpu.core_type<tc>, window_params = [{pipeline_mode = #tpu.pipeline_mode<synchronous>, transform_indices = @transform_0, window_bounds = array<i64: 16, 531>}, {pipeline_mode = #tpu.pipeline_mode<synchronous>, transform_indices = @transform_1, window_bounds = array<i64: 531, 1593>}, {pipeline_mode = #tpu.pipeline_mode<synchronous>, transform_indices = @transform_2, window_bounds = array<i64: 1, 1593>}, {pipeline_mode = #tpu.pipeline_mode<synchronous>, transform_indices = @transform_3, window_bounds = array<i64: 531, 531>}, {pipeline_mode = #tpu.pipeline_mode<synchronous>, transform_indices = @transform_4, window_bounds = array<i64: 1, 531>}, {pipeline_mode = #tpu.pipeline_mode<synchronous>, transform_indices = @transform_5, window_bounds = array<i64: 1, 531>}, {pipeline_mode = #tpu.pipeline_mode<synchronous>, transform_indices = @transform_6, window_bounds = array<i64: 1, 531>}, {transform_indices = @transform_7, window_bounds = array<i64: 531, 512>}, {transform_indices = @transform_8, window_bounds = array<i64: 1, 512>}, {transform_indices = @transform_9, window_bounds = array<i64: 512, 531>}, {pipeline_mode = #tpu.pipeline_mode<synchronous>, transform_indices = @transform_10, window_bounds = array<i64: 1, 531>}, {pipeline_mode = #tpu.pipeline_mode<synchronous>, transform_indices = @transform_11, window_bounds = array<i64: 1, 531>}, {pipeline_mode = #tpu.pipeline_mode<synchronous>, transform_indices = @transform_12, window_bounds = array<i64: 1, 531>}, {pipeline_mode = #tpu.pipeline_mode<synchronous>, transform_indices = @transform_13, window_bounds = array<i64: 16, 531>}]} {
    %c0_i32 = arith.constant 0 : i32
    %0 = arith.cmpi eq, %arg0, %c0_i32 : i32
    %1 = arith.extui %0 : i1 to i32
    %c0_i32_0 = arith.constant 0 : i32
    %2 = arith.cmpi ne, %1, %c0_i32_0 : i32
    scf.if %2 {
      %c0_15 = arith.constant 0 : index
      %c0_16 = arith.constant 0 : index
      %21 = vector.load %arg1[%c0_15, %c0_16] : memref<16x531xf32, #tpu.memory_space<vmem>>, vector<16x531xf32>
      %c0_17 = arith.constant 0 : index
      %c0_18 = arith.constant 0 : index
      %22 = vector.load %arg2[%c0_17, %c0_18] : memref<531x1593xbf16, #tpu.memory_space<vmem>>, vector<531x1593xbf16>
      %23 = arith.truncf %21 : vector<16x531xf32> to vector<16x531xbf16>
      %cst_19 = arith.constant dense<0.000000e+00> : vector<16x1593xf32>
      %24 = tpu.matmul %23, %22, %cst_19 {dimension_numbers = #tpu.dot_dimension_numbers<[1], [0], [0], [1], [0, 0, 1, 1], [], []>} : vector<16x531xbf16>, vector<531x1593xbf16>, vector<16x1593xf32> -> vector<16x1593xf32>
      %c0_20 = arith.constant 0 : index
      %c0_21 = arith.constant 0 : index
      %25 = vector.load %arg3[%c0_20, %c0_21] : memref<1x1593xf32, #tpu.memory_space<vmem>>, vector<1x1593xf32>
      %26 = vector.broadcast %25 : vector<1x1593xf32> to vector<16x1593xf32>
      %27 = arith.addf %24, %26 : vector<16x1593xf32>
      %28 = vector.extract_strided_slice %27 {offsets = [0, 0], sizes = [16, 177], strides = [1, 1]} : vector<16x1593xf32> to vector<16x177xf32>
      %29 = vector.extract_strided_slice %27 {offsets = [0, 531], sizes = [16, 177], strides = [1, 1]} : vector<16x1593xf32> to vector<16x177xf32>
      %30 = vector.extract_strided_slice %27 {offsets = [0, 1062], sizes = [16, 177], strides = [1, 1]} : vector<16x1593xf32> to vector<16x177xf32>
      %cst_22 = arith.constant 7.516460e-02 : f32
      %31 = vector.broadcast %cst_22 : f32 to vector<16x177xf32>
      %32 = arith.mulf %28, %31 : vector<16x177xf32>
      %cst_23 = arith.constant dense<0.000000e+00> : vector<16x16xf32>
      %33 = tpu.matmul %32, %29, %cst_23 {dimension_numbers = #tpu.dot_dimension_numbers<[1], [1], [0], [0], [0, 0, 1, 0], [], []>} : vector<16x177xf32>, vector<16x177xf32>, vector<16x16xf32> -> vector<16x16xf32>
      %cst_24 = arith.constant dense<0xFF800000> : vector<16xf32>
      %34 = vector.multi_reduction <maximumf>, %33, %cst_24 [1] : vector<16x16xf32> to vector<16xf32>
      %35 = vector.shape_cast %34 : vector<16xf32> to vector<16x1xf32>
      %36 = vector.broadcast %35 : vector<16x1xf32> to vector<16x16xf32>
      %37 = arith.subf %33, %36 : vector<16x16xf32>
      %38 = math.exp %37 : vector<16x16xf32>
      %cst_25 = arith.constant dense<0.000000e+00> : vector<16xf32>
      %39 = vector.multi_reduction <add>, %38, %cst_25 [1] : vector<16x16xf32> to vector<16xf32>
      %40 = vector.shape_cast %39 : vector<16xf32> to vector<16x1xf32>
      %41 = tpu.reciprocal %40 {approx = true} : vector<16x1xf32> -> vector<16x1xf32>
      %42 = vector.broadcast %41 : vector<16x1xf32> to vector<16x16xf32>
      %43 = arith.mulf %38, %42 : vector<16x16xf32>
      %44 = arith.truncf %30 : vector<16x177xf32> to vector<16x177xbf16>
      %45 = arith.truncf %43 : vector<16x16xf32> to vector<16x16xbf16>
      %cst_26 = arith.constant dense<0.000000e+00> : vector<16x177xf32>
      %46 = tpu.matmul %45, %44, %cst_26 {dimension_numbers = #tpu.dot_dimension_numbers<[1], [0], [0], [1], [0, 0, 1, 1], [], []>} : vector<16x16xbf16>, vector<16x177xbf16>, vector<16x177xf32> -> vector<16x177xf32>
      %47 = vector.extract_strided_slice %27 {offsets = [0, 177], sizes = [16, 177], strides = [1, 1]} : vector<16x1593xf32> to vector<16x177xf32>
      %48 = vector.extract_strided_slice %27 {offsets = [0, 708], sizes = [16, 177], strides = [1, 1]} : vector<16x1593xf32> to vector<16x177xf32>
      %49 = vector.extract_strided_slice %27 {offsets = [0, 1239], sizes = [16, 177], strides = [1, 1]} : vector<16x1593xf32> to vector<16x177xf32>
      %cst_27 = arith.constant 7.516460e-02 : f32
      %50 = vector.broadcast %cst_27 : f32 to vector<16x177xf32>
      %51 = arith.mulf %47, %50 : vector<16x177xf32>
      %cst_28 = arith.constant dense<0.000000e+00> : vector<16x16xf32>
      %52 = tpu.matmul %51, %48, %cst_28 {dimension_numbers = #tpu.dot_dimension_numbers<[1], [1], [0], [0], [0, 0, 1, 0], [], []>} : vector<16x177xf32>, vector<16x177xf32>, vector<16x16xf32> -> vector<16x16xf32>
      %cst_29 = arith.constant dense<0xFF800000> : vector<16xf32>
      %53 = vector.multi_reduction <maximumf>, %52, %cst_29 [1] : vector<16x16xf32> to vector<16xf32>
      %54 = vector.shape_cast %53 : vector<16xf32> to vector<16x1xf32>
      %55 = vector.broadcast %54 : vector<16x1xf32> to vector<16x16xf32>
      %56 = arith.subf %52, %55 : vector<16x16xf32>
      %57 = math.exp %56 : vector<16x16xf32>
      %cst_30 = arith.constant dense<0.000000e+00> : vector<16xf32>
      %58 = vector.multi_reduction <add>, %57, %cst_30 [1] : vector<16x16xf32> to vector<16xf32>
      %59 = vector.shape_cast %58 : vector<16xf32> to vector<16x1xf32>
      %60 = tpu.reciprocal %59 {approx = true} : vector<16x1xf32> -> vector<16x1xf32>
      %61 = vector.broadcast %60 : vector<16x1xf32> to vector<16x16xf32>
      %62 = arith.mulf %57, %61 : vector<16x16xf32>
      %63 = arith.truncf %49 : vector<16x177xf32> to vector<16x177xbf16>
      %64 = arith.truncf %62 : vector<16x16xf32> to vector<16x16xbf16>
      %cst_31 = arith.constant dense<0.000000e+00> : vector<16x177xf32>
      %65 = tpu.matmul %64, %63, %cst_31 {dimension_numbers = #tpu.dot_dimension_numbers<[1], [0], [0], [1], [0, 0, 1, 1], [], []>} : vector<16x16xbf16>, vector<16x177xbf16>, vector<16x177xf32> -> vector<16x177xf32>
      %66 = vector.extract_strided_slice %27 {offsets = [0, 354], sizes = [16, 177], strides = [1, 1]} : vector<16x1593xf32> to vector<16x177xf32>
      %67 = vector.extract_strided_slice %27 {offsets = [0, 885], sizes = [16, 177], strides = [1, 1]} : vector<16x1593xf32> to vector<16x177xf32>
      %68 = vector.extract_strided_slice %27 {offsets = [0, 1416], sizes = [16, 177], strides = [1, 1]} : vector<16x1593xf32> to vector<16x177xf32>
      %cst_32 = arith.constant 7.516460e-02 : f32
      %69 = vector.broadcast %cst_32 : f32 to vector<16x177xf32>
      %70 = arith.mulf %66, %69 : vector<16x177xf32>
      %cst_33 = arith.constant dense<0.000000e+00> : vector<16x16xf32>
      %71 = tpu.matmul %70, %67, %cst_33 {dimension_numbers = #tpu.dot_dimension_numbers<[1], [1], [0], [0], [0, 0, 1, 0], [], []>} : vector<16x177xf32>, vector<16x177xf32>, vector<16x16xf32> -> vector<16x16xf32>
      %cst_34 = arith.constant dense<0xFF800000> : vector<16xf32>
      %72 = vector.multi_reduction <maximumf>, %71, %cst_34 [1] : vector<16x16xf32> to vector<16xf32>
      %73 = vector.shape_cast %72 : vector<16xf32> to vector<16x1xf32>
      %74 = vector.broadcast %73 : vector<16x1xf32> to vector<16x16xf32>
      %75 = arith.subf %71, %74 : vector<16x16xf32>
      %76 = math.exp %75 : vector<16x16xf32>
      %cst_35 = arith.constant dense<0.000000e+00> : vector<16xf32>
      %77 = vector.multi_reduction <add>, %76, %cst_35 [1] : vector<16x16xf32> to vector<16xf32>
      %78 = vector.shape_cast %77 : vector<16xf32> to vector<16x1xf32>
      %79 = tpu.reciprocal %78 {approx = true} : vector<16x1xf32> -> vector<16x1xf32>
      %80 = vector.broadcast %79 : vector<16x1xf32> to vector<16x16xf32>
      %81 = arith.mulf %76, %80 : vector<16x16xf32>
      %82 = arith.truncf %68 : vector<16x177xf32> to vector<16x177xbf16>
      %83 = arith.truncf %81 : vector<16x16xf32> to vector<16x16xbf16>
      %cst_36 = arith.constant dense<0.000000e+00> : vector<16x177xf32>
      %84 = tpu.matmul %83, %82, %cst_36 {dimension_numbers = #tpu.dot_dimension_numbers<[1], [0], [0], [1], [0, 0, 1, 1], [], []>} : vector<16x16xbf16>, vector<16x177xbf16>, vector<16x177xf32> -> vector<16x177xf32>
      %85 = tpu.concatenate %46, %65, %84 in 1 : vector<16x177xf32>, vector<16x177xf32>, vector<16x177xf32> -> vector<16x531xf32>
      %c0_37 = arith.constant 0 : index
      %c0_38 = arith.constant 0 : index
      %86 = vector.load %arg4[%c0_37, %c0_38] : memref<531x531xbf16, #tpu.memory_space<vmem>>, vector<531x531xbf16>
      %87 = arith.truncf %85 : vector<16x531xf32> to vector<16x531xbf16>
      %cst_39 = arith.constant dense<0.000000e+00> : vector<16x531xf32>
      %88 = tpu.matmul %87, %86, %cst_39 {dimension_numbers = #tpu.dot_dimension_numbers<[1], [0], [0], [1], [0, 0, 1, 1], [], []>} : vector<16x531xbf16>, vector<531x531xbf16>, vector<16x531xf32> -> vector<16x531xf32>
      %c0_40 = arith.constant 0 : index
      %c0_41 = arith.constant 0 : index
      %89 = vector.load %arg5[%c0_40, %c0_41] : memref<1x531xf32, #tpu.memory_space<vmem>>, vector<1x531xf32>
      %90 = vector.broadcast %89 : vector<1x531xf32> to vector<16x531xf32>
      %91 = arith.addf %88, %90 : vector<16x531xf32>
      %92 = arith.addf %21, %91 : vector<16x531xf32>
      %c0_42 = arith.constant 0 : index
      %c0_43 = arith.constant 0 : index
      %93 = vector.load %arg6[%c0_42, %c0_43] : memref<1x531xf32, #tpu.memory_space<vmem>>, vector<1x531xf32>
      %c0_44 = arith.constant 0 : index
      %c0_45 = arith.constant 0 : index
      %94 = vector.load %arg7[%c0_44, %c0_45] : memref<1x531xf32, #tpu.memory_space<vmem>>, vector<1x531xf32>
      %cst_46 = arith.constant dense<0.000000e+00> : vector<16xf32>
      %95 = vector.multi_reduction <add>, %92, %cst_46 [1] : vector<16x531xf32> to vector<16xf32>
      %96 = vector.shape_cast %95 : vector<16xf32> to vector<16x1xf32>
      %cst_47 = arith.constant 5.310000e+02 : f32
      %97 = vector.broadcast %cst_47 : f32 to vector<16x1xf32>
      %98 = arith.divf %96, %97 : vector<16x1xf32>
      %99 = vector.broadcast %98 : vector<16x1xf32> to vector<16x531xf32>
      %100 = arith.subf %92, %99 : vector<16x531xf32>
      %101 = arith.mulf %100, %100 : vector<16x531xf32>
      %cst_48 = arith.constant dense<0.000000e+00> : vector<16xf32>
      %102 = vector.multi_reduction <add>, %101, %cst_48 [1] : vector<16x531xf32> to vector<16xf32>
      %103 = vector.shape_cast %102 : vector<16xf32> to vector<16x1xf32>
      %cst_49 = arith.constant 5.310000e+02 : f32
      %104 = vector.broadcast %cst_49 : f32 to vector<16x1xf32>
      %105 = arith.divf %103, %104 : vector<16x1xf32>
      %106 = vector.broadcast %98 : vector<16x1xf32> to vector<16x531xf32>
      %107 = arith.subf %92, %106 : vector<16x531xf32>
      %cst_50 = arith.constant 9.99999974E-6 : f32
      %108 = vector.broadcast %cst_50 : f32 to vector<16x1xf32>
      %109 = arith.addf %105, %108 : vector<16x1xf32>
      %110 = math.rsqrt %109 : vector<16x1xf32>
      %111 = vector.broadcast %110 : vector<16x1xf32> to vector<16x531xf32>
      %112 = arith.mulf %107, %111 : vector<16x531xf32>
      %113 = vector.broadcast %93 : vector<1x531xf32> to vector<16x531xf32>
      %114 = arith.mulf %112, %113 : vector<16x531xf32>
      %115 = vector.broadcast %94 : vector<1x531xf32> to vector<16x531xf32>
      %116 = arith.addf %114, %115 : vector<16x531xf32>
      %c0_51 = arith.constant 0 : index
      %c0_52 = arith.constant 0 : index
      %117 = vector.load %arg15[%c0_51, %c0_52] : memref<16x531xf32, #tpu.memory_space<vmem>>, vector<16x531xf32>
      tpu.vector_store %arg15[%c0_51, %c0_52], %116 {strides = array<i32>} : memref<16x531xf32, #tpu.memory_space<vmem>>, vector<16x531xf32>,
      %cst_53 = arith.constant 0.000000e+00 : f32
      %118 = vector.broadcast %cst_53 : f32 to vector<16x531xf32>
      %c0_54 = arith.constant 0 : index
      %c0_55 = arith.constant 0 : index
      %119 = vector.load %arg16[%c0_54, %c0_55] : memref<16x531xf32, #tpu.memory_space<vmem>>, vector<16x531xf32>
      tpu.vector_store %arg16[%c0_54, %c0_55], %118 {strides = array<i32>} : memref<16x531xf32, #tpu.memory_space<vmem>>, vector<16x531xf32>,
    } else {
    }
    %c0 = arith.constant 0 : index
    %c0_1 = arith.constant 0 : index
    %3 = vector.load %arg15[%c0, %c0_1] : memref<16x531xf32, #tpu.memory_space<vmem>>, vector<16x531xf32>
    %c0_2 = arith.constant 0 : index
    %c0_3 = arith.constant 0 : index
    %4 = vector.load %arg8[%c0_2, %c0_3] : memref<531x512xbf16, #tpu.memory_space<vmem>>, vector<531x512xbf16>
    %5 = arith.truncf %3 : vector<16x531xf32> to vector<16x531xbf16>
    %cst = arith.constant dense<0.000000e+00> : vector<16x512xf32>
    %6 = tpu.matmul %5, %4, %cst {dimension_numbers = #tpu.dot_dimension_numbers<[1], [0], [0], [1], [0, 0, 1, 1], [], []>} : vector<16x531xbf16>, vector<531x512xbf16>, vector<16x512xf32> -> vector<16x512xf32>
    %c0_4 = arith.constant 0 : index
    %c0_5 = arith.constant 0 : index
    %7 = vector.load %arg9[%c0_4, %c0_5] : memref<1x512xf32, #tpu.memory_space<vmem>>, vector<1x512xf32>
    %8 = vector.broadcast %7 : vector<1x512xf32> to vector<16x512xf32>
    %9 = arith.addf %6, %8 : vector<16x512xf32>
    %cst_6 = arith.constant 0.000000e+00 : f32
    %10 = vector.broadcast %cst_6 : f32 to vector<16x512xf32>
    %11 = arith.maximumf %9, %10 : vector<16x512xf32>
    %c0_7 = arith.constant 0 : index
    %c0_8 = arith.constant 0 : index
    %12 = vector.load %arg16[%c0_7, %c0_8] : memref<16x531xf32, #tpu.memory_space<vmem>>, vector<16x531xf32>
    %c0_9 = arith.constant 0 : index
    %c0_10 = arith.constant 0 : index
    %13 = vector.load %arg10[%c0_9, %c0_10] : memref<512x531xbf16, #tpu.memory_space<vmem>>, vector<512x531xbf16>
    %14 = arith.truncf %11 : vector<16x512xf32> to vector<16x512xbf16>
    %cst_11 = arith.constant dense<0.000000e+00> : vector<16x531xf32>
    %15 = tpu.matmul %14, %13, %cst_11 {dimension_numbers = #tpu.dot_dimension_numbers<[1], [0], [0], [1], [0, 0, 1, 1], [], []>} : vector<16x512xbf16>, vector<512x531xbf16>, vector<16x531xf32> -> vector<16x531xf32>
    %16 = arith.addf %12, %15 : vector<16x531xf32>
    %c0_12 = arith.constant 0 : index
    %c0_13 = arith.constant 0 : index
    %17 = vector.load %arg16[%c0_12, %c0_13] : memref<16x531xf32, #tpu.memory_space<vmem>>, vector<16x531xf32>
    tpu.vector_store %arg16[%c0_12, %c0_13], %16 {strides = array<i32>} : memref<16x531xf32, #tpu.memory_space<vmem>>, vector<16x531xf32>,
    %c3_i32 = arith.constant 3 : i32
    %18 = arith.cmpi eq, %arg0, %c3_i32 : i32
    %19 = arith.extui %18 : i1 to i32
    %c0_i32_14 = arith.constant 0 : i32
    %20 = arith.cmpi ne, %19, %c0_i32_14 : i32
    scf.if %20 {
      %c0_15 = arith.constant 0 : index
      %c0_16 = arith.constant 0 : index
      %21 = vector.load %arg15[%c0_15, %c0_16] : memref<16x531xf32, #tpu.memory_space<vmem>>, vector<16x531xf32>
      %c0_17 = arith.constant 0 : index
      %c0_18 = arith.constant 0 : index
      %22 = vector.load %arg16[%c0_17, %c0_18] : memref<16x531xf32, #tpu.memory_space<vmem>>, vector<16x531xf32>
      %23 = arith.addf %21, %22 : vector<16x531xf32>
      %c0_19 = arith.constant 0 : index
      %c0_20 = arith.constant 0 : index
      %24 = vector.load %arg11[%c0_19, %c0_20] : memref<1x531xf32, #tpu.memory_space<vmem>>, vector<1x531xf32>
      %25 = vector.broadcast %24 : vector<1x531xf32> to vector<16x531xf32>
      %26 = arith.addf %23, %25 : vector<16x531xf32>
      %c0_21 = arith.constant 0 : index
      %c0_22 = arith.constant 0 : index
      %27 = vector.load %arg12[%c0_21, %c0_22] : memref<1x531xf32, #tpu.memory_space<vmem>>, vector<1x531xf32>
      %c0_23 = arith.constant 0 : index
      %c0_24 = arith.constant 0 : index
      %28 = vector.load %arg13[%c0_23, %c0_24] : memref<1x531xf32, #tpu.memory_space<vmem>>, vector<1x531xf32>
      %cst_25 = arith.constant dense<0.000000e+00> : vector<16xf32>
      %29 = vector.multi_reduction <add>, %26, %cst_25 [1] : vector<16x531xf32> to vector<16xf32>
      %30 = vector.shape_cast %29 : vector<16xf32> to vector<16x1xf32>
      %cst_26 = arith.constant 5.310000e+02 : f32
      %31 = vector.broadcast %cst_26 : f32 to vector<16x1xf32>
      %32 = arith.divf %30, %31 : vector<16x1xf32>
      %33 = vector.broadcast %32 : vector<16x1xf32> to vector<16x531xf32>
      %34 = arith.subf %26, %33 : vector<16x531xf32>
      %35 = arith.mulf %34, %34 : vector<16x531xf32>
      %cst_27 = arith.constant dense<0.000000e+00> : vector<16xf32>
      %36 = vector.multi_reduction <add>, %35, %cst_27 [1] : vector<16x531xf32> to vector<16xf32>
      %37 = vector.shape_cast %36 : vector<16xf32> to vector<16x1xf32>
      %cst_28 = arith.constant 5.310000e+02 : f32
      %38 = vector.broadcast %cst_28 : f32 to vector<16x1xf32>
      %39 = arith.divf %37, %38 : vector<16x1xf32>
      %40 = vector.broadcast %32 : vector<16x1xf32> to vector<16x531xf32>
      %41 = arith.subf %26, %40 : vector<16x531xf32>
      %cst_29 = arith.constant 9.99999974E-6 : f32
      %42 = vector.broadcast %cst_29 : f32 to vector<16x1xf32>
      %43 = arith.addf %39, %42 : vector<16x1xf32>
      %44 = math.rsqrt %43 : vector<16x1xf32>
      %45 = vector.broadcast %44 : vector<16x1xf32> to vector<16x531xf32>
      %46 = arith.mulf %41, %45 : vector<16x531xf32>
      %47 = vector.broadcast %27 : vector<1x531xf32> to vector<16x531xf32>
      %48 = arith.mulf %46, %47 : vector<16x531xf32>
      %49 = vector.broadcast %28 : vector<1x531xf32> to vector<16x531xf32>
      %50 = arith.addf %48, %49 : vector<16x531xf32>
      %c0_30 = arith.constant 0 : index
      %c0_31 = arith.constant 0 : index
      %51 = vector.load %arg14[%c0_30, %c0_31] : memref<16x531xf32, #tpu.memory_space<vmem>>, vector<16x531xf32>
      tpu.vector_store %arg14[%c0_30, %c0_31], %50 {strides = array<i32>} : memref<16x531xf32, #tpu.memory_space<vmem>>, vector<16x531xf32>,
    } else {
    }
    return
  }
  func.func @transform_0(%arg0: i32) -> (i32, i32) {
    %c0_i32 = arith.constant 0 : i32
    %c0_i32_0 = arith.constant 0 : i32
    %c0_i32_1 = arith.constant 0 : i32
    return %c0_i32, %c0_i32_0 : i32, i32
  }
  func.func @transform_1(%arg0: i32) -> (i32, i32) {
    %c0_i32 = arith.constant 0 : i32
    %c0_i32_0 = arith.constant 0 : i32
    %c0_i32_1 = arith.constant 0 : i32
    return %c0_i32, %c0_i32_0 : i32, i32
  }
  func.func @transform_2(%arg0: i32) -> (i32, i32) {
    %c0_i32 = arith.constant 0 : i32
    %c0_i32_0 = arith.constant 0 : i32
    %c0_i32_1 = arith.constant 0 : i32
    return %c0_i32, %c0_i32_0 : i32, i32
  }
  func.func @transform_3(%arg0: i32) -> (i32, i32) {
    %c0_i32 = arith.constant 0 : i32
    %c0_i32_0 = arith.constant 0 : i32
    %c0_i32_1 = arith.constant 0 : i32
    return %c0_i32, %c0_i32_0 : i32, i32
  }
  func.func @transform_4(%arg0: i32) -> (i32, i32) {
    %c0_i32 = arith.constant 0 : i32
    %c0_i32_0 = arith.constant 0 : i32
    %c0_i32_1 = arith.constant 0 : i32
    return %c0_i32, %c0_i32_0 : i32, i32
  }
  func.func @transform_5(%arg0: i32) -> (i32, i32) {
    %c0_i32 = arith.constant 0 : i32
    %c0_i32_0 = arith.constant 0 : i32
    %c0_i32_1 = arith.constant 0 : i32
    return %c0_i32, %c0_i32_0 : i32, i32
  }
  func.func @transform_6(%arg0: i32) -> (i32, i32) {
    %c0_i32 = arith.constant 0 : i32
    %c0_i32_0 = arith.constant 0 : i32
    %c0_i32_1 = arith.constant 0 : i32
    return %c0_i32, %c0_i32_0 : i32, i32
  }
  func.func @transform_7(%arg0: i32) -> (i32, i32) {
    %c0_i32 = arith.constant 0 : i32
    %c0_i32_0 = arith.constant 0 : i32
    return %c0_i32, %arg0 : i32, i32
  }
  func.func @transform_8(%arg0: i32) -> (i32, i32) {
    %c0_i32 = arith.constant 0 : i32
    %c0_i32_0 = arith.constant 0 : i32
    return %c0_i32, %arg0 : i32, i32
  }
  func.func @transform_9(%arg0: i32) -> (i32, i32) {
    %c0_i32 = arith.constant 0 : i32
    %c0_i32_0 = arith.constant 0 : i32
    return %arg0, %c0_i32 : i32, i32
  }
  func.func @transform_10(%arg0: i32) -> (i32, i32) {
    %c0_i32 = arith.constant 0 : i32
    %c0_i32_0 = arith.constant 0 : i32
    %c0_i32_1 = arith.constant 0 : i32
    return %c0_i32, %c0_i32_0 : i32, i32
  }
  func.func @transform_11(%arg0: i32) -> (i32, i32) {
    %c0_i32 = arith.constant 0 : i32
    %c0_i32_0 = arith.constant 0 : i32
    %c0_i32_1 = arith.constant 0 : i32
    return %c0_i32, %c0_i32_0 : i32, i32
  }
  func.func @transform_12(%arg0: i32) -> (i32, i32) {
    %c0_i32 = arith.constant 0 : i32
    %c0_i32_0 = arith.constant 0 : i32
    %c0_i32_1 = arith.constant 0 : i32
    return %c0_i32, %c0_i32_0 : i32, i32
  }
  func.func @transform_13(%arg0: i32) -> (i32, i32) {
    %c0_i32 = arith.constant 0 : i32
    %c0_i32_0 = arith.constant 0 : i32
    %c0_i32_1 = arith.constant 0 : i32
    return %c0_i32, %c0_i32_0 : i32, i32
  }
}

</mosaic_0001>

<bundles_post_ra>
// kernel: tpu_custom_call.1
= control target key start
LH: loop header
LB: loop body
LE: loop exit
PB: predicated region body
PF: predicated region fallthrough
CT: control target
= control target key end

     0   :  { %s15329_s0 = inlined_call_operand.vmem [shape: f32[16,531], index: 0, kind: input, shape index: {}]   ;;  %s15330_s1 = inlined_call_operand.vmem [shape: bf16[531,1593], index: 1, kind: input, shape index: {}]   ;;  %s15331_s2 = inlined_call_operand.vmem [shape: f32[1,1593], index: 2, kind: input, shape index: {}]   ;;  %s15332_s3 = inlined_call_operand.vmem [shape: bf16[531,531], index: 3, kind: input, shape index: {}]   ;;  %s15333_s4 = inlined_call_operand.vmem [shape: f32[1,531], index: 4, kind: input, shape index: {}]   ;;  %s15334_s5 = inlined_call_operand.vmem [shape: f32[1,531], index: 5, kind: input, shape index: {}]   ;;  %s15335_s6 = inlined_call_operand.vmem [shape: f32[1,531], index: 6, kind: input, shape index: {}]   ;;  %s15336_s7 = inlined_call_operand.vmem [shape: bf16[531,2048], index: 7, kind: input, shape index: {}]   ;;  %s15337_s8 = inlined_call_operand.vmem [shape: f32[1,2048], index: 8, kind: input, shape index: {}]   ;;  %s15338_s9 = inlined_call_operand.vmem [shape: bf16[2048,531], index: 9, kind: input, shape index: {}]   ;;  %s15339_s10 = inlined_call_operand.vmem [shape: f32[1,531], index: 10, kind: input, shape index: {}]   ;;  %s15340_s11 = inlined_call_operand.vmem [shape: f32[1,531], index: 11, kind: input, shape index: {}]   ;;  %s15341_s12 = inlined_call_operand.vmem [shape: f32[1,531], index: 12, kind: input, shape index: {}]   ;;  %s15342_s13 = inlined_call_operand.hbm [shape: f32[16,531], index: 13, kind: output, shape index: {}]  }
   0x1   :  { %15343 = sst [smem:[#allocation9_spill]] %s15336_s7 }
   0x2   :  { %18 = vsyncpa [#allocation6], 0  ;;  %s12367_s25 = smov 0   ;;  %s12369_s26 = smov 0  }
   0x3   :  { %s12371_s27 = smov 0  }
   0x4 LB: > { %s12383_s28 = sadd.s32 4294967295, %s12276_s27   ;;  %s12386_s29 = sadd.s32 1, %s12276_s27   ;;  %s12276_s27 = sphi %s12371_s27, %s15352_s27   ;;  %s12272_s26 = sphi %s12369_s26, %s15351_s26   ;;  %s12268_s25 = sphi %s12367_s25, %s15350_s25  }
   0x5   : > { %s175_s30 = ssub.s32 %s12276_s27, %s12386_s29  ;;  %s178_s14 = sadd.s32 1, %s12272_s26 }
   0x6   : > { %p176_p0 = scmp.eq.s32.totalorder %s175_s30, 0  ;;  %p185_p1 = scmp.ne.s32.totalorder %s12272_s26, %s12268_s25 }
   0x7   : > { %p186_p2 = scmp.eq.s32.totalorder %s12276_s27, 0  ;;  %p9526_p4 = scmp.ge.s32.totalorder %s12276_s27, 4 }
   0x8   : > { %s12395_s15 = scalar_select %p176_p0, %s12272_s26, %s178_s14  }
   0x9   : > { %p187_p3 = por %p186_p2, %p185_p1  ;;  %377 = sbr.rel (%p9526_p4) target bundleno = 93 (0x5d), region = 56 }
   0xa   : > { %15344 = sst [smem:[#allocation8_spill]] %s12395_s15 }
  0x10   : > { %380 = sbr.rel (!%p187_p3) target bundleno = 93 (0x5d), region = 60  ;;  %s382_s16 = sand.u32 (%p187_p3), 1, %s12272_s26  }
  0x11   : > { %s10474_s17 = sshll.u32 (%p187_p3), %s12276_s27, 4  ;;  %s10772_s18 = smul.u32 (%p187_p3), 1072, %s382_s16 }
  0x12   : > { %s15345_s7 = sld [smem:[#allocation9_spill]] (%p187_p3) }
  0x13   : > { %s12411_s22 = scalar_lea.vmem (%p187_p3), [#allocation4], %s10772_s18 }
  0x18   : > { %s12403_s21 = scalar_lea.vmem %s15345_s7, %s10474_s17 }
  0x19   : > { %v400_v0 = vld [vmem:[%s12403_s21] sm:$0xff]  ;;  %v402_v1 = vld [vmem:[%s12403_s21 + $0x8] sm:$0xff] }
  0x1a   : > { %v404_v2 = vld [vmem:[%s12403_s21 + $0x40] sm:$0xff]  ;;  %v406_v3 = vld [vmem:[%s12403_s21 + $0x48] sm:$0xff]  ;;  %401 = vst [vmem:[%s12411_s22] sm:$0xff] %v400_v0  ;;  %403 = vst [vmem:[%s12411_s22 + $0x8] sm:$0xff] %v402_v1 }
  0x1b   : > { %v408_v4 = vld [vmem:[%s12403_s21 + $0x80] sm:$0xff]  ;;  %v410_v5 = vld [vmem:[%s12403_s21 + $0x88] sm:$0xff]  ;;  %405 = vst [vmem:[%s12411_s22 + $0x10] sm:$0xff] %v404_v2  ;;  %407 = vst [vmem:[%s12411_s22 + $0x18] sm:$0xff] %v406_v3 }
  0x1c   : > { %409 = vst [vmem:[%s12411_s22 + $0x20] sm:$0xff] %v408_v4  ;;  %411 = vst [vmem:[%s12411_s22 + $0x28] sm:$0xff] %v410_v5  ;;  %v412_v6 = vld [vmem:[%s12403_s21 + $0xc0] sm:$0xff]  ;;  %v414_v7 = vld [vmem:[%s12403_s21 + $0xc8] sm:$0xff] }
  0x1d   : > { %v416_v8 = vld [vmem:[%s12403_s21 + $0x100] sm:$0xff]  ;;  %413 = vst [vmem:[%s12411_s22 + $0x30] sm:$0xff] %v412_v6  ;;  %415 = vst [vmem:[%s12411_s22 + $0x38] sm:$0xff] %v414_v7  ;;  %v418_v9 = vld [vmem:[%s12403_s21 + $0x108] sm:$0xff] }
  0x1e   : > { %417 = vst [vmem:[%s12411_s22 + $0x40] sm:$0xff] %v416_v8  ;;  %v420_v10 = vld [vmem:[%s12403_s21 + $0x140] sm:$0xff]  ;;  %v422_v11 = vld [vmem:[%s12403_s21 + $0x148] sm:$0xff]  ;;  %419 = vst [vmem:[%s12411_s22 + $0x48] sm:$0xff] %v418_v9 }
  0x1f   : > { %421 = vst [vmem:[%s12411_s22 + $0x50] sm:$0xff] %v420_v10  ;;  %423 = vst [vmem:[%s12411_s22 + $0x58] sm:$0xff] %v422_v11  ;;  %v424_v12 = vld [vmem:[%s12403_s21 + $0x180] sm:$0xff]  ;;  %v426_v13 = vld [vmem:[%s12403_s21 + $0x188] sm:$0xff] }
  0x20   : > { %v428_v14 = vld [vmem:[%s12403_s21 + $0x1c0] sm:$0xff]  ;;  %425 = vst [vmem:[%s12411_s22 + $0x60] sm:$0xff] %v424_v12  ;;  %427 = vst [vmem:[%s12411_s22 + $0x68] sm:$0xff] %v426_v13  ;;  %v430_v15 = vld [vmem:[%s12403_s21 + $0x1c8] sm:$0xff] }
  0x21   : > { %429 = vst [vmem:[%s12411_s22 + $0x70] sm:$0xff] %v428_v14  ;;  %v432_v16 = vld [vmem:[%s12403_s21 + $0x200] sm:$0xff]  ;;  %v434_v17 = vld [vmem:[%s12403_s21 + $0x208] sm:$0xff]  ;;  %431 = vst [vmem:[%s12411_s22 + $0x78] sm:$0xff] %v430_v15 }
  0x22   : > { %433 = vst [vmem:[%s12411_s22 + $0x80] sm:$0xff] %v432_v16  ;;  %435 = vst [vmem:[%s12411_s22 + $0x88] sm:$0xff] %v434_v17  ;;  %v436_v18 = vld [vmem:[%s12403_s21 + $0x240] sm:$0xff]  ;;  %v438_v19 = vld [vmem:[%s12403_s21 + $0x248] sm:$0xff] }
  0x23   : > { %v440_v20 = vld [vmem:[%s12403_s21 + $0x280] sm:$0xff]  ;;  %437 = vst [vmem:[%s12411_s22 + $0x90] sm:$0xff] %v436_v18  ;;  %439 = vst [vmem:[%s12411_s22 + $0x98] sm:$0xff] %v438_v19  ;;  %v442_v21 = vld [vmem:[%s12403_s21 + $0x288] sm:$0xff] }
  0x24   : > { %441 = vst [vmem:[%s12411_s22 + $0xa0] sm:$0xff] %v440_v20  ;;  %v444_v22 = vld [vmem:[%s12403_s21 + $0x2c0] sm:$0xff]  ;;  %v446_v23 = vld [vmem:[%s12403_s21 + $0x2c8] sm:$0xff]  ;;  %443 = vst [vmem:[%s12411_s22 + $0xa8] sm:$0xff] %v442_v21 }
  0x25   : > { %445 = vst [vmem:[%s12411_s22 + $0xb0] sm:$0xff] %v444_v22  ;;  %447 = vst [vmem:[%s12411_s22 + $0xb8] sm:$0xff] %v446_v23  ;;  %v448_v24 = vld [vmem:[%s12403_s21 + $0x300] sm:$0xff]  ;;  %v450_v25 = vld [vmem:[%s12403_s21 + $0x308] sm:$0xff] }
  0x26   : > { %v452_v26 = vld [vmem:[%s12403_s21 + $0x340] sm:$0xff]  ;;  %449 = vst [vmem:[%s12411_s22 + $0xc0] sm:$0xff] %v448_v24  ;;  %451 = vst [vmem:[%s12411_s22 + $0xc8] sm:$0xff] %v450_v25  ;;  %v454_v27 = vld [vmem:[%s12403_s21 + $0x348] sm:$0xff] }
  0x27   : > { %453 = vst [vmem:[%s12411_s22 + $0xd0] sm:$0xff] %v452_v26  ;;  %v456_v28 = vld [vmem:[%s12403_s21 + $0x380] sm:$0xff]  ;;  %v458_v29 = vld [vmem:[%s12403_s21 + $0x388] sm:$0xff]  ;;  %455 = vst [vmem:[%s12411_s22 + $0xd8] sm:$0xff] %v454_v27 }
  0x28   : > { %457 = vst [vmem:[%s12411_s22 + $0xe0] sm:$0xff] %v456_v28  ;;  %459 = vst [vmem:[%s12411_s22 + $0xe8] sm:$0xff] %v458_v29  ;;  %v460_v30 = vld [vmem:[%s12403_s21 + $0x3c0] sm:$0xff]  ;;  %v462_v31 = vld [vmem:[%s12403_s21 + $0x3c8] sm:$0xff] }
  0x29   : > { %v464_v32 = vld [vmem:[%s12403_s21 + $0x400] sm:$0xff]  ;;  %461 = vst [vmem:[%s12411_s22 + $0xf0] sm:$0xff] %v460_v30  ;;  %463 = vst [vmem:[%s12411_s22 + $0xf8] sm:$0xff] %v462_v31  ;;  %v466_v33 = vld [vmem:[%s12403_s21 + $0x408] sm:$0xff] }
  0x2a   : > { %465 = vst [vmem:[%s12411_s22 + $0x100] sm:$0xff] %v464_v32  ;;  %v468_v34 = vld [vmem:[%s12403_s21 + $0x440] sm:$0xff]  ;;  %v470_v35 = vld [vmem:[%s12403_s21 + $0x448] sm:$0xff]  ;;  %467 = vst [vmem:[%s12411_s22 + $0x108] sm:$0xff] %v466_v33 }
  0x2b   : > { %469 = vst [vmem:[%s12411_s22 + $0x110] sm:$0xff] %v468_v34  ;;  %471 = vst [vmem:[%s12411_s22 + $0x118] sm:$0xff] %v470_v35  ;;  %v472_v36 = vld [vmem:[%s12403_s21 + $0x480] sm:$0xff]  ;;  %v474_v37 = vld [vmem:[%s12403_s21 + $0x488] sm:$0xff] }
  0x2c   : > { %v476_v38 = vld [vmem:[%s12403_s21 + $0x4c0] sm:$0xff]  ;;  %473 = vst [vmem:[%s12411_s22 + $0x120] sm:$0xff] %v472_v36  ;;  %475 = vst [vmem:[%s12411_s22 + $0x128] sm:$0xff] %v474_v37  ;;  %v478_v39 = vld [vmem:[%s12403_s21 + $0x4c8] sm:$0xff] }
  0x2d   : > { %477 = vst [vmem:[%s12411_s22 + $0x130] sm:$0xff] %v476_v38  ;;  %v480_v40 = vld [vmem:[%s12403_s21 + $0x500] sm:$0xff]  ;;  %v482_v41 = vld [vmem:[%s12403_s21 + $0x508] sm:$0xff]  ;;  %479 = vst [vmem:[%s12411_s22 + $0x138] sm:$0xff] %v478_v39 }
  0x2e   : > { %481 = vst [vmem:[%s12411_s22 + $0x140] sm:$0xff] %v480_v40  ;;  %483 = vst [vmem:[%s12411_s22 + $0x148] sm:$0xff] %v482_v41  ;;  %v484_v42 = vld [vmem:[%s12403_s21 + $0x540] sm:$0xff]  ;;  %v486_v43 = vld [vmem:[%s12403_s21 + $0x548] sm:$0xff] }
  0x2f   : > { %v488_v44 = vld [vmem:[%s12403_s21 + $0x580] sm:$0xff]  ;;  %485 = vst [vmem:[%s12411_s22 + $0x150] sm:$0xff] %v484_v42  ;;  %487 = vst [vmem:[%s12411_s22 + $0x158] sm:$0xff] %v486_v43  ;;  %v490_v45 = vld [vmem:[%s12403_s21 + $0x588] sm:$0xff] }
  0x30   : > { %489 = vst [vmem:[%s12411_s22 + $0x160] sm:$0xff] %v488_v44  ;;  %v492_v46 = vld [vmem:[%s12403_s21 + $0x5c0] sm:$0xff]  ;;  %v494_v47 = vld [vmem:[%s12403_s21 + $0x5c8] sm:$0xff]  ;;  %491 = vst [vmem:[%s12411_s22 + $0x168] sm:$0xff] %v490_v45 }
  0x31   : > { %493 = vst [vmem:[%s12411_s22 + $0x170] sm:$0xff] %v492_v46  ;;  %495 = vst [vmem:[%s12411_s22 + $0x178] sm:$0xff] %v494_v47  ;;  %v496_v48 = vld [vmem:[%s12403_s21 + $0x600] sm:$0xff]  ;;  %v498_v49 = vld [vmem:[%s12403_s21 + $0x608] sm:$0xff] }
  0x32   : > { %v500_v50 = vld [vmem:[%s12403_s21 + $0x640] sm:$0xff]  ;;  %497 = vst [vmem:[%s12411_s22 + $0x180] sm:$0xff] %v496_v48  ;;  %499 = vst [vmem:[%s12411_s22 + $0x188] sm:$0xff] %v498_v49  ;;  %v502_v51 = vld [vmem:[%s12403_s21 + $0x648] sm:$0xff] }
  0x33   : > { %501 = vst [vmem:[%s12411_s22 + $0x190] sm:$0xff] %v500_v50  ;;  %v504_v52 = vld [vmem:[%s12403_s21 + $0x680] sm:$0xff]  ;;  %v506_v53 = vld [vmem:[%s12403_s21 + $0x688] sm:$0xff]  ;;  %503 = vst [vmem:[%s12411_s22 + $0x198] sm:$0xff] %v502_v51 }
  0x34   : > { %505 = vst [vmem:[%s12411_s22 + $0x1a0] sm:$0xff] %v504_v52  ;;  %507 = vst [vmem:[%s12411_s22 + $0x1a8] sm:$0xff] %v506_v53  ;;  %v508_v54 = vld [vmem:[%s12403_s21 + $0x6c0] sm:$0xff]  ;;  %v510_v55 = vld [vmem:[%s12403_s21 + $0x6c8] sm:$0xff] }
  0x35   : > { %v512_v56 = vld [vmem:[%s12403_s21 + $0x700] sm:$0xff]  ;;  %509 = vst [vmem:[%s12411_s22 + $0x1b0] sm:$0xff] %v508_v54  ;;  %511 = vst [vmem:[%s12411_s22 + $0x1b8] sm:$0xff] %v510_v55  ;;  %v514_v57 = vld [vmem:[%s12403_s21 + $0x708] sm:$0xff] }
  0x36   : > { %513 = vst [vmem:[%s12411_s22 + $0x1c0] sm:$0xff] %v512_v56  ;;  %v516_v58 = vld [vmem:[%s12403_s21 + $0x740] sm:$0xff]  ;;  %v518_v59 = vld [vmem:[%s12403_s21 + $0x748] sm:$0xff]  ;;  %515 = vst [vmem:[%s12411_s22 + $0x1c8] sm:$0xff] %v514_v57 }
  0x37   : > { %517 = vst [vmem:[%s12411_s22 + $0x1d0] sm:$0xff] %v516_v58  ;;  %519 = vst [vmem:[%s12411_s22 + $0x1d8] sm:$0xff] %v518_v59  ;;  %v520_v60 = vld [vmem:[%s12403_s21 + $0x780] sm:$0xff]  ;;  %v522_v61 = vld [vmem:[%s12403_s21 + $0x788] sm:$0xff] }
  0x38   : > { %v524_v62 = vld [vmem:[%s12403_s21 + $0x7c0] sm:$0xff]  ;;  %521 = vst [vmem:[%s12411_s22 + $0x1e0] sm:$0xff] %v520_v60  ;;  %523 = vst [vmem:[%s12411_s22 + $0x1e8] sm:$0xff] %v522_v61  ;;  %v526_v63 = vld [vmem:[%s12403_s21 + $0x7c8] sm:$0xff] }
  0x39   : > { %525 = vst [vmem:[%s12411_s22 + $0x1f0] sm:$0xff] %v524_v62  ;;  %v528_v0 = vld [vmem:[%s12403_s21 + $0x800] sm:$0xff]  ;;  %v530_v1 = vld [vmem:[%s12403_s21 + $0x808] sm:$0xff]  ;;  %527 = vst [vmem:[%s12411_s22 + $0x1f8] sm:$0xff] %v526_v63 }
  0x3a   : > { %529 = vst [vmem:[%s12411_s22 + $0x200] sm:$0xff] %v528_v0  ;;  %531 = vst [vmem:[%s12411_s22 + $0x208] sm:$0xff] %v530_v1  ;;  %v532_v2 = vld [vmem:[%s12403_s21 + $0x840] sm:$0xff]  ;;  %v534_v3 = vld [vmem:[%s12403_s21 + $0x848] sm:$0xff] }
  0x3b   : > { %v536_v4 = vld [vmem:[%s12403_s21 + $0x880] sm:$0xff]  ;;  %533 = vst [vmem:[%s12411_s22 + $0x210] sm:$0xff] %v532_v2  ;;  %535 = vst [vmem:[%s12411_s22 + $0x218] sm:$0xff] %v534_v3  ;;  %v538_v5 = vld [vmem:[%s12403_s21 + $0x888] sm:$0xff] }
  0x3c   : > { %537 = vst [vmem:[%s12411_s22 + $0x220] sm:$0xff] %v536_v4  ;;  %v540_v6 = vld [vmem:[%s12403_s21 + $0x8c0] sm:$0xff]  ;;  %v542_v7 = vld [vmem:[%s12403_s21 + $0x8c8] sm:$0xff]  ;;  %539 = vst [vmem:[%s12411_s22 + $0x228] sm:$0xff] %v538_v5 }
  0x3d   : > { %541 = vst [vmem:[%s12411_s22 + $0x230] sm:$0xff] %v540_v6  ;;  %543 = vst [vmem:[%s12411_s22 + $0x238] sm:$0xff] %v542_v7  ;;  %v544_v8 = vld [vmem:[%s12403_s21 + $0x900] sm:$0xff]  ;;  %v546_v9 = vld [vmem:[%s12403_s21 + $0x908] sm:$0xff] }
  0x3e   : > { %v548_v10 = vld [vmem:[%s12403_s21 + $0x940] sm:$0xff]  ;;  %545 = vst [vmem:[%s12411_s22 + $0x240] sm:$0xff] %v544_v8  ;;  %547 = vst [vmem:[%s12411_s22 + $0x248] sm:$0xff] %v546_v9  ;;  %v550_v11 = vld [vmem:[%s12403_s21 + $0x948] sm:$0xff] }
  0x3f   : > { %549 = vst [vmem:[%s12411_s22 + $0x250] sm:$0xff] %v548_v10  ;;  %v552_v12 = vld [vmem:[%s12403_s21 + $0x980] sm:$0xff]  ;;  %v554_v13 = vld [vmem:[%s12403_s21 + $0x988] sm:$0xff]  ;;  %551 = vst [vmem:[%s12411_s22 + $0x258] sm:$0xff] %v550_v11 }
  0x40   : > { %553 = vst [vmem:[%s12411_s22 + $0x260] sm:$0xff] %v552_v12  ;;  %555 = vst [vmem:[%s12411_s22 + $0x268] sm:$0xff] %v554_v13  ;;  %v556_v14 = vld [vmem:[%s12403_s21 + $0x9c0] sm:$0xff]  ;;  %v558_v15 = vld [vmem:[%s12403_s21 + $0x9c8] sm:$0xff] }
  0x41   : > { %v560_v16 = vld [vmem:[%s12403_s21 + $0xa00] sm:$0xff]  ;;  %557 = vst [vmem:[%s12411_s22 + $0x270] sm:$0xff] %v556_v14  ;;  %559 = vst [vmem:[%s12411_s22 + $0x278] sm:$0xff] %v558_v15  ;;  %v562_v17 = vld [vmem:[%s12403_s21 + $0xa08] sm:$0xff] }
  0x42   : > { %561 = vst [vmem:[%s12411_s22 + $0x280] sm:$0xff] %v560_v16  ;;  %v564_v18 = vld [vmem:[%s12403_s21 + $0xa40] sm:$0xff]  ;;  %v566_v19 = vld [vmem:[%s12403_s21 + $0xa48] sm:$0xff]  ;;  %563 = vst [vmem:[%s12411_s22 + $0x288] sm:$0xff] %v562_v17 }
  0x43   : > { %565 = vst [vmem:[%s12411_s22 + $0x290] sm:$0xff] %v564_v18  ;;  %567 = vst [vmem:[%s12411_s22 + $0x298] sm:$0xff] %v566_v19  ;;  %v568_v20 = vld [vmem:[%s12403_s21 + $0xa80] sm:$0xff]  ;;  %v570_v21 = vld [vmem:[%s12403_s21 + $0xa88] sm:$0xff] }
  0x44   : > { %v572_v22 = vld [vmem:[%s12403_s21 + $0xac0] sm:$0xff]  ;;  %569 = vst [vmem:[%s12411_s22 + $0x2a0] sm:$0xff] %v568_v20  ;;  %571 = vst [vmem:[%s12411_s22 + $0x2a8] sm:$0xff] %v570_v21  ;;  %v574_v23 = vld [vmem:[%s12403_s21 + $0xac8] sm:$0xff] }
  0x45   : > { %573 = vst [vmem:[%s12411_s22 + $0x2b0] sm:$0xff] %v572_v22  ;;  %v576_v24 = vld [vmem:[%s12403_s21 + $0xb00] sm:$0xff]  ;;  %v578_v25 = vld [vmem:[%s12403_s21 + $0xb08] sm:$0xff]  ;;  %575 = vst [vmem:[%s12411_s22 + $0x2b8] sm:$0xff] %v574_v23 }
  0x46   : > { %577 = vst [vmem:[%s12411_s22 + $0x2c0] sm:$0xff] %v576_v24  ;;  %579 = vst [vmem:[%s12411_s22 + $0x2c8] sm:$0xff] %v578_v25  ;;  %v580_v26 = vld [vmem:[%s12403_s21 + $0xb40] sm:$0xff]  ;;  %v582_v27 = vld [vmem:[%s12403_s21 + $0xb48] sm:$0xff] }
  0x47   : > { %v584_v28 = vld [vmem:[%s12403_s21 + $0xb80] sm:$0xff]  ;;  %581 = vst [vmem:[%s12411_s22 + $0x2d0] sm:$0xff] %v580_v26  ;;  %583 = vst [vmem:[%s12411_s22 + $0x2d8] sm:$0xff] %v582_v27  ;;  %v586_v29 = vld [vmem:[%s12403_s21 + $0xb88] sm:$0xff] }
  0x48   : > { %585 = vst [vmem:[%s12411_s22 + $0x2e0] sm:$0xff] %v584_v28  ;;  %v588_v30 = vld [vmem:[%s12403_s21 + $0xbc0] sm:$0xff]  ;;  %v590_v31 = vld [vmem:[%s12403_s21 + $0xbc8] sm:$0xff]  ;;  %587 = vst [vmem:[%s12411_s22 + $0x2e8] sm:$0xff] %v586_v29 }
  0x49   : > { %589 = vst [vmem:[%s12411_s22 + $0x2f0] sm:$0xff] %v588_v30  ;;  %591 = vst [vmem:[%s12411_s22 + $0x2f8] sm:$0xff] %v590_v31  ;;  %v592_v32 = vld [vmem:[%s12403_s21 + $0xc00] sm:$0xff]  ;;  %v594_v33 = vld [vmem:[%s12403_s21 + $0xc08] sm:$0xff] }
  0x4a   : > { %v596_v34 = vld [vmem:[%s12403_s21 + $0xc40] sm:$0xff]  ;;  %593 = vst [vmem:[%s12411_s22 + $0x300] sm:$0xff] %v592_v32  ;;  %595 = vst [vmem:[%s12411_s22 + $0x308] sm:$0xff] %v594_v33  ;;  %v598_v35 = vld [vmem:[%s12403_s21 + $0xc48] sm:$0xff] }
  0x4b   : > { %597 = vst [vmem:[%s12411_s22 + $0x310] sm:$0xff] %v596_v34  ;;  %v600_v36 = vld [vmem:[%s12403_s21 + $0xc80] sm:$0xff]  ;;  %v602_v37 = vld [vmem:[%s12403_s21 + $0xc88] sm:$0xff]  ;;  %599 = vst [vmem:[%s12411_s22 + $0x318] sm:$0xff] %v598_v35 }
  0x4c   : > { %601 = vst [vmem:[%s12411_s22 + $0x320] sm:$0xff] %v600_v36  ;;  %603 = vst [vmem:[%s12411_s22 + $0x328] sm:$0xff] %v602_v37  ;;  %v604_v38 = vld [vmem:[%s12403_s21 + $0xcc0] sm:$0xff]  ;;  %v606_v39 = vld [vmem:[%s12403_s21 + $0xcc8] sm:$0xff] }
  0x4d   : > { %v608_v40 = vld [vmem:[%s12403_s21 + $0xd00] sm:$0xff]  ;;  %605 = vst [vmem:[%s12411_s22 + $0x330] sm:$0xff] %v604_v38  ;;  %607 = vst [vmem:[%s12411_s22 + $0x338] sm:$0xff] %v606_v39  ;;  %v610_v41 = vld [vmem:[%s12403_s21 + $0xd08] sm:$0xff] }
  0x4e   : > { %609 = vst [vmem:[%s12411_s22 + $0x340] sm:$0xff] %v608_v40  ;;  %v612_v42 = vld [vmem:[%s12403_s21 + $0xd40] sm:$0xff]  ;;  %v614_v43 = vld [vmem:[%s12403_s21 + $0xd48] sm:$0xff]  ;;  %611 = vst [vmem:[%s12411_s22 + $0x348] sm:$0xff] %v610_v41 }
  0x4f   : > { %613 = vst [vmem:[%s12411_s22 + $0x350] sm:$0xff] %v612_v42  ;;  %615 = vst [vmem:[%s12411_s22 + $0x358] sm:$0xff] %v614_v43  ;;  %v616_v44 = vld [vmem:[%s12403_s21 + $0xd80] sm:$0xff]  ;;  %v618_v45 = vld [vmem:[%s12403_s21 + $0xd88] sm:$0xff] }
  0x50   : > { %v620_v46 = vld [vmem:[%s12403_s21 + $0xdc0] sm:$0xff]  ;;  %617 = vst [vmem:[%s12411_s22 + $0x360] sm:$0xff] %v616_v44  ;;  %619 = vst [vmem:[%s12411_s22 + $0x368] sm:$0xff] %v618_v45  ;;  %v622_v47 = vld [vmem:[%s12403_s21 + $0xdc8] sm:$0xff] }
  0x51   : > { %621 = vst [vmem:[%s12411_s22 + $0x370] sm:$0xff] %v620_v46  ;;  %v624_v48 = vld [vmem:[%s12403_s21 + $0xe00] sm:$0xff]  ;;  %v626_v49 = vld [vmem:[%s12403_s21 + $0xe08] sm:$0xff]  ;;  %623 = vst [vmem:[%s12411_s22 + $0x378] sm:$0xff] %v622_v47 }
  0x52   : > { %625 = vst [vmem:[%s12411_s22 + $0x380] sm:$0xff] %v624_v48  ;;  %627 = vst [vmem:[%s12411_s22 + $0x388] sm:$0xff] %v626_v49  ;;  %v628_v50 = vld [vmem:[%s12403_s21 + $0xe40] sm:$0xff]  ;;  %v630_v51 = vld [vmem:[%s12403_s21 + $0xe48] sm:$0xff] }
  0x53   : > { %v632_v52 = vld [vmem:[%s12403_s21 + $0xe80] sm:$0xff]  ;;  %629 = vst [vmem:[%s12411_s22 + $0x390] sm:$0xff] %v628_v50  ;;  %631 = vst [vmem:[%s12411_s22 + $0x398] sm:$0xff] %v630_v51  ;;  %v634_v53 = vld [vmem:[%s12403_s21 + $0xe88] sm:$0xff] }
  0x54   : > { %633 = vst [vmem:[%s12411_s22 + $0x3a0] sm:$0xff] %v632_v52  ;;  %v636_v54 = vld [vmem:[%s12403_s21 + $0xec0] sm:$0xff]  ;;  %v638_v55 = vld [vmem:[%s12403_s21 + $0xec8] sm:$0xff]  ;;  %635 = vst [vmem:[%s12411_s22 + $0x3a8] sm:$0xff] %v634_v53 }
  0x55   : > { %637 = vst [vmem:[%s12411_s22 + $0x3b0] sm:$0xff] %v636_v54  ;;  %639 = vst [vmem:[%s12411_s22 + $0x3b8] sm:$0xff] %v638_v55  ;;  %v640_v56 = vld [vmem:[%s12403_s21 + $0xf00] sm:$0xff]  ;;  %v642_v57 = vld [vmem:[%s12403_s21 + $0xf08] sm:$0xff] }
  0x56   : > { %v644_v58 = vld [vmem:[%s12403_s21 + $0xf40] sm:$0xff]  ;;  %641 = vst [vmem:[%s12411_s22 + $0x3c0] sm:$0xff] %v640_v56  ;;  %643 = vst [vmem:[%s12411_s22 + $0x3c8] sm:$0xff] %v642_v57  ;;  %v646_v59 = vld [vmem:[%s12403_s21 + $0xf48] sm:$0xff] }
  0x57   : > { %645 = vst [vmem:[%s12411_s22 + $0x3d0] sm:$0xff] %v644_v58  ;;  %v648_v60 = vld [vmem:[%s12403_s21 + $0xf80] sm:$0xff]  ;;  %v650_v61 = vld [vmem:[%s12403_s21 + $0xf88] sm:$0xff]  ;;  %647 = vst [vmem:[%s12411_s22 + $0x3d8] sm:$0xff] %v646_v59 }
  0x58   : > { %649 = vst [vmem:[%s12411_s22 + $0x3e0] sm:$0xff] %v648_v60  ;;  %651 = vst [vmem:[%s12411_s22 + $0x3e8] sm:$0xff] %v650_v61  ;;  %v652_v62 = vld [vmem:[%s12403_s21 + $0xfc0] sm:$0xff]  ;;  %v654_v63 = vld [vmem:[%s12403_s21 + $0xfc8] sm:$0xff] }
  0x59   : > { %v656_v0 = vld [vmem:[%s12403_s21 + $0x1000] sm:$0xff]  ;;  %653 = vst [vmem:[%s12411_s22 + $0x3f0] sm:$0xff] %v652_v62  ;;  %655 = vst [vmem:[%s12411_s22 + $0x3f8] sm:$0xff] %v654_v63  ;;  %v658_v1 = vld [vmem:[%s12403_s21 + $0x1008] sm:$0xff] }
  0x5a   : > { %657 = vst [vmem:[%s12411_s22 + $0x400] sm:$0xff] %v656_v0  ;;  %v660_v2 = vld [vmem:[%s12403_s21 + $0x1040] sm:$0xff]  ;;  %v662_v3 = vld [vmem:[%s12403_s21 + $0x1048] sm:$0xff]  ;;  %659 = vst [vmem:[%s12411_s22 + $0x408] sm:$0xff] %v658_v1 }
  0x5b   : > { %661 = vst [vmem:[%s12411_s22 + $0x410] sm:$0xff] %v660_v2  ;;  %663 = vst [vmem:[%s12411_s22 + $0x418] sm:$0xff] %v662_v3  ;;  %v664_v4 = vld [vmem:[%s12403_s21 + $0x1080] sm:$0xff]  ;;  %v666_v5 = vld [vmem:[%s12403_s21 + $0x1088] sm:$0xff] }
  0x5c   : > { %665 = vst [vmem:[%s12411_s22 + $0x420] sm:$0xff] %v664_v4  ;;  %667 = vst [vmem:[%s12411_s22 + $0x428] sm:$0xff] %v666_v5 }
  0x5d PF: > { %p9529_p5 = scmp.ge.s32.totalorder %s12276_s27, 1  ;;  %p690_p6 = scmp.lt.s32.totalorder %s12276_s27, 5 }
  0x5f   : > { %p691_p7 = pnand %p9529_p5, %p690_p6 }
  0x60   : > { %s697_s23 = sand.u32 (!%p691_p7), 1, %s12268_s25   ;;  %s9530_s24 = sshll.u32 (!%p691_p7), %s12383_s28, 2 }
  0x61   : > { %694 = sbr.rel (%p691_p7) target bundleno = 3388 (0xd3c), region = 91  ;;  %p747_p8 = scmp.lt.s32.totalorder (!%p691_p7), %s9530_s24, 15 }
  0x62   : > { %s10773_s30 = smul.u32 (!%p691_p7), 1072, %s697_s23  ;;  %s9531_s14 = sshll.u32 (!%p691_p7), %s12383_s28, 6 }
  0x63   : > { %p752_p9 = scmp.lt.s32.totalorder (!%p691_p7), %s9531_s14, 255  ;;  %p9533_p10 = scmp.ne.s32.totalorder (!%p691_p7), %s12383_s28, 0 }
  0x64   : > { %s12691_s25 = scalar_lea.vmem (!%p691_p7), [#allocation4], %s10773_s30 }
  0x68   : > { %s15354_s24 = smov (!%p747_p8, %s9530_s24), 15  ;;  %s15356_s14 = smov (!%p752_p9, %s9531_s14), 255 }
  0x69   : > { %s10774_s27 = smul.u32 20, %s15356_s14  ;;  %v10879_v6 = vld [vmem:[%s15330_s1 + $0x4] ss:$52 sps:$4 sm:$0xff] (!%p9533_p10)   ;;  %v10881_v7 = vld [vmem:[%s15330_s1 + $0xc] ss:$52 sps:$4 sm:$0xff] (!%p9533_p10)   ;;  %v769_v53 = vld [vmem:[%s15329_s0 + $0x30] sm:$0xff] (!%p9533_p10) }
  0x6a   : > { %762 = sbr.rel (%p9533_p10) target bundleno = 2341 (0x925), region = 99  ;;  %3574 = vmatprep.subr.bf16.mxu0 (!%p9533_p10), %v10879_v6  ;;  %v10883_v8 = vld [vmem:[%s15330_s1] ss:$52 sps:$4 sm:$0xff] (!%p9533_p10)   ;;  %v10884_v9 = vld [vmem:[%s15330_s1 + $0x8] ss:$52 sps:$4 sm:$0xff] (!%p9533_p10)   ;;  %3703 = vmatprep.subr.bf16.mxu1 (!%p9533_p10), %v10881_v7  ;;  %vm3531_vm0 = vcmask (!%p9533_p10), 1040384  }
  0x6b   : > { %s12689_s21 = scalar_lea.vmem %s15338_s9, %s10774_s27  ;;  %v10885_v10 = vld [vmem:[%s15330_s1 + $0x6c] ss:$52 sps:$4 sm:$0xff] (!%p9533_p10)   ;;  %3575 = vmatpush1.bf16.msra.mxu0 (!%p9533_p10), %v10883_v8  ;;  %3704 = vmatpush1.bf16.msra.mxu1 (!%p9533_p10), %v10884_v9  ;;  %v10887_v11 = vld [vmem:[%s15330_s1 + $0x74] ss:$52 sps:$4 sm:$0xff] (!%p9533_p10)   ;;  %v10890_v13 = vld [vmem:[%s15330_s1 + $0x70] ss:$52 sps:$4 sm:$0xff] (!%p9533_p10)  }
  0x6c   : > { %v10889_v12 = vld [vmem:[%s15330_s1 + $0x68] ss:$52 sps:$4 sm:$0xff] (!%p9533_p10)   ;;  %3576 = vmatprep.subr.bf16.mxu0 (!%p9533_p10), %v10885_v10  ;;  %3705 = vmatprep.subr.bf16.mxu1 (!%p9533_p10), %v10887_v11  ;;  %v10895_v16 = vld [vmem:[%s15330_s1 + $0xd0] ss:$52 sps:$4 sm:$0xff] (!%p9533_p10)   ;;  %v10896_v17 = vld [vmem:[%s15330_s1 + $0xd8] ss:$52 sps:$4 sm:$0xff] (!%p9533_p10)  }
  0x6d   : > { %v10891_v14 = vld [vmem:[%s15330_s1 + $0xd4] ss:$52 sps:$4 sm:$0xff] (!%p9533_p10)   ;;  %v10893_v15 = vld [vmem:[%s15330_s1 + $0xdc] ss:$52 sps:$4 sm:$0xff] (!%p9533_p10)   ;;  %v10899_v19 = vld [vmem:[%s15330_s1 + $0x144] ss:$52 sps:$4 sm:$0xff] (!%p9533_p10)  }
  0x6e   : > { %v10897_v18 = vld [vmem:[%s15330_s1 + $0x13c] ss:$52 sps:$4 sm:$0xff] (!%p9533_p10)   ;;  %v10901_v20 = vld [vmem:[%s15330_s1 + $0x138] ss:$52 sps:$4 sm:$0xff] (!%p9533_p10)   ;;  %v10902_v21 = vld [vmem:[%s15330_s1 + $0x140] ss:$52 sps:$4 sm:$0xff] (!%p9533_p10)  }
  0x6f   : > { %3577 = vmatpush1.bf16.msra.mxu0 (!%p9533_p10), %v10889_v12  ;;  %3706 = vmatpush1.bf16.msra.mxu1 (!%p9533_p10), %v10890_v13  ;;  %v10903_v22 = vld [vmem:[%s15330_s1 + $0x1a4] ss:$52 sps:$4 sm:$0xff] (!%p9533_p10)   ;;  %v10905_v23 = vld [vmem:[%s15330_s1 + $0x1ac] ss:$52 sps:$4 sm:$0xff] (!%p9533_p10)   ;;  %v10908_v25 = vld [vmem:[%s15330_s1 + $0x1a8] ss:$52 sps:$4 sm:$0xff] (!%p9533_p10)  }
  0x70   : > { %3578 = vmatprep.subr.bf16.mxu0 (!%p9533_p10), %v10891_v14  ;;  %3707 = vmatprep.subr.bf16.mxu1 (!%p9533_p10), %v10893_v15  ;;  %v10907_v24 = vld [vmem:[%s15330_s1 + $0x1a0] ss:$52 sps:$4 sm:$0xff] (!%p9533_p10)   ;;  %v10913_v28 = vld [vmem:[%s15330_s1 + $0x208] ss:$52 sps:$4 sm:$0xff] (!%p9533_p10)   ;;  %v10914_v29 = vld [vmem:[%s15330_s1 + $0x210] ss:$52 sps:$4 sm:$0xff] (!%p9533_p10)  }
  0x71   : > { %v10909_v26 = vld [vmem:[%s15330_s1 + $0x20c] ss:$52 sps:$4 sm:$0xff]   ;;  %v10911_v27 = vld [vmem:[%s15330_s1 + $0x214] ss:$52 sps:$4 sm:$0xff]   ;;  %v10917_v31 = vld [vmem:[%s15330_s1 + $0x27c] ss:$52 sps:$4 sm:$0xff]  }
  0x72   : > { %v10915_v30 = vld [vmem:[%s15330_s1 + $0x274] ss:$52 sps:$4 sm:$0xff]   ;;  %v10919_v32 = vld [vmem:[%s15330_s1 + $0x270] ss:$52 sps:$4 sm:$0xff]   ;;  %v10920_v33 = vld [vmem:[%s15330_s1 + $0x278] ss:$52 sps:$4 sm:$0xff]  }
  0x73   : > { %3579 = vmatpush1.bf16.msra.mxu0 %v10895_v16  ;;  %3708 = vmatpush1.bf16.msra.mxu1 %v10896_v17  ;;  %v10921_v34 = vld [vmem:[%s15330_s1 + $0x2dc] ss:$52 sps:$4 sm:$0xff]   ;;  %v10923_v35 = vld [vmem:[%s15330_s1 + $0x2e4] ss:$52 sps:$4 sm:$0xff]   ;;  %v10926_v37 = vld [vmem:[%s15330_s1 + $0x2e0] ss:$52 sps:$4 sm:$0xff]  }
  0x74   : > { %3580 = vmatprep.subr.bf16.mxu0 %v10897_v18  ;;  %3709 = vmatprep.subr.bf16.mxu1 %v10899_v19  ;;  %v10925_v36 = vld [vmem:[%s15330_s1 + $0x2d8] ss:$52 sps:$4 sm:$0xff]   ;;  %v10931_v40 = vld [vmem:[%s15330_s1 + $0x340] ss:$52 sps:$4 sm:$0xff]   ;;  %v10932_v41 = vld [vmem:[%s15330_s1 + $0x348] ss:$52 sps:$4 sm:$0xff]  }
  0x75   : > { %v10927_v38 = vld [vmem:[%s15330_s1 + $0x344] ss:$52 sps:$4 sm:$0xff]   ;;  %v10929_v39 = vld [vmem:[%s15330_s1 + $0x34c] ss:$52 sps:$4 sm:$0xff]   ;;  %v10935_v43 = vld [vmem:[%s15330_s1 + $0x3b4] ss:$52 sps:$4 sm:$0xff]  }
  0x76   : > { %v10933_v42 = vld [vmem:[%s15330_s1 + $0x3ac] ss:$52 sps:$4 sm:$0xff]   ;;  %v10937_v44 = vld [vmem:[%s15330_s1 + $0x3a8] ss:$52 sps:$4 sm:$0xff]   ;;  %v10938_v45 = vld [vmem:[%s15330_s1 + $0x3b0] ss:$52 sps:$4 sm:$0xff]  }
  0x77   : > { %3581 = vmatpush1.bf16.msra.mxu0 %v10901_v20  ;;  %3710 = vmatpush1.bf16.msra.mxu1 %v10902_v21  ;;  %v10939_v46 = vld [vmem:[%s15330_s1 + $0x414] ss:$52 sps:$4 sm:$0xff]   ;;  %v10941_v47 = vld [vmem:[%s15330_s1 + $0x41c] ss:$52 sps:$4 sm:$0xff]   ;;  %v10944_v49 = vld [vmem:[%s15330_s1 + $0x418] ss:$52 sps:$4 sm:$0xff]  }
  0x78   : > { %3582 = vmatprep.subr.bf16.mxu0 %v10903_v22  ;;  %3711 = vmatprep.subr.bf16.mxu1 %v10905_v23  ;;  %v10943_v48 = vld [vmem:[%s15330_s1 + $0x410] ss:$52 sps:$4 sm:$0xff]   ;;  %v764_v52 = vld [vmem:[%s15329_s0 + $0x8] sm:$0xff]  ;;  %v10950_v55 = vld [vmem:[%s15330_s1 + $0x480] ss:$52 sps:$4 sm:$0xff]   ;;  %vm3532_vm1 = vcmask 1041408  }
  0x79   : > { %v10945_v50 = vld [vmem:[%s15330_s1 + $0x47c] ss:$52 sps:$4 sm:$0xff]   ;;  %v10947_v51 = vld [vmem:[%s15330_s1 + $0x484] ss:$52 sps:$4 sm:$0xff]   ;;  %v12844_v56 = vpack.c.bf16 %v769_v53, %v764_v52  ;;  %v10953_v58 = vld [vmem:[%s15330_s1 + $0x4ec] ss:$52 sps:$4 sm:$0xff]  }
  0x7a   : > { %v10949_v54 = vld [vmem:[%s15330_s1 + $0x478] ss:$52 sps:$4 sm:$0xff]   ;;  %v10955_v59 = vld [vmem:[%s15330_s1 + $0x4e0] ss:$52 sps:$4 sm:$0xff]   ;;  %v10956_v60 = vld [vmem:[%s15330_s1 + $0x4e8] ss:$52 sps:$4 sm:$0xff]  }
  0x7b   : > { %3583 = vmatpush1.bf16.msra.mxu0 %v10907_v24  ;;  %3712 = vmatpush1.bf16.msra.mxu1 %v10908_v25  ;;  %v10951_v57 = vld [vmem:[%s15330_s1 + $0x4e4] ss:$52 sps:$4 sm:$0xff]   ;;  %v10957_v61 = vld [vmem:[%s15330_s1 + $0x54c] ss:$52 sps:$4 sm:$0xff]   ;;  %v10959_v62 = vld [vmem:[%s15330_s1 + $0x554] ss:$52 sps:$4 sm:$0xff]  }
  0x7c   : > { %3584 = vmatprep.subr.bf16.mxu0 %v10909_v26  ;;  %3713 = vmatprep.subr.bf16.mxu1 %v10911_v27  ;;  %v10961_v63 = vld [vmem:[%s15330_s1 + $0x548] ss:$52 sps:$4 sm:$0xff]   ;;  %v10962_v0 = vld [vmem:[%s15330_s1 + $0x550] ss:$52 sps:$4 sm:$0xff]   ;;  %v10968_v4 = vld [vmem:[%s15330_s1 + $0x5b8] ss:$52 sps:$4 sm:$0xff]  }
  0x7d   : > { %3606 = vmatprep.mubr.bf16.mxu0 %v12844_v56  ;;  %3735 = vmatprep.mubr.bf16.mxu1 %v12844_v56  ;;  %v10963_v1 = vld [vmem:[%s15330_s1 + $0x5b4] ss:$52 sps:$4 sm:$0xff]   ;;  %v10965_v2 = vld [vmem:[%s15330_s1 + $0x5bc] ss:$52 sps:$4 sm:$0xff]   ;;  %v10971_v6 = vld [vmem:[%s15330_s1 + $0x624] ss:$52 sps:$4 sm:$0xff]  }
  0x7e   : > { %v10967_v3 = vld [vmem:[%s15330_s1 + $0x5b0] ss:$52 sps:$4 sm:$0xff]   ;;  %v10973_v7 = vld [vmem:[%s15330_s1 + $0x618] ss:$52 sps:$4 sm:$0xff]   ;;  %v10974_v8 = vld [vmem:[%s15330_s1 + $0x620] ss:$52 sps:$4 sm:$0xff]  }
  0x7f   : > { %3585 = vmatpush1.bf16.msra.mxu0 %v10913_v28  ;;  %3714 = vmatpush1.bf16.msra.mxu1 %v10914_v29  ;;  %v10969_v5 = vld [vmem:[%s15330_s1 + $0x61c] ss:$52 sps:$4 sm:$0xff]   ;;  %v10977_v9 = vld [vmem:[%s15330_s1 + $0x684] ss:$52 sps:$4 sm:$0xff]   ;;  %v768_v11 = vld [vmem:[%s15329_s0 + $0x28] sm:$0xff]  ;;  %vm3527_vm2 = vcmask 154624  }
  0x80   : > { %3586 = vmatprep.subr.bf16.mxu0 %v10915_v30  ;;  %3715 = vmatprep.subr.bf16.mxu1 %v10917_v31  ;;  %v763_v10 = vld [vmem:[%s15329_s0] sm:$0xff]  ;;  %v10978_v14 = vld [vmem:[%s15330_s1 + $0x688] ss:$52 sps:$4 sm:$0xff]   ;;  %v10990_v23 = vld [vmem:[%s15330_s1 + $0x758] ss:$52 sps:$4 sm:$0xff]   ;;  %vm4492_vm3 = vcmask 400384  }
  0x81   : > { %v10980_v12 = vld [vmem:[%s15330_s1 + $0x68c] ss:$52 sps:$4 sm:$0xff]   ;;  %v12914_v15 = vpack.c.bf16 %v768_v11, %v763_v10  ;;  %v10986_v17 = vld [vmem:[%s15330_s1 + $0x6f4] ss:$52 sps:$4 sm:$0xff]   ;;  %v10984_v19 = vld [vmem:[%s15330_s1 + $0x6f0] ss:$52 sps:$4 sm:$0xff]  }
  0x82   : > { %v10975_v13 = vld [vmem:[%s15330_s1 + $0x680] ss:$52 sps:$4 sm:$0xff]   ;;  %v10981_v18 = vld [vmem:[%s15330_s1 + $0x6e8] ss:$52 sps:$4 sm:$0xff]   ;;  %v10987_v22 = vld [vmem:[%s15330_s1 + $0x750] ss:$52 sps:$4 sm:$0xff]  }
  0x83   : > { %3587 = vmatpush1.bf16.msra.mxu0 %v10919_v32  ;;  %3716 = vmatpush1.bf16.msra.mxu1 %v10920_v33  ;;  %v10983_v16 = vld [vmem:[%s15330_s1 + $0x6ec] ss:$52 sps:$4 sm:$0xff]   ;;  %v10989_v20 = vld [vmem:[%s15330_s1 + $0x754] ss:$52 sps:$4 sm:$0xff]   ;;  %v10992_v21 = vld [vmem:[%s15330_s1 + $0x75c] ss:$52 sps:$4 sm:$0xff]  }
  0x84   : > { %3588 = vmatprep.subr.bf16.mxu0 %v10921_v34  ;;  %3717 = vmatprep.subr.bf16.mxu1 %v10923_v35  ;;  %v10995_v24 = vld [vmem:[%s15330_s1 + $0x7bc] ss:$52 sps:$4 sm:$0xff]   ;;  %v10998_v25 = vld [vmem:[%s15330_s1 + $0x7c4] ss:$52 sps:$4 sm:$0xff]   ;;  %v10996_v27 = vld [vmem:[%s15330_s1 + $0x7c0] ss:$52 sps:$4 sm:$0xff]  }
  0x85   : > { %v10993_v26 = vld [vmem:[%s15330_s1 + $0x7b8] ss:$52 sps:$4 sm:$0xff]   ;;  %v10999_v30 = vld [vmem:[%s15330_s1 + $0x820] ss:$52 sps:$4 sm:$0xff]   ;;  %v11002_v31 = vld [vmem:[%s15330_s1 + $0x828] ss:$52 sps:$4 sm:$0xff]  }
  0x86   : > { %v11001_v28 = vld [vmem:[%s15330_s1 + $0x824] ss:$52 sps:$4 sm:$0xff]   ;;  %v11004_v29 = vld [vmem:[%s15330_s1 + $0x82c] ss:$52 sps:$4 sm:$0xff]   ;;  %v11010_v33 = vld [vmem:[%s15330_s1 + $0x894] ss:$52 sps:$4 sm:$0xff]  }
  0x87   : > { %3589 = vmatpush1.bf16.msra.mxu0 %v10925_v36  ;;  %3718 = vmatpush1.bf16.msra.mxu1 %v10926_v37  ;;  %v11007_v32 = vld [vmem:[%s15330_s1 + $0x88c] ss:$52 sps:$4 sm:$0xff]   ;;  %v11005_v34 = vld [vmem:[%s15330_s1 + $0x888] ss:$52 sps:$4 sm:$0xff]   ;;  %v11008_v35 = vld [vmem:[%s15330_s1 + $0x890] ss:$52 sps:$4 sm:$0xff]  }
  0x88   : > { %3590 = vmatprep.subr.bf16.mxu0 %v10927_v38  ;;  %3719 = vmatprep.subr.bf16.mxu1 %v10929_v39  ;;  %v11013_v36 = vld [vmem:[%s15330_s1 + $0x8f4] ss:$52 sps:$4 sm:$0xff]   ;;  %v11016_v37 = vld [vmem:[%s15330_s1 + $0x8fc] ss:$52 sps:$4 sm:$0xff]   ;;  %v11062_v11 = vld [vmem:[%s15330_s1 + $0xc38] ss:$52 sps:$4 sm:$0xff]  }
  0x89   : > { %v766_v38 = vld [vmem:[%s15329_s0 + $0x18] sm:$0xff]  ;;  %v11011_v39 = vld [vmem:[%s15330_s1 + $0x8f0] ss:$52 sps:$4 sm:$0xff]   ;;  %v11034_v52 = vld [vmem:[%s15330_s1 + $0xa34] ss:$52 sps:$4 sm:$0xff]   ;;  %s12280_s16 = smov 60  }
  0x8a   : > { %v11029_v53 = vld [vmem:[%s15330_s1 + $0xa28] ss:$52 sps:$4 sm:$0xff]   ;;  %v11059_v10 = vld [vmem:[%s15330_s1 + $0xc30] ss:$52 sps:$4 sm:$0xff]   ;;  %s12281_s17 = smov 109   ;;  %s12282_s27 = smov 79   ;;  %vm14190_vm6 = vmpackc.low %vm4492_vm3, %vm4492_vm3 }
  0x8b   : > { %3591 = vmatpush1.bf16.msra.mxu0 %v10931_v40  ;;  %3720 = vmatpush1.bf16.msra.mxu1 %v10932_v41  ;;  %v11014_v40 = vld [vmem:[%s15330_s1 + $0x8f8] ss:$52 sps:$4 sm:$0xff]   ;;  %v771_v41 = vld [vmem:[%s15329_s0 + $0x40] sm:$0xff]  ;;  %vm12284_vm4 = vmmov 0   ;;  %vm4487_vm5 = vcmask 891904   ;;  %vm4687_vm7 = vcmask 490496  }
  0x8c   : > { %3592 = vmatprep.subr.bf16.mxu0 %v10933_v42  ;;  %3721 = vmatprep.subr.bf16.mxu1 %v10935_v43  ;;  %v11019_v42 = vld [vmem:[%s15330_s1 + $0x95c] ss:$52 sps:$4 sm:$0xff]   ;;  %v12999_v43 = vpack.c.bf16 %v771_v41, %v766_v38  ;;  %v772_v41 = vld [vmem:[%s15329_s0 + $0x48] sm:$0xff]  ;;  %vm4672_vm8 = vcmask 646144   ;;  %s12285_s20 = smov 11   ;;  %s12286_s22 = smov 30  }
  0x8d   : > { %v11086_v38 = vld [vmem:[%s15330_s1 + $0x1c] ss:$52 sps:$4 sm:$0xff]   ;;  %vm4902_vm9 = vcmask 89088   ;;  %vm4879_vm10 = vcmask 244736   ;;  %vm4578_vm11 = vcmask 130048   ;;  %s12287_s7 = smov 90  }
  0x8e   : > { %s12288_s15 = smov 41   ;;  %vm4610_vm12 = vcmask 736256   ;;  %s12289_s23 = smov 120   ;;  %vm4808_vm13 = vcmask 334848   ;;  %vm5021_vm14 = vcmask 982016   ;;  %vm5101_vm15 = vcmask 801792  }
  0x8f   : > { %3593 = vmatpush1.bf16.msra.mxu0 %v10937_v44  ;;  %3722 = vmatpush1.bf16.msra.mxu1 %v10938_v45  ;;  %v11022_v44 = vld [vmem:[%s15330_s1 + $0x964] ss:$52 sps:$4 sm:$0xff]   ;;  %s12290_s18 = smov 49   ;;  %s12291_s14 = smov 98  }
  0x90   : > { %3594 = vmatprep.subr.bf16.mxu0 %v10939_v46  ;;  %3723 = vmatprep.subr.bf16.mxu1 %v10941_v47  ;;  %v11017_v45 = vld [vmem:[%s15330_s1 + $0x958] ss:$52 sps:$4 sm:$0xff]   ;;  %v11020_v46 = vld [vmem:[%s15330_s1 + $0x960] ss:$52 sps:$4 sm:$0xff]  }
  0x91   : > { %v11025_v47 = vld [vmem:[%s15330_s1 + $0x9c4] ss:$52 sps:$4 sm:$0xff]  }
  0x93   : > { %3595 = vmatpush1.bf16.msra.mxu0 %v10943_v48  ;;  %3724 = vmatpush1.bf16.msra.mxu1 %v10944_v49  ;;  %v11028_v48 = vld [vmem:[%s15330_s1 + $0x9cc] ss:$52 sps:$4 sm:$0xff]  }
  0x94   : > { %3596 = vmatprep.subr.bf16.mxu0 %v10945_v50  ;;  %3725 = vmatprep.subr.bf16.mxu1 %v10947_v51  ;;  %v11023_v49 = vld [vmem:[%s15330_s1 + $0x9c0] ss:$52 sps:$4 sm:$0xff]   ;;  %v11026_v50 = vld [vmem:[%s15330_s1 + $0x9c8] ss:$52 sps:$4 sm:$0xff]  }
  0x95   : > { %v11031_v51 = vld [vmem:[%s15330_s1 + $0xa2c] ss:$52 sps:$4 sm:$0xff]  }
  0x97   : > { %3597 = vmatpush1.bf16.msra.mxu0 %v10949_v54  ;;  %3726 = vmatpush1.bf16.msra.mxu1 %v10950_v55  ;;  %v11032_v54 = vld [vmem:[%s15330_s1 + $0xa30] ss:$52 sps:$4 sm:$0xff]   ;;  %v11037_v55 = vld [vmem:[%s15330_s1 + $0xa94] ss:$52 sps:$4 sm:$0xff]  }
  0x98   : > { %3598 = vmatprep.subr.bf16.mxu0 %v10951_v57  ;;  %3727 = vmatprep.subr.bf16.mxu1 %v10953_v58  ;;  %v11040_v57 = vld [vmem:[%s15330_s1 + $0xa9c] ss:$52 sps:$4 sm:$0xff]  }
  0x99   : > { %v11035_v58 = vld [vmem:[%s15330_s1 + $0xa90] ss:$52 sps:$4 sm:$0xff]  }
  0x9b   : > { %3599 = vmatpush1.bf16.msra.mxu0 %v10955_v59  ;;  %3728 = vmatpush1.bf16.msra.mxu1 %v10956_v60  ;;  %v11038_v59 = vld [vmem:[%s15330_s1 + $0xa98] ss:$52 sps:$4 sm:$0xff]   ;;  %v11043_v60 = vld [vmem:[%s15330_s1 + $0xafc] ss:$52 sps:$4 sm:$0xff]  }
  0x9c   : > { %3600 = vmatprep.subr.bf16.mxu0 %v10957_v61  ;;  %3729 = vmatprep.subr.bf16.mxu1 %v10959_v62  ;;  %v11046_v61 = vld [vmem:[%s15330_s1 + $0xb04] ss:$52 sps:$4 sm:$0xff]  }
  0x9d   : > { %v11041_v62 = vld [vmem:[%s15330_s1 + $0xaf8] ss:$52 sps:$4 sm:$0xff]  }
  0x9f   : > { %3601 = vmatpush1.bf16.msra.mxu0 %v10961_v63  ;;  %3730 = vmatpush1.bf16.msra.mxu1 %v10962_v0  ;;  %v11044_v63 = vld [vmem:[%s15330_s1 + $0xb00] ss:$52 sps:$4 sm:$0xff]   ;;  %v11049_v0 = vld [vmem:[%s15330_s1 + $0xb64] ss:$52 sps:$4 sm:$0xff]  }
  0xa0   : > { %3602 = vmatprep.subr.bf16.mxu0 %v10963_v1  ;;  %3731 = vmatprep.subr.bf16.mxu1 %v10965_v2  ;;  %v11052_v1 = vld [vmem:[%s15330_s1 + $0xb6c] ss:$52 sps:$4 sm:$0xff]  }
  0xa1   : > { %v11047_v2 = vld [vmem:[%s15330_s1 + $0xb60] ss:$52 sps:$4 sm:$0xff]  }
  0xa3   : > { %3603 = vmatpush1.bf16.msra.mxu0 %v10967_v3  ;;  %3732 = vmatpush1.bf16.msra.mxu1 %v10968_v4  ;;  %v11050_v3 = vld [vmem:[%s15330_s1 + $0xb68] ss:$52 sps:$4 sm:$0xff]   ;;  %v11055_v4 = vld [vmem:[%s15330_s1 + $0xbcc] ss:$52 sps:$4 sm:$0xff]  }
  0xa4   : > { %3604 = vmatprep.subr.bf16.mxu0 %v10969_v5  ;;  %3733 = vmatprep.subr.bf16.mxu1 %v10971_v6  ;;  %v11058_v5 = vld [vmem:[%s15330_s1 + $0xbd4] ss:$52 sps:$4 sm:$0xff]  }
  0xa5   : > { %v11053_v6 = vld [vmem:[%s15330_s1 + $0xbc8] ss:$52 sps:$4 sm:$0xff]  }
  0xa7   : > { %3605 = vmatpush1.bf16.msra.mxu0 %v10973_v7  ;;  %3734 = vmatpush1.bf16.msra.mxu1 %v10974_v8  ;;  %v11056_v7 = vld [vmem:[%s15330_s1 + $0xbd0] ss:$52 sps:$4 sm:$0xff]   ;;  %v11061_v8 = vld [vmem:[%s15330_s1 + $0xc34] ss:$52 sps:$4 sm:$0xff]  }
  0xa8   : > { %3617 = vmatprep.subr.bf16.mxu0 %v10977_v9  ;;  %3746 = vmatprep.subr.bf16.mxu1 %v10980_v12  ;;  %v11064_v9 = vld [vmem:[%s15330_s1 + $0xc3c] ss:$52 sps:$4 sm:$0xff]  }
  0xa9   : > { %v11067_v12 = vld [vmem:[%s15330_s1 + $0xc9c] ss:$52 sps:$4 sm:$0xff]  }
  0xaa   : > { %3607 = vmatmul.mubr.bf16.vlgmr.msra.gmra.mrb[0].mxu0 %v12914_v15  ;;  %3736 = vmatmul.mubr.bf16.vlgmr.msra.gmra.mrb[0].mxu1 %v12914_v15 }
  0xab   : > { %3618 = vmatpush1.bf16.msra.mxu0 %v10975_v13  ;;  %3747 = vmatpush1.bf16.msra.mxu1 %v10978_v14  ;;  %v11070_v13 = vld [vmem:[%s15330_s1 + $0xca4] ss:$52 sps:$4 sm:$0xff]  }
  0xac   : > { %3619 = vmatprep.subr.bf16.mxu0 %v10983_v16  ;;  %3748 = vmatprep.subr.bf16.mxu1 %v10986_v17  ;;  %v11065_v14 = vld [vmem:[%s15330_s1 + $0xc98] ss:$52 sps:$4 sm:$0xff]   ;;  %v11068_v16 = vld [vmem:[%s15330_s1 + $0xca0] ss:$52 sps:$4 sm:$0xff]  }
  0xad   : > { %3649 = vmatprep.mubr.bf16.mxu0 %v12999_v43  ;;  %3778 = vmatprep.mubr.bf16.mxu1 %v12999_v43  ;;  %v1235_v17 = vld [vmem:[%s15330_s1 + $0xd68] sm:$0x33] }
  0xaf   : > { %3620 = vmatpush1.bf16.msra.mxu0 %v10981_v18  ;;  %3749 = vmatpush1.bf16.msra.mxu1 %v10984_v19  ;;  %v1236_v18 = vld [vmem:[%s15330_s1 + $0xd70] sm:$0x33] }
  0xb0   : > { %3621 = vmatprep.subr.bf16.mxu0 %v10989_v20  ;;  %3750 = vmatprep.subr.bf16.mxu1 %v10992_v21  ;;  %v765_v19 = vld [vmem:[%s15329_s0 + $0x10] sm:$0xff]  ;;  %v770_v20 = vld [vmem:[%s15329_s0 + $0x38] sm:$0xff]  ;;  %v12278_v21 = vmov 65535  }
  0xb3   : > { %3622 = vmatpush1.bf16.msra.mxu0 %v10987_v22  ;;  %3751 = vmatpush1.bf16.msra.mxu1 %v10990_v23  ;;  %v3533_v22 = vsel %vm3531_vm0, 4294967295, %v12278_v21  ;;  %v11073_v23 = vld [vmem:[%s15330_s1 + $0xd04] ss:$52 sps:$4 sm:$0xff]   ;;  %v11146_v21 = vld [vmem:[%s15330_s1 + $0x42c] ss:$52 sps:$4 sm:$0xff]  }
  0xb4   : > { %3623 = vmatprep.subr.bf16.mxu0 %v10995_v24  ;;  %3752 = vmatprep.subr.bf16.mxu1 %v10998_v25  ;;  %v11076_v24 = vld [vmem:[%s15330_s1 + $0xd0c] ss:$52 sps:$4 sm:$0xff]   ;;  %v9964_v25 = vcombine.high %v1235_v17, %v1235_v17 }
  0xb7   : > { %3624 = vmatpush1.bf16.msra.mxu0 %v10993_v26  ;;  %3753 = vmatpush1.bf16.msra.mxu1 %v10996_v27  ;;  %v9966_v26 = vcombine.high %v1236_v18, %v1236_v18  ;;  %v13126_v27 = vsel %vm3532_vm1, %v3533_v22, 0  ;;  %v11141_v22 = vld [vmem:[%s15330_s1 + $0x420] ss:$52 sps:$4 sm:$0xff]  }
  0xb8   : > { %3625 = vmatprep.subr.bf16.mxu0 %v11001_v28  ;;  %3754 = vmatprep.subr.bf16.mxu1 %v11004_v29  ;;  %v13128_v28 = vpack.c.bf16 %v770_v20, %v765_v19  ;;  %v11071_v29 = vld [vmem:[%s15330_s1 + $0xd00] ss:$52 sps:$4 sm:$0xff]   ;;  %v11143_v20 = vld [vmem:[%s15330_s1 + $0x424] ss:$52 sps:$4 sm:$0xff]  }
  0xb9   : > { %v11138_v19 = vld [vmem:[%s15330_s1 + $0x3c0] ss:$52 sps:$4 sm:$0xff]  }
  0xbb   : > { %3626 = vmatpush1.bf16.msra.mxu0 %v10999_v30  ;;  %3755 = vmatpush1.bf16.msra.mxu1 %v11002_v31  ;;  %v11074_v30 = vld [vmem:[%s15330_s1 + $0xd08] ss:$52 sps:$4 sm:$0xff]   ;;  %v9963_v31 = vcombine.low %v1235_v17, %v1235_v17  ;;  %v11140_v17 = vld [vmem:[%s15330_s1 + $0x3c4] ss:$52 sps:$4 sm:$0xff]  }
  0xbc   : > { %3627 = vmatprep.subr.bf16.mxu0 %v11007_v32  ;;  %3756 = vmatprep.subr.bf16.mxu1 %v11010_v33  ;;  %v9965_v32 = vcombine.low %v1236_v18, %v1236_v18  ;;  %v3539_v33 = vand.u32 %v9964_v25, %v13126_v27  ;;  %v11135_v18 = vld [vmem:[%s15330_s1 + $0x3b8] ss:$52 sps:$4 sm:$0xff]   ;;  %v11152_v25 = vld [vmem:[%s15330_s1 + $0x494] ss:$52 sps:$4 sm:$0xff]  }
  0xbf   : > { %3628 = vmatpush1.bf16.msra.mxu0 %v11005_v34  ;;  %3757 = vmatpush1.bf16.msra.mxu1 %v11008_v35  ;;  %v3545_v34 = vand.u32 %v9966_v26, %v13126_v27  ;;  %v3536_v35 = vand.u32 %v9963_v31, %v13126_v27  ;;  %v11147_v26 = vld [vmem:[%s15330_s1 + $0x488] ss:$52 sps:$4 sm:$0xff]  }
  0xc0   : > { %3629 = vmatprep.subr.bf16.mxu0 %v11013_v36  ;;  %3758 = vmatprep.subr.bf16.mxu1 %v11016_v37  ;;  %v3542_v36 = vand.u32 %v9965_v32, %v13126_v27  ;;  %v11083_v37 = vld [vmem:[%s15330_s1 + $0x14] ss:$52 sps:$4 sm:$0xff]   ;;  %v11158_v31 = vld [vmem:[%s15330_s1 + $0x4fc] ss:$52 sps:$4 sm:$0xff]  }
  0xc1   : > { %v11153_v32 = vld [vmem:[%s15330_s1 + $0x4f0] ss:$52 sps:$4 sm:$0xff]  }
  0xc3   : > { %3630 = vmatpush1.bf16.msra.mxu0 %v11011_v39  ;;  %3759 = vmatpush1.bf16.msra.mxu1 %v11014_v40  ;;  %v12279_v39 = vmov 0   ;;  %v767_v40 = vld [vmem:[%s15329_s0 + $0x20] sm:$0xff] }
  0xc4   : > { %3631 = vmatprep.subr.bf16.mxu0 %v11019_v42  ;;  %3760 = vmatprep.subr.bf16.mxu1 %v11022_v44  ;;  %v11081_v42 = vld [vmem:[%s15330_s1 + $0x10] ss:$52 sps:$4 sm:$0xff]   ;;  %v11084_v44 = vld [vmem:[%s15330_s1 + $0x18] ss:$52 sps:$4 sm:$0xff]  }
  0xc7   : > { %3632 = vmatpush1.bf16.msra.mxu0 %v11017_v45  ;;  %3761 = vmatpush1.bf16.msra.mxu1 %v11020_v46  ;;  %v13162_v45 = vpack.c.bf16 %v772_v41, %v767_v40  ;;  %v11089_v46 = vld [vmem:[%s15330_s1 + $0x7c] ss:$52 sps:$4 sm:$0xff]   ;;  %v11170_v40 = vld [vmem:[%s15330_s1 + $0x5cc] ss:$52 sps:$4 sm:$0xff]  }
  0xc8   : > { %3633 = vmatprep.subr.bf16.mxu0 %v11025_v47  ;;  %3762 = vmatprep.subr.bf16.mxu1 %v11028_v48  ;;  %v11092_v47 = vld [vmem:[%s15330_s1 + $0x84] ss:$52 sps:$4 sm:$0xff]   ;;  %v11165_v41 = vld [vmem:[%s15330_s1 + $0x5c0] ss:$52 sps:$4 sm:$0xff]  }
  0xc9   : > { %v11087_v48 = vld [vmem:[%s15330_s1 + $0x78] ss:$52 sps:$4 sm:$0xff]  }
  0xcb   : > { %3634 = vmatpush1.bf16.msra.mxu0 %v11023_v49  ;;  %3763 = vmatpush1.bf16.msra.mxu1 %v11026_v50  ;;  %v11090_v49 = vld [vmem:[%s15330_s1 + $0x80] ss:$52 sps:$4 sm:$0xff]   ;;  %v11095_v50 = vld [vmem:[%s15330_s1 + $0xe4] ss:$52 sps:$4 sm:$0xff]  }
  0xcc   : > { %3635 = vmatprep.subr.bf16.mxu0 %v11031_v51  ;;  %3764 = vmatprep.subr.bf16.mxu1 %v11034_v52  ;;  %v11098_v51 = vld [vmem:[%s15330_s1 + $0xec] ss:$52 sps:$4 sm:$0xff]  }
  0xcd   : > { %v11093_v52 = vld [vmem:[%s15330_s1 + $0xe0] ss:$52 sps:$4 sm:$0xff]  }
  0xcf   : > { %3636 = vmatpush1.bf16.msra.mxu0 %v11029_v53  ;;  %3765 = vmatpush1.bf16.msra.mxu1 %v11032_v54  ;;  %v11096_v53 = vld [vmem:[%s15330_s1 + $0xe8] ss:$52 sps:$4 sm:$0xff]   ;;  %v11101_v54 = vld [vmem:[%s15330_s1 + $0x14c] ss:$52 sps:$4 sm:$0xff]  }
  0xd0   : > { %3637 = vmatprep.subr.bf16.mxu0 %v11037_v55  ;;  %3766 = vmatprep.subr.bf16.mxu1 %v11040_v57  ;;  %v11104_v55 = vld [vmem:[%s15330_s1 + $0x154] ss:$52 sps:$4 sm:$0xff]  }
  0xd1   : > { %v11099_v57 = vld [vmem:[%s15330_s1 + $0x148] ss:$52 sps:$4 sm:$0xff]  }
  0xd3   : > { %3638 = vmatpush1.bf16.msra.mxu0 %v11035_v58  ;;  %3767 = vmatpush1.bf16.msra.mxu1 %v11038_v59  ;;  %v11102_v58 = vld [vmem:[%s15330_s1 + $0x150] ss:$52 sps:$4 sm:$0xff]   ;;  %v11107_v59 = vld [vmem:[%s15330_s1 + $0x1b4] ss:$52 sps:$4 sm:$0xff]  }
  0xd4   : > { %3639 = vmatprep.subr.bf16.mxu0 %v11043_v60  ;;  %3768 = vmatprep.subr.bf16.mxu1 %v11046_v61  ;;  %v11110_v60 = vld [vmem:[%s15330_s1 + $0x1bc] ss:$52 sps:$4 sm:$0xff]  }
  0xd5   : > { %v11105_v61 = vld [vmem:[%s15330_s1 + $0x1b0] ss:$52 sps:$4 sm:$0xff]  }
  0xd7   : > { %3640 = vmatpush1.bf16.msra.mxu0 %v11041_v62  ;;  %3769 = vmatpush1.bf16.msra.mxu1 %v11044_v63  ;;  %v11108_v62 = vld [vmem:[%s15330_s1 + $0x1b8] ss:$52 sps:$4 sm:$0xff]   ;;  %v11113_v63 = vld [vmem:[%s15330_s1 + $0x21c] ss:$52 sps:$4 sm:$0xff]  }
  0xd8   : > { %3641 = vmatprep.subr.bf16.mxu0 %v11049_v0  ;;  %3770 = vmatprep.subr.bf16.mxu1 %v11052_v1  ;;  %v11116_v0 = vld [vmem:[%s15330_s1 + $0x224] ss:$52 sps:$4 sm:$0xff]  }
  0xd9   : > { %v11111_v1 = vld [vmem:[%s15330_s1 + $0x218] ss:$52 sps:$4 sm:$0xff]  }
  0xdb   : > { %3642 = vmatpush1.bf16.msra.mxu0 %v11047_v2  ;;  %3771 = vmatpush1.bf16.msra.mxu1 %v11050_v3  ;;  %v11114_v2 = vld [vmem:[%s15330_s1 + $0x220] ss:$52 sps:$4 sm:$0xff]   ;;  %v11119_v3 = vld [vmem:[%s15330_s1 + $0x284] ss:$52 sps:$4 sm:$0xff]  }
  0xdc   : > { %3643 = vmatprep.subr.bf16.mxu0 %v11055_v4  ;;  %3772 = vmatprep.subr.bf16.mxu1 %v11058_v5  ;;  %v11122_v4 = vld [vmem:[%s15330_s1 + $0x28c] ss:$52 sps:$4 sm:$0xff]  }
  0xdd   : > { %v11117_v5 = vld [vmem:[%s15330_s1 + $0x280] ss:$52 sps:$4 sm:$0xff]  }
  0xdf   : > { %3644 = vmatpush1.bf16.msra.mxu0 %v11053_v6  ;;  %3773 = vmatpush1.bf16.msra.mxu1 %v11056_v7  ;;  %v11120_v6 = vld [vmem:[%s15330_s1 + $0x288] ss:$52 sps:$4 sm:$0xff]   ;;  %v11125_v7 = vld [vmem:[%s15330_s1 + $0x2ec] ss:$52 sps:$4 sm:$0xff]  }
  0xe0   : > { %3645 = vmatprep.subr.bf16.mxu0 %v11061_v8  ;;  %3774 = vmatprep.subr.bf16.mxu1 %v11064_v9  ;;  %v11128_v8 = vld [vmem:[%s15330_s1 + $0x2f4] ss:$52 sps:$4 sm:$0xff]  }
  0xe1   : > { %v11123_v9 = vld [vmem:[%s15330_s1 + $0x2e8] ss:$52 sps:$4 sm:$0xff]  }
  0xe3   : > { %3646 = vmatpush1.bf16.msra.mxu0 %v11059_v10  ;;  %3775 = vmatpush1.bf16.msra.mxu1 %v11062_v11  ;;  %v11126_v10 = vld [vmem:[%s15330_s1 + $0x2f0] ss:$52 sps:$4 sm:$0xff]   ;;  %v11131_v11 = vld [vmem:[%s15330_s1 + $0x354] ss:$52 sps:$4 sm:$0xff]  }
  0xe4   : > { %3647 = vmatprep.subr.bf16.mxu0 %v11067_v12  ;;  %3776 = vmatprep.subr.bf16.mxu1 %v11070_v13  ;;  %v11134_v12 = vld [vmem:[%s15330_s1 + $0x35c] ss:$52 sps:$4 sm:$0xff]  }
  0xe5   : > { %v11129_v13 = vld [vmem:[%s15330_s1 + $0x350] ss:$52 sps:$4 sm:$0xff]  }
  0xe7   : > { %3648 = vmatpush1.bf16.msra.mxu0 %v11065_v14  ;;  %3777 = vmatpush1.bf16.msra.mxu1 %v11068_v16  ;;  %v11132_v14 = vld [vmem:[%s15330_s1 + $0x358] ss:$52 sps:$4 sm:$0xff]   ;;  %v11137_v16 = vld [vmem:[%s15330_s1 + $0x3bc] ss:$52 sps:$4 sm:$0xff]  }
  0xe8   : > { %3660 = vmatprep.subr.bf16.mxu0 %v11073_v23  ;;  %3789 = vmatprep.subr.bf16.mxu1 %v11076_v24  ;;  %v11144_v23 = vld [vmem:[%s15330_s1 + $0x428] ss:$52 sps:$4 sm:$0xff]   ;;  %v11149_v24 = vld [vmem:[%s15330_s1 + $0x48c] ss:$52 sps:$4 sm:$0xff]  }
  0xea   : > { %3650 = vmatmul.mubr.bf16.vlgmr.msra.gmra.mrb[0].mxu0 %v13128_v28  ;;  %3779 = vmatmul.mubr.bf16.vlgmr.msra.gmra.mrb[0].mxu1 %v13128_v28 }
  0xeb   : > { %3661 = vmatpush1.bf16.msra.mxu0 %v11071_v29  ;;  %3790 = vmatpush1.bf16.msra.mxu1 %v11074_v30  ;;  %v11150_v29 = vld [vmem:[%s15330_s1 + $0x490] ss:$52 sps:$4 sm:$0xff]   ;;  %v11155_v30 = vld [vmem:[%s15330_s1 + $0x4f4] ss:$52 sps:$4 sm:$0xff]  }
  0xec   : > { %3662 = vmatprep.subr.bf16.mxu0 %v3539_v33  ;;  %3791 = vmatprep.subr.bf16.mxu1 %v3545_v34  ;;  %v11156_v33 = vld [vmem:[%s15330_s1 + $0x4f8] ss:$52 sps:$4 sm:$0xff]   ;;  %v11161_v34 = vld [vmem:[%s15330_s1 + $0x55c] ss:$52 sps:$4 sm:$0xff]  }
  0xed   : > { %3692 = vmatprep.mubr.bf16.mxu0 %v12279_v39  ;;  %3821 = vmatprep.mubr.bf16.mxu1 %v12279_v39 }
  0xef   : > { %3663 = vmatpush1.bf16.msra.mxu0 %v3536_v35  ;;  %3792 = vmatpush1.bf16.msra.mxu1 %v3542_v36  ;;  %v11164_v35 = vld [vmem:[%s15330_s1 + $0x564] ss:$52 sps:$4 sm:$0xff]  }
  0xf0   : > { %3832 = vmatprep.subr.bf16.mxu0 %v11083_v37  ;;  %3961 = vmatprep.subr.bf16.mxu1 %v11086_v38  ;;  %v11159_v36 = vld [vmem:[%s15330_s1 + $0x558] ss:$52 sps:$4 sm:$0xff]   ;;  %v11162_v37 = vld [vmem:[%s15330_s1 + $0x560] ss:$52 sps:$4 sm:$0xff]  }
  0xf1   : > { %v11167_v38 = vld [vmem:[%s15330_s1 + $0x5c4] ss:$52 sps:$4 sm:$0xff]  }
  0xf6   : > { %9976 = vmatmul.mubr.msk.bf16.vlgmr.msra.gmra.mrb[0].mxu0 %vm3527_vm2, %v13162_v45  ;;  %9977 = vmatmul.mubr.msk.bf16.vlgmr.msra.gmra.mrb[0].mxu1 %vm3527_vm2, %v13162_v45 }
  0xf7   : > { %3833 = vmatpush1.bf16.msra.mxu0 %v11081_v42  ;;  %3962 = vmatpush1.bf16.msra.mxu1 %v11084_v44  ;;  %v11168_v42 = vld [vmem:[%s15330_s1 + $0x5c8] ss:$52 sps:$4 sm:$0xff]   ;;  %v11173_v44 = vld [vmem:[%s15330_s1 + $0x62c] ss:$52 sps:$4 sm:$0xff]  }
  0xf8   : > { %3834 = vmatprep.subr.bf16.mxu0 %v11089_v46  ;;  %3963 = vmatprep.subr.bf16.mxu1 %v11092_v47  ;;  %v11176_v46 = vld [vmem:[%s15330_s1 + $0x634] ss:$52 sps:$4 sm:$0xff]  }
  0xf9   : > { %3864 = vmatprep.mubr.bf16.mxu0 %v12844_v56  ;;  %3993 = vmatprep.mubr.bf16.mxu1 %v12844_v56  ;;  %v11171_v47 = vld [vmem:[%s15330_s1 + $0x628] ss:$52 sps:$4 sm:$0xff]  }
  0xfb   : > { %3835 = vmatpush1.bf16.msra.mxu0 %v11087_v48  ;;  %3964 = vmatpush1.bf16.msra.mxu1 %v11090_v49  ;;  %v11174_v48 = vld [vmem:[%s15330_s1 + $0x630] ss:$52 sps:$4 sm:$0xff]   ;;  %v11179_v49 = vld [vmem:[%s15330_s1 + $0x694] ss:$52 sps:$4 sm:$0xff]  }
  0xfc   : > { %3836 = vmatprep.subr.bf16.mxu0 %v11095_v50  ;;  %3965 = vmatprep.subr.bf16.mxu1 %v11098_v51  ;;  %v11182_v50 = vld [vmem:[%s15330_s1 + $0x69c] ss:$52 sps:$4 sm:$0xff]  }
  0xfd   : > { %v11177_v51 = vld [vmem:[%s15330_s1 + $0x690] ss:$52 sps:$4 sm:$0xff]  }
  0xff   : > { %3837 = vmatpush1.bf16.msra.mxu0 %v11093_v52  ;;  %3966 = vmatpush1.bf16.msra.mxu1 %v11096_v53  ;;  %v11180_v52 = vld [vmem:[%s15330_s1 + $0x698] ss:$52 sps:$4 sm:$0xff]   ;;  %v11185_v53 = vld [vmem:[%s15330_s1 + $0x6fc] ss:$52 sps:$4 sm:$0xff]  }
 0x100   : > { %3838 = vmatprep.subr.bf16.mxu0 %v11101_v54  ;;  %3967 = vmatprep.subr.bf16.mxu1 %v11104_v55  ;;  %v11188_v54 = vld [vmem:[%s15330_s1 + $0x704] ss:$52 sps:$4 sm:$0xff]  }
 0x101   : > { %v11183_v55 = vld [vmem:[%s15330_s1 + $0x6f8] ss:$52 sps:$4 sm:$0xff]  }
 0x103   : > { %3839 = vmatpush1.bf16.msra.mxu0 %v11099_v57  ;;  %3968 = vmatpush1.bf16.msra.mxu1 %v11102_v58  ;;  %v11186_v57 = vld [vmem:[%s15330_s1 + $0x700] ss:$52 sps:$4 sm:$0xff]   ;;  %v11191_v58 = vld [vmem:[%s15330_s1 + $0x764] ss:$52 sps:$4 sm:$0xff]  }
 0x104   : > { %3840 = vmatprep.subr.bf16.mxu0 %v11107_v59  ;;  %3969 = vmatprep.subr.bf16.mxu1 %v11110_v60  ;;  %v11194_v59 = vld [vmem:[%s15330_s1 + $0x76c] ss:$52 sps:$4 sm:$0xff]  }
 0x105   : > { %v11189_v60 = vld [vmem:[%s15330_s1 + $0x760] ss:$52 sps:$4 sm:$0xff]  }
 0x107   : > { %3841 = vmatpush1.bf16.msra.mxu0 %v11105_v61  ;;  %3970 = vmatpush1.bf16.msra.mxu1 %v11108_v62  ;;  %v11192_v61 = vld [vmem:[%s15330_s1 + $0x768] ss:$52 sps:$4 sm:$0xff]   ;;  %v11197_v62 = vld [vmem:[%s15330_s1 + $0x7cc] ss:$52 sps:$4 sm:$0xff]  }
 0x108   : > { %3842 = vmatprep.subr.bf16.mxu0 %v11113_v63  ;;  %3971 = vmatprep.subr.bf16.mxu1 %v11116_v0  ;;  %v11200_v63 = vld [vmem:[%s15330_s1 + $0x7d4] ss:$52 sps:$4 sm:$0xff]  }
 0x109   : > { %v11195_v0 = vld [vmem:[%s15330_s1 + $0x7c8] ss:$52 sps:$4 sm:$0xff]  }
 0x10b   : > { %3843 = vmatpush1.bf16.msra.mxu0 %v11111_v1  ;;  %3972 = vmatpush1.bf16.msra.mxu1 %v11114_v2  ;;  %v11198_v1 = vld [vmem:[%s15330_s1 + $0x7d0] ss:$52 sps:$4 sm:$0xff]   ;;  %v11203_v2 = vld [vmem:[%s15330_s1 + $0x834] ss:$52 sps:$4 sm:$0xff]  }
 0x10c   : > { %3844 = vmatprep.subr.bf16.mxu0 %v11119_v3  ;;  %3973 = vmatprep.subr.bf16.mxu1 %v11122_v4  ;;  %v11206_v3 = vld [vmem:[%s15330_s1 + $0x83c] ss:$52 sps:$4 sm:$0xff]  }
 0x10d   : > { %v11201_v4 = vld [vmem:[%s15330_s1 + $0x830] ss:$52 sps:$4 sm:$0xff]  }
 0x10f   : > { %3845 = vmatpush1.bf16.msra.mxu0 %v11117_v5  ;;  %3974 = vmatpush1.bf16.msra.mxu1 %v11120_v6  ;;  %v11204_v5 = vld [vmem:[%s15330_s1 + $0x838] ss:$52 sps:$4 sm:$0xff]   ;;  %v11209_v6 = vld [vmem:[%s15330_s1 + $0x89c] ss:$52 sps:$4 sm:$0xff]  }
 0x110   : > { %3846 = vmatprep.subr.bf16.mxu0 %v11125_v7  ;;  %3975 = vmatprep.subr.bf16.mxu1 %v11128_v8  ;;  %v11212_v7 = vld [vmem:[%s15330_s1 + $0x8a4] ss:$52 sps:$4 sm:$0xff]  }
 0x111   : > { %v11207_v8 = vld [vmem:[%s15330_s1 + $0x898] ss:$52 sps:$4 sm:$0xff]  }
 0x113   : > { %3847 = vmatpush1.bf16.msra.mxu0 %v11123_v9  ;;  %3976 = vmatpush1.bf16.msra.mxu1 %v11126_v10  ;;  %v11210_v9 = vld [vmem:[%s15330_s1 + $0x8a0] ss:$52 sps:$4 sm:$0xff]   ;;  %v11215_v10 = vld [vmem:[%s15330_s1 + $0x904] ss:$52 sps:$4 sm:$0xff]  }
 0x114   : > { %3848 = vmatprep.subr.bf16.mxu0 %v11131_v11  ;;  %3977 = vmatprep.subr.bf16.mxu1 %v11134_v12  ;;  %v11218_v11 = vld [vmem:[%s15330_s1 + $0x90c] ss:$52 sps:$4 sm:$0xff]  }
 0x115   : > { %v11213_v12 = vld [vmem:[%s15330_s1 + $0x900] ss:$52 sps:$4 sm:$0xff]  }
 0x117   : > { %3849 = vmatpush1.bf16.msra.mxu0 %v11129_v13  ;;  %3978 = vmatpush1.bf16.msra.mxu1 %v11132_v14  ;;  %v11216_v13 = vld [vmem:[%s15330_s1 + $0x908] ss:$52 sps:$4 sm:$0xff]   ;;  %v11221_v14 = vld [vmem:[%s15330_s1 + $0x96c] ss:$52 sps:$4 sm:$0xff]  }
 0x118   : > { %3850 = vmatprep.subr.bf16.mxu0 %v11137_v16  ;;  %3979 = vmatprep.subr.bf16.mxu1 %v11140_v17  ;;  %v11224_v16 = vld [vmem:[%s15330_s1 + $0x974] ss:$52 sps:$4 sm:$0xff]  }
 0x119   : > { %v11219_v17 = vld [vmem:[%s15330_s1 + $0x968] ss:$52 sps:$4 sm:$0xff]  }
 0x11b   : > { %3851 = vmatpush1.bf16.msra.mxu0 %v11135_v18  ;;  %3980 = vmatpush1.bf16.msra.mxu1 %v11138_v19  ;;  %v11222_v18 = vld [vmem:[%s15330_s1 + $0x970] ss:$52 sps:$4 sm:$0xff]   ;;  %v11227_v19 = vld [vmem:[%s15330_s1 + $0x9d4] ss:$52 sps:$4 sm:$0xff]  }
 0x11c   : > { %3852 = vmatprep.subr.bf16.mxu0 %v11143_v20  ;;  %3981 = vmatprep.subr.bf16.mxu1 %v11146_v21  ;;  %v11230_v20 = vld [vmem:[%s15330_s1 + $0x9dc] ss:$52 sps:$4 sm:$0xff]  }
 0x11d   : > { %v11225_v21 = vld [vmem:[%s15330_s1 + $0x9d0] ss:$52 sps:$4 sm:$0xff]  }
 0x11f   : > { %3853 = vmatpush1.bf16.msra.mxu0 %v11141_v22  ;;  %3982 = vmatpush1.bf16.msra.mxu1 %v11144_v23  ;;  %v11228_v22 = vld [vmem:[%s15330_s1 + $0x9d8] ss:$52 sps:$4 sm:$0xff]   ;;  %v11233_v23 = vld [vmem:[%s15330_s1 + $0xa3c] ss:$52 sps:$4 sm:$0xff]  }
 0x120   : > { %3854 = vmatprep.subr.bf16.mxu0 %v11149_v24  ;;  %3983 = vmatprep.subr.bf16.mxu1 %v11152_v25  ;;  %v11236_v24 = vld [vmem:[%s15330_s1 + $0xa44] ss:$52 sps:$4 sm:$0xff]  }
 0x121   : > { %v11231_v25 = vld [vmem:[%s15330_s1 + $0xa38] ss:$52 sps:$4 sm:$0xff]  }
 0x123   : > { %3855 = vmatpush1.bf16.msra.mxu0 %v11147_v26  ;;  %3984 = vmatpush1.bf16.msra.mxu1 %v11150_v29  ;;  %v11234_v26 = vld [vmem:[%s15330_s1 + $0xa40] ss:$52 sps:$4 sm:$0xff]   ;;  %v11239_v29 = vld [vmem:[%s15330_s1 + $0xaa4] ss:$52 sps:$4 sm:$0xff]  }
 0x124   : > { %3856 = vmatprep.subr.bf16.mxu0 %v11155_v30  ;;  %3985 = vmatprep.subr.bf16.mxu1 %v11158_v31  ;;  %v11242_v30 = vld [vmem:[%s15330_s1 + $0xaac] ss:$52 sps:$4 sm:$0xff]  }
 0x125   : > { %v11237_v31 = vld [vmem:[%s15330_s1 + $0xaa0] ss:$52 sps:$4 sm:$0xff]  }
 0x127   : > { %3857 = vmatpush1.bf16.msra.mxu0 %v11153_v32  ;;  %3986 = vmatpush1.bf16.msra.mxu1 %v11156_v33  ;;  %v11240_v32 = vld [vmem:[%s15330_s1 + $0xaa8] ss:$52 sps:$4 sm:$0xff]   ;;  %v11245_v33 = vld [vmem:[%s15330_s1 + $0xb0c] ss:$52 sps:$4 sm:$0xff]  }
 0x128   : > { %3858 = vmatprep.subr.bf16.mxu0 %v11161_v34  ;;  %3987 = vmatprep.subr.bf16.mxu1 %v11164_v35  ;;  %v11248_v34 = vld [vmem:[%s15330_s1 + $0xb14] ss:$52 sps:$4 sm:$0xff]  }
 0x129   : > { %v11243_v35 = vld [vmem:[%s15330_s1 + $0xb08] ss:$52 sps:$4 sm:$0xff]  }
 0x12b   : > { %3859 = vmatpush1.bf16.msra.mxu0 %v11159_v36  ;;  %3988 = vmatpush1.bf16.msra.mxu1 %v11162_v37  ;;  %v11246_v36 = vld [vmem:[%s15330_s1 + $0xb10] ss:$52 sps:$4 sm:$0xff]   ;;  %v11251_v37 = vld [vmem:[%s15330_s1 + $0xb74] ss:$52 sps:$4 sm:$0xff]  }
 0x12c   : > { %3860 = vmatprep.subr.bf16.mxu0 %v11167_v38  ;;  %3989 = vmatprep.subr.bf16.mxu1 %v11170_v40  ;;  %v11254_v38 = vld [vmem:[%s15330_s1 + $0xb7c] ss:$52 sps:$4 sm:$0xff]  }
 0x12d   : > { %v11249_v40 = vld [vmem:[%s15330_s1 + $0xb70] ss:$52 sps:$4 sm:$0xff]  }
 0x12f   : > { %3861 = vmatpush1.bf16.msra.mxu0 %v11165_v41  ;;  %3990 = vmatpush1.bf16.msra.mxu1 %v11168_v42  ;;  %v11252_v41 = vld [vmem:[%s15330_s1 + $0xb78] ss:$52 sps:$4 sm:$0xff]   ;;  %v11257_v42 = vld [vmem:[%s15330_s1 + $0xbdc] ss:$52 sps:$4 sm:$0xff]  }
 0x130   : > { %3862 = vmatprep.subr.bf16.mxu0 %v11173_v44  ;;  %3991 = vmatprep.subr.bf16.mxu1 %v11176_v46  ;;  %v11260_v44 = vld [vmem:[%s15330_s1 + $0xbe4] ss:$52 sps:$4 sm:$0xff]  }
 0x131   : > { %v11255_v46 = vld [vmem:[%s15330_s1 + $0xbd8] ss:$52 sps:$4 sm:$0xff]  }
 0x133   : > { %3863 = vmatpush1.bf16.msra.mxu0 %v11171_v47  ;;  %3992 = vmatpush1.bf16.msra.mxu1 %v11174_v48  ;;  %v11258_v47 = vld [vmem:[%s15330_s1 + $0xbe0] ss:$52 sps:$4 sm:$0xff]   ;;  %v11263_v48 = vld [vmem:[%s15330_s1 + $0xc44] ss:$52 sps:$4 sm:$0xff]  }
 0x134   : > { %3875 = vmatprep.subr.bf16.mxu0 %v11179_v49  ;;  %4004 = vmatprep.subr.bf16.mxu1 %v11182_v50  ;;  %v11266_v49 = vld [vmem:[%s15330_s1 + $0xc4c] ss:$52 sps:$4 sm:$0xff]  }
 0x135   : > { %v11261_v50 = vld [vmem:[%s15330_s1 + $0xc40] ss:$52 sps:$4 sm:$0xff]  }
 0x136   : > { %3865 = vmatmul.mubr.bf16.vlgmr.msra.gmra.mrb[4].mxu0 %v12914_v15  ;;  %3994 = vmatmul.mubr.bf16.vlgmr.msra.gmra.mrb[4].mxu1 %v12914_v15 }
 0x137   : > { %3876 = vmatpush1.bf16.msra.mxu0 %v11177_v51  ;;  %4005 = vmatpush1.bf16.msra.mxu1 %v11180_v52  ;;  %v11264_v51 = vld [vmem:[%s15330_s1 + $0xc48] ss:$52 sps:$4 sm:$0xff]   ;;  %v11269_v52 = vld [vmem:[%s15330_s1 + $0xcac] ss:$52 sps:$4 sm:$0xff]  }
 0x138   : > { %3877 = vmatprep.subr.bf16.mxu0 %v11185_v53  ;;  %4006 = vmatprep.subr.bf16.mxu1 %v11188_v54  ;;  %v11272_v53 = vld [vmem:[%s15330_s1 + $0xcb4] ss:$52 sps:$4 sm:$0xff]   ;;  %v1237_v54 = vld [vmem:[%s15330_s1 + $0xd78] sm:$0x33] }
 0x139   : > { %3907 = vmatprep.mubr.bf16.mxu0 %v12999_v43  ;;  %4036 = vmatprep.mubr.bf16.mxu1 %v12999_v43 }
 0x13b   : > { %3878 = vmatpush1.bf16.msra.mxu0 %v11183_v55  ;;  %4007 = vmatpush1.bf16.msra.mxu1 %v11186_v57  ;;  %v1238_v55 = vld [vmem:[%s15330_s1 + $0xd80] sm:$0x33]  ;;  %v11267_v57 = vld [vmem:[%s15330_s1 + $0xca8] ss:$52 sps:$4 sm:$0xff]  }
 0x13c   : > { %3879 = vmatprep.subr.bf16.mxu0 %v11191_v58  ;;  %4008 = vmatprep.subr.bf16.mxu1 %v11194_v59  ;;  %v11270_v58 = vld [vmem:[%s15330_s1 + $0xcb0] ss:$52 sps:$4 sm:$0xff]   ;;  %v11275_v59 = vld [vmem:[%s15330_s1 + $0xd14] ss:$52 sps:$4 sm:$0xff]  }
 0x13f   : > { %3880 = vmatpush1.bf16.msra.mxu0 %v11189_v60  ;;  %4009 = vmatpush1.bf16.msra.mxu1 %v11192_v61  ;;  %v11278_v60 = vld [vmem:[%s15330_s1 + $0xd1c] ss:$52 sps:$4 sm:$0xff]   ;;  %v9968_v61 = vcombine.high %v1237_v54, %v1237_v54 }
 0x140   : > { %3881 = vmatprep.subr.bf16.mxu0 %v11197_v62  ;;  %4010 = vmatprep.subr.bf16.mxu1 %v11200_v63  ;;  %v9970_v62 = vcombine.high %v1238_v55, %v1238_v55  ;;  %v11273_v63 = vld [vmem:[%s15330_s1 + $0xd10] ss:$52 sps:$4 sm:$0xff]  }
 0x143   : > { %3882 = vmatpush1.bf16.msra.mxu0 %v11195_v0  ;;  %4011 = vmatpush1.bf16.msra.mxu1 %v11198_v1  ;;  %v11276_v0 = vld [vmem:[%s15330_s1 + $0xd18] ss:$52 sps:$4 sm:$0xff]   ;;  %v9967_v1 = vcombine.low %v1237_v54, %v1237_v54  ;;  %v11348_v54 = vld [vmem:[%s15330_s1 + $0x43c] ss:$52 sps:$4 sm:$0xff]  }
 0x144   : > { %3883 = vmatprep.subr.bf16.mxu0 %v11203_v2  ;;  %4012 = vmatprep.subr.bf16.mxu1 %v11206_v3  ;;  %v9969_v2 = vcombine.low %v1238_v55, %v1238_v55  ;;  %v3551_v3 = vand.u32 %v9968_v61, %v13126_v27  ;;  %v11343_v55 = vld [vmem:[%s15330_s1 + $0x430] ss:$52 sps:$4 sm:$0xff]   ;;  %v11352_v61 = vld [vmem:[%s15330_s1 + $0x4a0] ss:$52 sps:$4 sm:$0xff]  }
 0x147   : > { %3884 = vmatpush1.bf16.msra.mxu0 %v11201_v4  ;;  %4013 = vmatpush1.bf16.msra.mxu1 %v11204_v5  ;;  %v3557_v4 = vand.u32 %v9970_v62, %v13126_v27  ;;  %v3548_v5 = vand.u32 %v9967_v1, %v13126_v27  ;;  %v11357_v62 = vld [vmem:[%s15330_s1 + $0x504] ss:$52 sps:$4 sm:$0xff]   ;;  %v11358_v1 = vld [vmem:[%s15330_s1 + $0x508] ss:$52 sps:$4 sm:$0xff]  }
 0x148   : > { %3885 = vmatprep.subr.bf16.mxu0 %v11209_v6  ;;  %4014 = vmatprep.subr.bf16.mxu1 %v11212_v7  ;;  %v3554_v6 = vand.u32 %v9969_v2, %v13126_v27  ;;  %v11285_v7 = vld [vmem:[%s15330_s1 + $0x24] ss:$52 sps:$4 sm:$0xff]   ;;  %v11363_v2 = vld [vmem:[%s15330_s1 + $0x56c] ss:$52 sps:$4 sm:$0xff]  }
 0x14b   : > { %3886 = vmatpush1.bf16.msra.mxu0 %v11207_v8  ;;  %4015 = vmatpush1.bf16.msra.mxu1 %v11210_v9  ;;  %v11288_v8 = vld [vmem:[%s15330_s1 + $0x2c] ss:$52 sps:$4 sm:$0xff]  }
 0x14c   : > { %3887 = vmatprep.subr.bf16.mxu0 %v11215_v10  ;;  %4016 = vmatprep.subr.bf16.mxu1 %v11218_v11  ;;  %v11283_v9 = vld [vmem:[%s15330_s1 + $0x20] ss:$52 sps:$4 sm:$0xff]   ;;  %v11286_v10 = vld [vmem:[%s15330_s1 + $0x28] ss:$52 sps:$4 sm:$0xff]  }
 0x14d   : > { %v11291_v11 = vld [vmem:[%s15330_s1 + $0x8c] ss:$52 sps:$4 sm:$0xff]  }
 0x14f   : > { %3888 = vmatpush1.bf16.msra.mxu0 %v11213_v12  ;;  %4017 = vmatpush1.bf16.msra.mxu1 %v11216_v13  ;;  %v11294_v12 = vld [vmem:[%s15330_s1 + $0x94] ss:$52 sps:$4 sm:$0xff]  }
 0x150   : > { %3889 = vmatprep.subr.bf16.mxu0 %v11221_v14  ;;  %4018 = vmatprep.subr.bf16.mxu1 %v11224_v16  ;;  %v11289_v13 = vld [vmem:[%s15330_s1 + $0x88] ss:$52 sps:$4 sm:$0xff]   ;;  %v11292_v14 = vld [vmem:[%s15330_s1 + $0x90] ss:$52 sps:$4 sm:$0xff]  }
 0x151   : > { %v11297_v16 = vld [vmem:[%s15330_s1 + $0xf4] ss:$52 sps:$4 sm:$0xff]  }
 0x153   : > { %3890 = vmatpush1.bf16.msra.mxu0 %v11219_v17  ;;  %4019 = vmatpush1.bf16.msra.mxu1 %v11222_v18  ;;  %v11300_v17 = vld [vmem:[%s15330_s1 + $0xfc] ss:$52 sps:$4 sm:$0xff]  }
 0x154   : > { %3891 = vmatprep.subr.bf16.mxu0 %v11227_v19  ;;  %4020 = vmatprep.subr.bf16.mxu1 %v11230_v20  ;;  %v11295_v18 = vld [vmem:[%s15330_s1 + $0xf0] ss:$52 sps:$4 sm:$0xff]   ;;  %v11298_v19 = vld [vmem:[%s15330_s1 + $0xf8] ss:$52 sps:$4 sm:$0xff]  }
 0x155   : > { %v11303_v20 = vld [vmem:[%s15330_s1 + $0x15c] ss:$52 sps:$4 sm:$0xff]  }
 0x157   : > { %3892 = vmatpush1.bf16.msra.mxu0 %v11225_v21  ;;  %4021 = vmatpush1.bf16.msra.mxu1 %v11228_v22  ;;  %v11306_v21 = vld [vmem:[%s15330_s1 + $0x164] ss:$52 sps:$4 sm:$0xff]  }
 0x158   : > { %3893 = vmatprep.subr.bf16.mxu0 %v11233_v23  ;;  %4022 = vmatprep.subr.bf16.mxu1 %v11236_v24  ;;  %v11301_v22 = vld [vmem:[%s15330_s1 + $0x158] ss:$52 sps:$4 sm:$0xff]   ;;  %v11304_v23 = vld [vmem:[%s15330_s1 + $0x160] ss:$52 sps:$4 sm:$0xff]  }
 0x159   : > { %v11309_v24 = vld [vmem:[%s15330_s1 + $0x1c4] ss:$52 sps:$4 sm:$0xff]  }
 0x15b   : > { %3894 = vmatpush1.bf16.msra.mxu0 %v11231_v25  ;;  %4023 = vmatpush1.bf16.msra.mxu1 %v11234_v26  ;;  %v11312_v25 = vld [vmem:[%s15330_s1 + $0x1cc] ss:$52 sps:$4 sm:$0xff]  }
 0x15c   : > { %3895 = vmatprep.subr.bf16.mxu0 %v11239_v29  ;;  %4024 = vmatprep.subr.bf16.mxu1 %v11242_v30  ;;  %v11307_v26 = vld [vmem:[%s15330_s1 + $0x1c0] ss:$52 sps:$4 sm:$0xff]   ;;  %v11310_v29 = vld [vmem:[%s15330_s1 + $0x1c8] ss:$52 sps:$4 sm:$0xff]  }
 0x15d   : > { %v11315_v30 = vld [vmem:[%s15330_s1 + $0x22c] ss:$52 sps:$4 sm:$0xff]  }
 0x15f   : > { %3896 = vmatpush1.bf16.msra.mxu0 %v11237_v31  ;;  %4025 = vmatpush1.bf16.msra.mxu1 %v11240_v32  ;;  %v11318_v31 = vld [vmem:[%s15330_s1 + $0x234] ss:$52 sps:$4 sm:$0xff]  }
 0x160   : > { %3897 = vmatprep.subr.bf16.mxu0 %v11245_v33  ;;  %4026 = vmatprep.subr.bf16.mxu1 %v11248_v34  ;;  %v11313_v32 = vld [vmem:[%s15330_s1 + $0x228] ss:$52 sps:$4 sm:$0xff]   ;;  %v11316_v33 = vld [vmem:[%s15330_s1 + $0x230] ss:$52 sps:$4 sm:$0xff]  }
 0x161   : > { %v11321_v34 = vld [vmem:[%s15330_s1 + $0x294] ss:$52 sps:$4 sm:$0xff]  }
 0x163   : > { %3898 = vmatpush1.bf16.msra.mxu0 %v11243_v35  ;;  %4027 = vmatpush1.bf16.msra.mxu1 %v11246_v36  ;;  %v11324_v35 = vld [vmem:[%s15330_s1 + $0x29c] ss:$52 sps:$4 sm:$0xff]  }
 0x164   : > { %3899 = vmatprep.subr.bf16.mxu0 %v11251_v37  ;;  %4028 = vmatprep.subr.bf16.mxu1 %v11254_v38  ;;  %v11319_v36 = vld [vmem:[%s15330_s1 + $0x290] ss:$52 sps:$4 sm:$0xff]   ;;  %v11322_v37 = vld [vmem:[%s15330_s1 + $0x298] ss:$52 sps:$4 sm:$0xff]  }
 0x165   : > { %v11327_v38 = vld [vmem:[%s15330_s1 + $0x2fc] ss:$52 sps:$4 sm:$0xff]  }
 0x167   : > { %3900 = vmatpush1.bf16.msra.mxu0 %v11249_v40  ;;  %4029 = vmatpush1.bf16.msra.mxu1 %v11252_v41  ;;  %v11330_v40 = vld [vmem:[%s15330_s1 + $0x304] ss:$52 sps:$4 sm:$0xff]  }
 0x168   : > { %3901 = vmatprep.subr.bf16.mxu0 %v11257_v42  ;;  %4030 = vmatprep.subr.bf16.mxu1 %v11260_v44  ;;  %v11325_v41 = vld [vmem:[%s15330_s1 + $0x2f8] ss:$52 sps:$4 sm:$0xff]   ;;  %v11328_v42 = vld [vmem:[%s15330_s1 + $0x300] ss:$52 sps:$4 sm:$0xff]  }
 0x169   : > { %v11333_v44 = vld [vmem:[%s15330_s1 + $0x364] ss:$52 sps:$4 sm:$0xff]  }
 0x16b   : > { %3902 = vmatpush1.bf16.msra.mxu0 %v11255_v46  ;;  %4031 = vmatpush1.bf16.msra.mxu1 %v11258_v47  ;;  %v11336_v46 = vld [vmem:[%s15330_s1 + $0x36c] ss:$52 sps:$4 sm:$0xff]  }
 0x16c   : > { %3903 = vmatprep.subr.bf16.mxu0 %v11263_v48  ;;  %4032 = vmatprep.subr.bf16.mxu1 %v11266_v49  ;;  %v11331_v47 = vld [vmem:[%s15330_s1 + $0x360] ss:$52 sps:$4 sm:$0xff]   ;;  %v11334_v48 = vld [vmem:[%s15330_s1 + $0x368] ss:$52 sps:$4 sm:$0xff]  }
 0x16d   : > { %v11339_v49 = vld [vmem:[%s15330_s1 + $0x3cc] ss:$52 sps:$4 sm:$0xff]  }
 0x16f   : > { %3904 = vmatpush1.bf16.msra.mxu0 %v11261_v50  ;;  %4033 = vmatpush1.bf16.msra.mxu1 %v11264_v51  ;;  %v11342_v50 = vld [vmem:[%s15330_s1 + $0x3d4] ss:$52 sps:$4 sm:$0xff]  }
 0x170   : > { %3905 = vmatprep.subr.bf16.mxu0 %v11269_v52  ;;  %4034 = vmatprep.subr.bf16.mxu1 %v11272_v53  ;;  %v11337_v51 = vld [vmem:[%s15330_s1 + $0x3c8] ss:$52 sps:$4 sm:$0xff]   ;;  %v11340_v52 = vld [vmem:[%s15330_s1 + $0x3d0] ss:$52 sps:$4 sm:$0xff]  }
 0x171   : > { %v11345_v53 = vld [vmem:[%s15330_s1 + $0x434] ss:$52 sps:$4 sm:$0xff]  }
 0x173   : > { %3906 = vmatpush1.bf16.msra.mxu0 %v11267_v57  ;;  %4035 = vmatpush1.bf16.msra.mxu1 %v11270_v58  ;;  %v11346_v57 = vld [vmem:[%s15330_s1 + $0x438] ss:$52 sps:$4 sm:$0xff]   ;;  %v11351_v58 = vld [vmem:[%s15330_s1 + $0x49c] ss:$52 sps:$4 sm:$0xff]  }
 0x174   : > { %3918 = vmatprep.subr.bf16.mxu0 %v11275_v59  ;;  %4047 = vmatprep.subr.bf16.mxu1 %v11278_v60  ;;  %v11354_v59 = vld [vmem:[%s15330_s1 + $0x4a4] ss:$52 sps:$4 sm:$0xff]  }
 0x175   : > { %v11349_v60 = vld [vmem:[%s15330_s1 + $0x498] ss:$52 sps:$4 sm:$0xff]  }
 0x176   : > { %3908 = vmatmul.mubr.bf16.vlgmr.msra.gmra.mrb[4].mxu0 %v13128_v28  ;;  %4037 = vmatmul.mubr.bf16.vlgmr.msra.gmra.mrb[4].mxu1 %v13128_v28 }
 0x177   : > { %3919 = vmatpush1.bf16.msra.mxu0 %v11273_v63  ;;  %4048 = vmatpush1.bf16.msra.mxu1 %v11276_v0  ;;  %v11360_v63 = vld [vmem:[%s15330_s1 + $0x50c] ss:$52 sps:$4 sm:$0xff]  }
 0x178   : > { %3920 = vmatprep.subr.bf16.mxu0 %v3551_v3  ;;  %4049 = vmatprep.subr.bf16.mxu1 %v3557_v4  ;;  %v11355_v0 = vld [vmem:[%s15330_s1 + $0x500] ss:$52 sps:$4 sm:$0xff]   ;;  %v11361_v4 = vld [vmem:[%s15330_s1 + $0x568] ss:$52 sps:$4 sm:$0xff]  }
 0x179   : > { %3950 = vmatprep.mubr.bf16.mxu0 %v12279_v39  ;;  %4079 = vmatprep.mubr.bf16.mxu1 %v12279_v39  ;;  %v11366_v3 = vld [vmem:[%s15330_s1 + $0x574] ss:$52 sps:$4 sm:$0xff]  }
 0x17b   : > { %3921 = vmatpush1.bf16.msra.mxu0 %v3548_v5  ;;  %4050 = vmatpush1.bf16.msra.mxu1 %v3554_v6  ;;  %v11364_v5 = vld [vmem:[%s15330_s1 + $0x570] ss:$52 sps:$4 sm:$0xff]   ;;  %v11369_v6 = vld [vmem:[%s15330_s1 + $0x5d4] ss:$52 sps:$4 sm:$0xff]  }
 0x17c   : > { %4090 = vmatprep.subr.bf16.mxu0 %v11285_v7  ;;  %4219 = vmatprep.subr.bf16.mxu1 %v11288_v8  ;;  %v11372_v7 = vld [vmem:[%s15330_s1 + $0x5dc] ss:$52 sps:$4 sm:$0xff]  }
 0x17d   : > { %v11367_v8 = vld [vmem:[%s15330_s1 + $0x5d0] ss:$52 sps:$4 sm:$0xff]  }
 0x182   : > { %9978 = vmatmul.mubr.msk.bf16.vlgmr.msra.gmra.mrb[4].mxu0 %vm3527_vm2, %v13162_v45  ;;  %9979 = vmatmul.mubr.msk.bf16.vlgmr.msra.gmra.mrb[4].mxu1 %vm3527_vm2, %v13162_v45 }
 0x183   : > { %4091 = vmatpush1.bf16.msra.mxu0 %v11283_v9  ;;  %4220 = vmatpush1.bf16.msra.mxu1 %v11286_v10  ;;  %v11370_v9 = vld [vmem:[%s15330_s1 + $0x5d8] ss:$52 sps:$4 sm:$0xff]   ;;  %v11375_v10 = vld [vmem:[%s15330_s1 + $0x63c] ss:$52 sps:$4 sm:$0xff]  }
 0x184   : > { %4092 = vmatprep.subr.bf16.mxu0 %v11291_v11  ;;  %4221 = vmatprep.subr.bf16.mxu1 %v11294_v12  ;;  %v11378_v11 = vld [vmem:[%s15330_s1 + $0x644] ss:$52 sps:$4 sm:$0xff]  }
 0x185   : > { %4122 = vmatprep.mubr.bf16.mxu0 %v12844_v56  ;;  %4251 = vmatprep.mubr.bf16.mxu1 %v12844_v56  ;;  %v11373_v12 = vld [vmem:[%s15330_s1 + $0x638] ss:$52 sps:$4 sm:$0xff]  }
 0x187   : > { %4093 = vmatpush1.bf16.msra.mxu0 %v11289_v13  ;;  %4222 = vmatpush1.bf16.msra.mxu1 %v11292_v14  ;;  %v11376_v13 = vld [vmem:[%s15330_s1 + $0x640] ss:$52 sps:$4 sm:$0xff]   ;;  %v11381_v14 = vld [vmem:[%s15330_s1 + $0x6a4] ss:$52 sps:$4 sm:$0xff]  }
 0x188   : > { %4094 = vmatprep.subr.bf16.mxu0 %v11297_v16  ;;  %4223 = vmatprep.subr.bf16.mxu1 %v11300_v17  ;;  %v11384_v16 = vld [vmem:[%s15330_s1 + $0x6ac] ss:$52 sps:$4 sm:$0xff]  }
 0x189   : > { %v11379_v17 = vld [vmem:[%s15330_s1 + $0x6a0] ss:$52 sps:$4 sm:$0xff]  }
 0x18b   : > { %4095 = vmatpush1.bf16.msra.mxu0 %v11295_v18  ;;  %4224 = vmatpush1.bf16.msra.mxu1 %v11298_v19  ;;  %v11382_v18 = vld [vmem:[%s15330_s1 + $0x6a8] ss:$52 sps:$4 sm:$0xff]   ;;  %v11387_v19 = vld [vmem:[%s15330_s1 + $0x70c] ss:$52 sps:$4 sm:$0xff]  }
 0x18c   : > { %4096 = vmatprep.subr.bf16.mxu0 %v11303_v20  ;;  %4225 = vmatprep.subr.bf16.mxu1 %v11306_v21  ;;  %v11390_v20 = vld [vmem:[%s15330_s1 + $0x714] ss:$52 sps:$4 sm:$0xff]  }
 0x18d   : > { %v11385_v21 = vld [vmem:[%s15330_s1 + $0x708] ss:$52 sps:$4 sm:$0xff]  }
 0x18f   : > { %4097 = vmatpush1.bf16.msra.mxu0 %v11301_v22  ;;  %4226 = vmatpush1.bf16.msra.mxu1 %v11304_v23  ;;  %v11388_v22 = vld [vmem:[%s15330_s1 + $0x710] ss:$52 sps:$4 sm:$0xff]   ;;  %v11393_v23 = vld [vmem:[%s15330_s1 + $0x774] ss:$52 sps:$4 sm:$0xff]  }
 0x190   : > { %4098 = vmatprep.subr.bf16.mxu0 %v11309_v24  ;;  %4227 = vmatprep.subr.bf16.mxu1 %v11312_v25  ;;  %v11396_v24 = vld [vmem:[%s15330_s1 + $0x77c] ss:$52 sps:$4 sm:$0xff]  }
 0x191   : > { %v11391_v25 = vld [vmem:[%s15330_s1 + $0x770] ss:$52 sps:$4 sm:$0xff]  }
 0x193   : > { %4099 = vmatpush1.bf16.msra.mxu0 %v11307_v26  ;;  %4228 = vmatpush1.bf16.msra.mxu1 %v11310_v29  ;;  %v11394_v26 = vld [vmem:[%s15330_s1 + $0x778] ss:$52 sps:$4 sm:$0xff]   ;;  %v11399_v29 = vld [vmem:[%s15330_s1 + $0x7dc] ss:$52 sps:$4 sm:$0xff]  }
 0x194   : > { %4100 = vmatprep.subr.bf16.mxu0 %v11315_v30  ;;  %4229 = vmatprep.subr.bf16.mxu1 %v11318_v31  ;;  %v11402_v30 = vld [vmem:[%s15330_s1 + $0x7e4] ss:$52 sps:$4 sm:$0xff]  }
 0x197   : > { %4101 = vmatpush1.bf16.msra.mxu0 %v11313_v32  ;;  %4230 = vmatpush1.bf16.msra.mxu1 %v11316_v33  ;;  %v11397_v33 = vld [vmem:[%s15330_s1 + $0x7d8] ss:$52 sps:$4 sm:$0xff]  }
 0x198   : > { %4102 = vmatprep.subr.bf16.mxu0 %v11321_v34  ;;  %4231 = vmatprep.subr.bf16.mxu1 %v11324_v35  ;;  %v11400_v34 = vld [vmem:[%s15330_s1 + $0x7e0] ss:$52 sps:$4 sm:$0xff]  }
 0x19b   : > { %4103 = vmatpush1.bf16.msra.mxu0 %v11319_v36  ;;  %4232 = vmatpush1.bf16.msra.mxu1 %v11322_v37 }
 0x19c   : > { %4104 = vmatprep.subr.bf16.mxu0 %v11327_v38  ;;  %4233 = vmatprep.subr.bf16.mxu1 %v11330_v40 }
 0x19f   : > { %4105 = vmatpush1.bf16.msra.mxu0 %v11325_v41  ;;  %4234 = vmatpush1.bf16.msra.mxu1 %v11328_v42  ;;  %v11405_v42 = vld [vmem:[%s15330_s1 + $0x844] ss:$52 sps:$4 sm:$0xff]  }
 0x1a0   : > { %4106 = vmatprep.subr.bf16.mxu0 %v11333_v44  ;;  %4235 = vmatprep.subr.bf16.mxu1 %v11336_v46  ;;  %v11408_v44 = vld [vmem:[%s15330_s1 + $0x84c] ss:$52 sps:$4 sm:$0xff]  }
 0x1a1   : > { %v11403_v46 = vld [vmem:[%s15330_s1 + $0x840] ss:$52 sps:$4 sm:$0xff]  }
 0x1a3   : > { %4107 = vmatpush1.bf16.msra.mxu0 %v11331_v47  ;;  %4236 = vmatpush1.bf16.msra.mxu1 %v11334_v48  ;;  %v11406_v47 = vld [vmem:[%s15330_s1 + $0x848] ss:$52 sps:$4 sm:$0xff]   ;;  %v11411_v48 = vld [vmem:[%s15330_s1 + $0x8ac] ss:$52 sps:$4 sm:$0xff]  }
 0x1a4   : > { %4108 = vmatprep.subr.bf16.mxu0 %v11339_v49  ;;  %4237 = vmatprep.subr.bf16.mxu1 %v11342_v50  ;;  %v11414_v49 = vld [vmem:[%s15330_s1 + $0x8b4] ss:$52 sps:$4 sm:$0xff]  }
 0x1a5   : > { %v11409_v50 = vld [vmem:[%s15330_s1 + $0x8a8] ss:$52 sps:$4 sm:$0xff]  }
 0x1a7   : > { %4109 = vmatpush1.bf16.msra.mxu0 %v11337_v51  ;;  %4238 = vmatpush1.bf16.msra.mxu1 %v11340_v52  ;;  %v11412_v51 = vld [vmem:[%s15330_s1 + $0x8b0] ss:$52 sps:$4 sm:$0xff]   ;;  %v11417_v52 = vld [vmem:[%s15330_s1 + $0x914] ss:$52 sps:$4 sm:$0xff]  }
 0x1a8   : > { %4110 = vmatprep.subr.bf16.mxu0 %v11345_v53  ;;  %4239 = vmatprep.subr.bf16.mxu1 %v11348_v54  ;;  %v11420_v53 = vld [vmem:[%s15330_s1 + $0x91c] ss:$52 sps:$4 sm:$0xff]  }
 0x1a9   : > { %v11415_v54 = vld [vmem:[%s15330_s1 + $0x910] ss:$52 sps:$4 sm:$0xff]  }
 0x1ab   : > { %4111 = vmatpush1.bf16.msra.mxu0 %v11343_v55  ;;  %4240 = vmatpush1.bf16.msra.mxu1 %v11346_v57  ;;  %v11418_v55 = vld [vmem:[%s15330_s1 + $0x918] ss:$52 sps:$4 sm:$0xff]   ;;  %v11423_v57 = vld [vmem:[%s15330_s1 + $0x97c] ss:$52 sps:$4 sm:$0xff]  }
 0x1ac   : > { %4112 = vmatprep.subr.bf16.mxu0 %v11351_v58  ;;  %4241 = vmatprep.subr.bf16.mxu1 %v11354_v59  ;;  %v11426_v58 = vld [vmem:[%s15330_s1 + $0x984] ss:$52 sps:$4 sm:$0xff]  }
 0x1ad   : > { %v11421_v59 = vld [vmem:[%s15330_s1 + $0x978] ss:$52 sps:$4 sm:$0xff]  }
 0x1af   : > { %4113 = vmatpush1.bf16.msra.mxu0 %v11349_v60  ;;  %4242 = vmatpush1.bf16.msra.mxu1 %v11352_v61  ;;  %v11424_v60 = vld [vmem:[%s15330_s1 + $0x980] ss:$52 sps:$4 sm:$0xff]   ;;  %v11429_v61 = vld [vmem:[%s15330_s1 + $0x9e4] ss:$52 sps:$4 sm:$0xff]  }
 0x1b0   : > { %4114 = vmatprep.subr.bf16.mxu0 %v11357_v62  ;;  %4243 = vmatprep.subr.bf16.mxu1 %v11360_v63  ;;  %v11432_v62 = vld [vmem:[%s15330_s1 + $0x9ec] ss:$52 sps:$4 sm:$0xff]  }
 0x1b1   : > { %v11427_v63 = vld [vmem:[%s15330_s1 + $0x9e0] ss:$52 sps:$4 sm:$0xff]  }
 0x1b3   : > { %4115 = vmatpush1.bf16.msra.mxu0 %v11355_v0  ;;  %4244 = vmatpush1.bf16.msra.mxu1 %v11358_v1  ;;  %v11430_v0 = vld [vmem:[%s15330_s1 + $0x9e8] ss:$52 sps:$4 sm:$0xff]   ;;  %v11435_v1 = vld [vmem:[%s15330_s1 + $0xa4c] ss:$52 sps:$4 sm:$0xff]  }
 0x1b4   : > { %4116 = vmatprep.subr.bf16.mxu0 %v11363_v2  ;;  %4245 = vmatprep.subr.bf16.mxu1 %v11366_v3  ;;  %v11438_v2 = vld [vmem:[%s15330_s1 + $0xa54] ss:$52 sps:$4 sm:$0xff]  }
 0x1b5   : > { %v11433_v3 = vld [vmem:[%s15330_s1 + $0xa48] ss:$52 sps:$4 sm:$0xff]  }
 0x1b7   : > { %4117 = vmatpush1.bf16.msra.mxu0 %v11361_v4  ;;  %4246 = vmatpush1.bf16.msra.mxu1 %v11364_v5  ;;  %v11436_v4 = vld [vmem:[%s15330_s1 + $0xa50] ss:$52 sps:$4 sm:$0xff]   ;;  %v11441_v5 = vld [vmem:[%s15330_s1 + $0xab4] ss:$52 sps:$4 sm:$0xff]  }
 0x1b8   : > { %4118 = vmatprep.subr.bf16.mxu0 %v11369_v6  ;;  %4247 = vmatprep.subr.bf16.mxu1 %v11372_v7  ;;  %v11444_v6 = vld [vmem:[%s15330_s1 + $0xabc] ss:$52 sps:$4 sm:$0xff]  }
 0x1b9   : > { %v11439_v7 = vld [vmem:[%s15330_s1 + $0xab0] ss:$52 sps:$4 sm:$0xff]  }
 0x1bb   : > { %4119 = vmatpush1.bf16.msra.mxu0 %v11367_v8  ;;  %4248 = vmatpush1.bf16.msra.mxu1 %v11370_v9  ;;  %v11442_v8 = vld [vmem:[%s15330_s1 + $0xab8] ss:$52 sps:$4 sm:$0xff]   ;;  %v11447_v9 = vld [vmem:[%s15330_s1 + $0xb1c] ss:$52 sps:$4 sm:$0xff]  }
 0x1bc   : > { %4120 = vmatprep.subr.bf16.mxu0 %v11375_v10  ;;  %4249 = vmatprep.subr.bf16.mxu1 %v11378_v11  ;;  %v11450_v10 = vld [vmem:[%s15330_s1 + $0xb24] ss:$52 sps:$4 sm:$0xff]  }
 0x1bd   : > { %v11445_v11 = vld [vmem:[%s15330_s1 + $0xb18] ss:$52 sps:$4 sm:$0xff]  }
 0x1bf   : > { %4121 = vmatpush1.bf16.msra.mxu0 %v11373_v12  ;;  %4250 = vmatpush1.bf16.msra.mxu1 %v11376_v13  ;;  %v11448_v12 = vld [vmem:[%s15330_s1 + $0xb20] ss:$52 sps:$4 sm:$0xff]   ;;  %v11453_v13 = vld [vmem:[%s15330_s1 + $0xb84] ss:$52 sps:$4 sm:$0xff]  }
 0x1c0   : > { %4133 = vmatprep.subr.bf16.mxu0 %v11381_v14  ;;  %4262 = vmatprep.subr.bf16.mxu1 %v11384_v16  ;;  %v11456_v14 = vld [vmem:[%s15330_s1 + $0xb8c] ss:$52 sps:$4 sm:$0xff]  }
 0x1c1   : > { %v11451_v16 = vld [vmem:[%s15330_s1 + $0xb80] ss:$52 sps:$4 sm:$0xff]  }
 0x1c2   : > { %4123 = vmatmul.mubr.bf16.vlgmr.msra.gmra.mrb[8].mxu0 %v12914_v15  ;;  %4252 = vmatmul.mubr.bf16.vlgmr.msra.gmra.mrb[8].mxu1 %v12914_v15 }
 0x1c3   : > { %4134 = vmatpush1.bf16.msra.mxu0 %v11379_v17  ;;  %4263 = vmatpush1.bf16.msra.mxu1 %v11382_v18  ;;  %v11454_v17 = vld [vmem:[%s15330_s1 + $0xb88] ss:$52 sps:$4 sm:$0xff]   ;;  %v11459_v18 = vld [vmem:[%s15330_s1 + $0xbec] ss:$52 sps:$4 sm:$0xff]  }
 0x1c4   : > { %4135 = vmatprep.subr.bf16.mxu0 %v11387_v19  ;;  %4264 = vmatprep.subr.bf16.mxu1 %v11390_v20  ;;  %v11462_v19 = vld [vmem:[%s15330_s1 + $0xbf4] ss:$52 sps:$4 sm:$0xff]  }
 0x1c5   : > { %4165 = vmatprep.mubr.bf16.mxu0 %v12999_v43  ;;  %4294 = vmatprep.mubr.bf16.mxu1 %v12999_v43  ;;  %v11457_v20 = vld [vmem:[%s15330_s1 + $0xbe8] ss:$52 sps:$4 sm:$0xff]  }
 0x1c7   : > { %4136 = vmatpush1.bf16.msra.mxu0 %v11385_v21  ;;  %4265 = vmatpush1.bf16.msra.mxu1 %v11388_v22  ;;  %v11460_v21 = vld [vmem:[%s15330_s1 + $0xbf0] ss:$52 sps:$4 sm:$0xff]   ;;  %v11465_v22 = vld [vmem:[%s15330_s1 + $0xc54] ss:$52 sps:$4 sm:$0xff]  }
 0x1c8   : > { %4137 = vmatprep.subr.bf16.mxu0 %v11393_v23  ;;  %4266 = vmatprep.subr.bf16.mxu1 %v11396_v24  ;;  %v11468_v23 = vld [vmem:[%s15330_s1 + $0xc5c] ss:$52 sps:$4 sm:$0xff]  }
 0x1c9   : > { %v13816_v31 = vpop.f32.mrb[0].mxu0  ;;  %v13818_v32 = vpop.f32.mrb[0].mxu1  ;;  %v11463_v24 = vld [vmem:[%s15330_s1 + $0xc50] ss:$52 sps:$4 sm:$0xff]  }
 0x1ca   : > { %v13826_v35 = vpop.f32.mrb[1].mxu0  ;;  %v13828_v36 = vpop.f32.mrb[1].mxu1 }
 0x1cb   : > { %4138 = vmatpush1.bf16.msra.mxu0 %v11391_v25  ;;  %4267 = vmatpush1.bf16.msra.mxu1 %v11394_v26  ;;  %v13830_v37 = vpop.f32.mrb[2].mxu0  ;;  %v13832_v38 = vpop.f32.mrb[2].mxu1  ;;  %v11466_v25 = vld [vmem:[%s15330_s1 + $0xc58] ss:$52 sps:$4 sm:$0xff]   ;;  %v11471_v26 = vld [vmem:[%s15330_s1 + $0xcbc] ss:$52 sps:$4 sm:$0xff]  }
 0x1cc   : > { %v13834_v40 = vpop.f32.mrb[3].mxu0  ;;  %v13836_v41 = vpop.f32.mrb[3].mxu1  ;;  %4139 = vmatprep.subr.bf16.mxu0 %v11399_v29  ;;  %4268 = vmatprep.subr.bf16.mxu1 %v11402_v30  ;;  %v11474_v29 = vld [vmem:[%s15330_s1 + $0xcc4] ss:$52 sps:$4 sm:$0xff]   ;;  %v1239_v30 = vld [vmem:[%s15330_s1 + $0xd88] sm:$0x33] }
 0x1cf   : > { %4140 = vmatpush1.bf16.msra.mxu0 %v11397_v33  ;;  %4269 = vmatpush1.bf16.msra.mxu1 %v11400_v34  ;;  %v1240_v33 = vld [vmem:[%s15330_s1 + $0xd90] sm:$0x33]  ;;  %v11469_v34 = vld [vmem:[%s15330_s1 + $0xcb8] ss:$52 sps:$4 sm:$0xff]  }
 0x1d0   : > { %4141 = vmatprep.subr.bf16.mxu0 %v11405_v42  ;;  %4270 = vmatprep.subr.bf16.mxu1 %v11408_v44  ;;  %v11472_v42 = vld [vmem:[%s15330_s1 + $0xcc0] ss:$52 sps:$4 sm:$0xff]   ;;  %v11477_v44 = vld [vmem:[%s15330_s1 + $0xd24] ss:$52 sps:$4 sm:$0xff]  }
 0x1d3   : > { %4142 = vmatpush1.bf16.msra.mxu0 %v11403_v46  ;;  %4271 = vmatpush1.bf16.msra.mxu1 %v11406_v47  ;;  %v11480_v46 = vld [vmem:[%s15330_s1 + $0xd2c] ss:$52 sps:$4 sm:$0xff]   ;;  %v9972_v47 = vcombine.high %v1239_v30, %v1239_v30 }
 0x1d4   : > { %4143 = vmatprep.subr.bf16.mxu0 %v11411_v48  ;;  %4272 = vmatprep.subr.bf16.mxu1 %v11414_v49  ;;  %v9974_v48 = vcombine.high %v1240_v33, %v1240_v33  ;;  %v11475_v49 = vld [vmem:[%s15330_s1 + $0xd20] ss:$52 sps:$4 sm:$0xff]  }
 0x1d7   : > { %4144 = vmatpush1.bf16.msra.mxu0 %v11409_v50  ;;  %4273 = vmatpush1.bf16.msra.mxu1 %v11412_v51  ;;  %v11478_v50 = vld [vmem:[%s15330_s1 + $0xd28] ss:$52 sps:$4 sm:$0xff]   ;;  %v9971_v51 = vcombine.low %v1239_v30, %v1239_v30 }
 0x1d8   : > { %4145 = vmatprep.subr.bf16.mxu0 %v11417_v52  ;;  %4274 = vmatprep.subr.bf16.mxu1 %v11420_v53  ;;  %v9973_v52 = vcombine.low %v1240_v33, %v1240_v33  ;;  %v3563_v53 = vand.u32 %v9972_v47, %v13126_v27 }
 0x1db   : > { %4146 = vmatpush1.bf16.msra.mxu0 %v11415_v54  ;;  %4275 = vmatpush1.bf16.msra.mxu1 %v11418_v55  ;;  %v3569_v54 = vand.u32 %v9974_v48, %v13126_v27  ;;  %v3560_v55 = vand.u32 %v9971_v51, %v13126_v27 }
 0x1dc   : > { %4147 = vmatprep.subr.bf16.mxu0 %v11423_v57  ;;  %4276 = vmatprep.subr.bf16.mxu1 %v11426_v58  ;;  %v3566_v57 = vand.u32 %v9973_v52, %v13126_v27  ;;  %v11485_v58 = vld [vmem:[%s15330_s1 + $0x9f0] ss:$52 sps:$4 sm:$0xff]  }
 0x1df   : > { %4148 = vmatpush1.bf16.msra.mxu0 %v11421_v59  ;;  %4277 = vmatpush1.bf16.msra.mxu1 %v11424_v60  ;;  %v11486_v59 = vld [vmem:[%s15330_s1 + $0x6b0] ss:$52 sps:$4 sm:$0xff]   ;;  %v11487_v60 = vld [vmem:[%s15330_s1 + $0xa58] ss:$52 sps:$4 sm:$0xff]  }
 0x1e0   : > { %4149 = vmatprep.subr.bf16.mxu0 %v11429_v61  ;;  %4278 = vmatprep.subr.bf16.mxu1 %v11432_v62  ;;  %v11488_v61 = vld [vmem:[%s15330_s1 + $0x718] ss:$52 sps:$4 sm:$0xff]   ;;  %v11489_v62 = vld [vmem:[%s15330_s1 + $0xac0] ss:$52 sps:$4 sm:$0xff]  }
 0x1e3   : > { %4150 = vmatpush1.bf16.msra.mxu0 %v11427_v63  ;;  %4279 = vmatpush1.bf16.msra.mxu1 %v11430_v0  ;;  %v11490_v63 = vld [vmem:[%s15330_s1 + $0x780] ss:$52 sps:$4 sm:$0xff]   ;;  %v11491_v0 = vld [vmem:[%s15330_s1 + $0xb28] ss:$52 sps:$4 sm:$0xff]  }
 0x1e4   : > { %4151 = vmatprep.subr.bf16.mxu0 %v11435_v1  ;;  %4280 = vmatprep.subr.bf16.mxu1 %v11438_v2  ;;  %v1251_v1 = vlaneseq  ;;  %v11494_v2 = vld [vmem:[%s15330_s1 + $0x850] ss:$52 sps:$4 sm:$0xff]  }
 0x1e7   : > { %4152 = vmatpush1.bf16.msra.mxu0 %v11433_v3  ;;  %4281 = vmatpush1.bf16.msra.mxu1 %v11436_v4  ;;  %v11495_v3 = vld [vmem:[%s15330_s1 + $0xbf8] ss:$52 sps:$4 sm:$0xff]   ;;  %v14047_v4 = vshrl.u32 %v1251_v1, 7  ;;  %v11509_v1 = vld [vmem:[%s15330_s1 + $0x510] ss:$52 sps:$4 sm:$0xff]  }
 0x1e8   : > { %4153 = vmatprep.subr.bf16.mxu0 %v11441_v5  ;;  %4282 = vmatprep.subr.bf16.mxu1 %v11444_v6  ;;  %v11496_v5 = vld [vmem:[%s15330_s1 + $0x8b8] ss:$52 sps:$4 sm:$0xff]   ;;  %v11497_v6 = vld [vmem:[%s15330_s1 + $0xc60] ss:$52 sps:$4 sm:$0xff]  }
 0x1eb   : > { %4154 = vmatpush1.bf16.msra.mxu0 %v11439_v7  ;;  %4283 = vmatpush1.bf16.msra.mxu1 %v11442_v8  ;;  %v14056_v7 = vsub.s32 1, %v14047_v4  ;;  %v14061_v8 = vld [vmem:[%s15331_s2] sm:$0xff] }
 0x1ec   : > { %4155 = vmatprep.subr.bf16.mxu0 %v11447_v9  ;;  %4284 = vmatprep.subr.bf16.mxu1 %v11450_v10  ;;  %v11498_v9 = vld [vmem:[%s15330_s1 + $0x920] ss:$52 sps:$4 sm:$0xff]   ;;  %v11499_v10 = vld [vmem:[%s15330_s1 + $0xcc8] ss:$52 sps:$4 sm:$0xff]  }
 0x1ef   : > { %4156 = vmatpush1.bf16.msra.mxu0 %v11445_v11  ;;  %4285 = vmatpush1.bf16.msra.mxu1 %v11448_v12  ;;  %v1258_v11 = vrot.slane %v14061_v8, %v14056_v7  ;;  %v11500_v12 = vld [vmem:[%s15330_s1 + $0x988] ss:$52 sps:$4 sm:$0xff]  }
 0x1f0   : > { %4157 = vmatprep.subr.bf16.mxu0 %v11453_v13  ;;  %4286 = vmatprep.subr.bf16.mxu1 %v11456_v14 }
 0x1f1   : > { %v10645_v13 = vadd.f32 %v13826_v35, %v1258_v11 }
 0x1f3   : > { %4158 = vmatpush1.bf16.msra.mxu0 %v11451_v16  ;;  %4287 = vmatpush1.bf16.msra.mxu1 %v11454_v17  ;;  %v4472_v14 = vmul.f32 0.0751646, %v10645_v13  ;;  %v14078_v16 = vsub.s32 4, %v14047_v4  ;;  %v1277_v17 = vsub.s32 6, %v14047_v4 }
 0x1f4   : > { %4159 = vmatprep.subr.bf16.mxu0 %v11459_v18  ;;  %4288 = vmatprep.subr.bf16.mxu1 %v11462_v19  ;;  %v1273_v18 = vsub.s32 5, %v14047_v4  ;;  %v11518_v13 = vld [vmem:[%s15330_s1 + $0xd98] ss:$0 sps:$4 sm:$0x33]  }
 0x1f5   : > { %v1270_v19 = vrot.slane %v14061_v8, %v14078_v16 }
 0x1f6   : > { %v1274_v35 = vrot.slane %v14061_v8, %v1273_v18 }
 0x1f7   : > { %4160 = vmatpush1.bf16.msra.mxu0 %v11457_v20  ;;  %4289 = vmatpush1.bf16.msra.mxu1 %v11460_v21  ;;  %v1278_v20 = vrot.slane %v14061_v8, %v1277_v17  ;;  %v14087_v21 = vsub.s32 2, %v14047_v4 }
 0x1f8   : > { %4161 = vmatprep.subr.bf16.mxu0 %v11465_v22  ;;  %4290 = vmatprep.subr.bf16.mxu1 %v11468_v23 }
 0x1f9   : > { %v1262_v47 = vrot.slane %v14061_v8, %v14087_v21 }
 0x1fb   : > { %4162 = vmatpush1.bf16.msra.mxu0 %v11463_v24  ;;  %4291 = vmatpush1.bf16.msra.mxu1 %v11466_v25 }
 0x1fc   : > { %4163 = vmatprep.subr.bf16.mxu0 %v11471_v26  ;;  %4292 = vmatprep.subr.bf16.mxu1 %v11474_v29 }
 0x1ff   : > { %4164 = vmatpush1.bf16.msra.mxu0 %v11469_v34  ;;  %4293 = vmatpush1.bf16.msra.mxu1 %v11472_v42 }
 0x200   : > { %4176 = vmatprep.subr.bf16.mxu0 %v11477_v44  ;;  %4305 = vmatprep.subr.bf16.mxu1 %v11480_v46 }
 0x202   : > { %4166 = vmatmul.mubr.bf16.vlgmr.msra.gmra.mrb[8].mxu0 %v13128_v28  ;;  %4295 = vmatmul.mubr.bf16.vlgmr.msra.gmra.mrb[8].mxu1 %v13128_v28 }
 0x203   : > { %4177 = vmatpush1.bf16.msra.mxu0 %v11475_v49  ;;  %4306 = vmatpush1.bf16.msra.mxu1 %v11478_v50 }
 0x204   : > { %4178 = vmatprep.subr.bf16.mxu0 %v3563_v53  ;;  %4307 = vmatprep.subr.bf16.mxu1 %v3569_v54  ;;  %v10648_v54 = vadd.f32 %v13818_v32, %v1262_v47  ;;  %v11501_v32 = vld [vmem:[%s15330_s1 + $0x370] ss:$52 sps:$4 sm:$0xff]  }
 0x205   : > { %4208 = vmatprep.mubr.bf16.mxu0 %v12279_v39  ;;  %4337 = vmatprep.mubr.bf16.mxu1 %v12279_v39 }
 0x207   : > { %4179 = vmatpush1.bf16.msra.mxu0 %v3560_v55  ;;  %4308 = vmatpush1.bf16.msra.mxu1 %v3566_v57  ;;  %v14110_v55 = vmul.f32 0.0751646, %v10648_v54  ;;  %v10650_v57 = vadd.f32 %v13832_v38, %v1262_v47  ;;  %v11502_v38 = vld [vmem:[%s15330_s1 + $0x30] ss:$52 sps:$4 sm:$0xff]  }
 0x208   : > { %10497 = vmatprep.subr.bf16.mxu1 %v11485_v58  ;;  %v10647_v58 = vadd.f32 %v13834_v40, %v1258_v11  ;;  %10475 = vmatprep.subr.bf16.mxu0 %v11501_v32  ;;  %v11503_v40 = vld [vmem:[%s15330_s1 + $0x3d8] ss:$52 sps:$4 sm:$0xff]   ;;  %v11516_v11 = vld [vmem:[%s15330_s1 + $0x308] ss:$52 sps:$4 sm:$0xff]  }
 0x209   : > { %v14203_v32 = vld [vmem:[%s15331_s2 + $0x8] sm:$0x1f] }
 0x20e   : > { %9980 = vmatmul.mubr.msk.bf16.vlgmr.msra.gmra.mrb[8].mxu0 %vm3527_vm2, %v13162_v45  ;;  %9981 = vmatmul.mubr.msk.bf16.vlgmr.msra.gmra.mrb[8].mxu1 %vm3527_vm2, %v13162_v45 }
 0x20f   : > { %10498 = vmatpush3.bf16.msra.mxu1 %v11486_v59  ;;  %4421 = vmatprep.mubr.bf16.mxu1 %v12999_v43  ;;  %v11492_v43 = vld [vmem:[%s15330_s1 + $0x7e8] ss:$52 sps:$4 sm:$0xff]   ;;  %v14115_v59 = vmul.f32 0.0751646, %v10650_v57  ;;  %v1281_v57 = vsub.s32 7, %v14047_v4 }
 0x210   : > { %10499 = vmatprep.subr.bf16.mxu1 %v11487_v60  ;;  %4380 = vmatprep.mubr.bf16.mxu0 %v12844_v56  ;;  %v11493_v56 = vld [vmem:[%s15330_s1 + $0xb90] ss:$52 sps:$4 sm:$0xff]   ;;  %v14117_v60 = vmul.f32 0.0751646, %v10647_v58 }
 0x211   : > { %10476 = vmatpush3.bf16.msra.mxu0 %v11502_v38 }
 0x212   : > { %10477 = vmatprep.subr.bf16.mxu0 %v11503_v40 }
 0x213   : > { %10500 = vmatpush3.bf16.msra.mxu1 %v11488_v61  ;;  %v11504_v61 = vld [vmem:[%s15330_s1 + $0x98] ss:$52 sps:$4 sm:$0xff]  }
 0x214   : > { %10501 = vmatprep.subr.bf16.mxu1 %v11489_v62  ;;  %v11505_v62 = vld [vmem:[%s15330_s1 + $0x440] ss:$52 sps:$4 sm:$0xff]  }
 0x215   : > { %10478 = vmatpush3.bf16.msra.mxu0 %v11504_v61 }
 0x216   : > { %10479 = vmatprep.subr.bf16.mxu0 %v11505_v62 }
 0x217   : > { %10502 = vmatpush3.bf16.msra.mxu1 %v11490_v63  ;;  %v11506_v63 = vld [vmem:[%s15330_s1 + $0x100] ss:$52 sps:$4 sm:$0xff]  }
 0x218   : > { %10503 = vmatprep.subr.bf16.mxu1 %v11491_v0  ;;  %v12283_v0 = vmov 0.0  }
 0x219   : > { %6778 = vst [vmem:[#allocation3] sm:$0xff] %v12283_v0  ;;  %6779 = vst [vmem:[#allocation3 + $0x8] sm:$0xff] %v12283_v0  ;;  %10480 = vmatpush3.bf16.msra.mxu0 %v11506_v63  ;;  %v1282_v63 = vrot.slane %v14061_v8, %v1281_v57 }
 0x21a   : > { %6780 = vst [vmem:[#allocation3 + $0x10] sm:$0xff] %v12283_v0  ;;  %6781 = vst [vmem:[#allocation3 + $0x18] sm:$0xff] %v12283_v0 }
 0x21b   : > { %10504 = vmatpush3.bf16.msra.mxu1 %v11492_v43  ;;  %6782 = vst.msk [vmem:[#allocation3 + $0x20] sm:$0xff] %vm3527_vm2, %v12283_v0  ;;  %6783 = vst [vmem:[#allocation3 + $0x28] sm:$0xff] %v12283_v0  ;;  %v11507_v43 = vld [vmem:[%s15330_s1 + $0x4a8] ss:$52 sps:$4 sm:$0xff]  }
 0x21c   : > { %10505 = vmatprep.subr.bf16.mxu1 %v11493_v56  ;;  %6784 = vst [vmem:[#allocation3 + $0x30] sm:$0xff] %v12283_v0  ;;  %6785 = vst [vmem:[#allocation3 + $0x38] sm:$0xff] %v12283_v0  ;;  %v11508_v56 = vld [vmem:[%s15330_s1 + $0x168] ss:$52 sps:$4 sm:$0xff]   ;;  %10481 = vmatprep.subr.bf16.mxu0 %v11507_v43 }
 0x21d   : > { %6786 = vst [vmem:[#allocation3 + $0x40] sm:$0xff] %v12283_v0  ;;  %6787 = vst.msk [vmem:[#allocation3 + $0x48] sm:$0xff] %vm3527_vm2, %v12283_v0  ;;  %10482 = vmatpush3.bf16.msra.mxu0 %v11508_v56 }
 0x21e   : > { %10483 = vmatprep.subr.bf16.mxu0 %v11509_v1 }
 0x21f   : > { %10506 = vmatpush3.bf16.msra.mxu1 %v11494_v2  ;;  %v11510_v2 = vld [vmem:[%s15330_s1 + $0x1d0] ss:$52 sps:$4 sm:$0xff]  }
 0x220   : > { %10507 = vmatprep.subr.bf16.mxu1 %v11495_v3  ;;  %v11511_v3 = vld [vmem:[%s15330_s1 + $0x578] ss:$52 sps:$4 sm:$0xff]  }
 0x221   : > { %10484 = vmatpush3.bf16.msra.mxu0 %v11510_v2 }
 0x222   : > { %10485 = vmatprep.subr.bf16.mxu0 %v11511_v3 }
 0x223   : > { %10508 = vmatpush3.bf16.msra.mxu1 %v11496_v5  ;;  %v11512_v5 = vld [vmem:[%s15330_s1 + $0x238] ss:$52 sps:$4 sm:$0xff]  }
 0x224   : > { %10509 = vmatprep.subr.bf16.mxu1 %v11497_v6  ;;  %v11513_v6 = vld [vmem:[%s15330_s1 + $0x5e0] ss:$52 sps:$4 sm:$0xff]  }
 0x225   : > { %10486 = vmatpush3.bf16.msra.mxu0 %v11512_v5 }
 0x226   : > { %10487 = vmatprep.subr.bf16.mxu0 %v11513_v6 }
 0x227   : > { %10510 = vmatpush3.bf16.msra.mxu1 %v11498_v9  ;;  %v11514_v9 = vld [vmem:[%s15330_s1 + $0x2a0] ss:$52 sps:$4 sm:$0xff]  }
 0x228   : > { %10511 = vmatprep.subr.bf16.mxu1 %v11499_v10  ;;  %v11515_v10 = vld [vmem:[%s15330_s1 + $0x648] ss:$52 sps:$4 sm:$0xff]  }
 0x229   : > { %10488 = vmatpush3.bf16.msra.mxu0 %v11514_v9 }
 0x22a   : > { %10489 = vmatprep.subr.bf16.mxu0 %v11515_v10 }
 0x22b   : > { %10512 = vmatpush3.bf16.msra.mxu1 %v11500_v12  ;;  %v11517_v12 = vld [vmem:[%s15330_s1 + $0xd30] ss:$52 sps:$4 sm:$0xff]  }
 0x22d   : > { %10490 = vmatpush3.bf16.msra.mxu0 %v11516_v11 }
 0x22e   : > { %4422 = vmatmul.mubr.bf16.vlgmr.msra.gmra.mrb[12].mxu1 %v13128_v28  ;;  %10613 = vmatprep.subr.bf16.mxu0 %v12283_v0 }
 0x22f   : > { %9985 = vmatprep.mubr.msk.f32.mxu1 %vm4492_vm3, %v4472_v14 }
 0x230   : > { %4381 = vmatmul.mubr.bf16.vlgmr.msra.gmra.mrb[12].mxu0 %v12914_v15 }
 0x231   : > { %10614 = vmatpush3.bf16.msra.mxu0 %v11517_v12  ;;  %10617 = vmatprep.mubr.msk.bf16.mxu0 %vm12284_vm4, %v12283_v0 }
 0x232   : > { %10615 = vmatprep.subr.bf16.mxu0 %v12283_v0 }
 0x255   : > { %v3952_v28 = vpop.f32.mrb[4].mxu0  ;;  %v4081_v22 = vpop.f32.mrb[4].mxu1 }
 0x256   : > { %v14089_v23 = vadd.f32 %v3952_v28, %v1270_v19  ;;  %v14091_v24 = vadd.f32 %v4081_v22, %v1278_v20  ;;  %v3954_v25 = vpop.f32.mrb[5].mxu0  ;;  %v14093_v26 = vpop.f32.mrb[5].mxu1 }
 0x257   : > { %v10653_v29 = vadd.f32 %v3954_v25, %v1274_v35  ;;  %v3956_v30 = vpop.f32.mrb[6].mxu0  ;;  %v4085_v33 = vpop.f32.mrb[6].mxu1  ;;  %v10657_v3 = vadd.f32 %v14093_v26, %v1282_v63 }
 0x258   : > { %v14095_v34 = vadd.f32 %v3956_v30, %v1270_v19  ;;  %v14097_v42 = vadd.f32 %v4085_v33, %v1278_v20  ;;  %v3958_v44 = vpop.f32.mrb[7].mxu0  ;;  %v14099_v46 = vpop.f32.mrb[7].mxu1  ;;  %v14184_v19 = vsub.s32 0, %v14047_v4 }
 0x259   : > { %v10655_v48 = vadd.f32 %v3958_v44, %v1274_v35  ;;  %v10834_v49 = vpack.i.bf16 %v14091_v24, %v10653_v29  ;;  %v10824_v50 = vpack.i.bf16 %v10653_v29, %v14089_v23 }
 0x25a   : > { %v10854_v51 = vpack.i.bf16 %v14097_v42, %v14091_v24  ;;  %v1254_v30 = vrot.slane %v14061_v8, %v14184_v19  ;;  %v1286_v0 = vrot.slane %v14203_v32, %v14184_v19 }
 0x25b   : > { %v10839_v52 = vpack.i.bf16 %v14097_v42, %v10655_v48  ;;  %v10829_v53 = vpack.i.bf16 %v10655_v48, %v14095_v34  ;;  %10835 = vrot.lane.b32.xlu1 %v10834_v49, %s12280_s16  ;;  %10825 = vrot.lane.b32.xlu0 %v10824_v50, %s12281_s17 }
 0x25c   : > { %v10646_v40 = vadd.f32 %v13830_v37, %v1254_v30  ;;  %v1290_v37 = vrot.slane %v14203_v32, %v14056_v7 }
 0x25e   : > { %v4473_v43 = vmul.f32 0.0751646, %v10646_v40 }
 0x25f   : > { %10840 = vrot.lane.b32.xlu1 %v10839_v52, %s12280_s16  ;;  %10830 = vrot.lane.b32.xlu0 %v10829_v53, %s12281_s17  ;;  %v10644_v53 = vadd.f32 %v13816_v31, %v1254_v30  ;;  %v14207_v31 = vsub.s32 3, %v14047_v4 }
 0x261   : > { %v4471_v38 = vmul.f32 0.0751646, %v10644_v53  ;;  %v1266_v4 = vrot.slane %v14061_v8, %v14207_v31  ;;  %v1298_v30 = vrot.slane %v14203_v32, %v14207_v31 }
 0x263   : > { %4666 = vrot.lane.b32.xlu1 %v14110_v55, %s12282_s27  ;;  %4664 = vrot.lane.b32.xlu0 %v4472_v14, %s12282_s27  ;;  %v3572_v14 = vand.u32 %v11518_v13, %v13126_v27  ;;  %v10649_v26 = vadd.f32 %v13828_v36, %v1266_v4  ;;  %v10651_v36 = vadd.f32 %v13836_v41, %v1266_v4 }
 0x265   : > { %10616 = vmatpush3.bf16.msra.mxu0 %v3572_v14 }
 0x267   : > { %4670 = vrot.lane.b32.xlu1 %v14115_v59, %s12282_s27  ;;  %4668 = vrot.lane.b32.xlu0 %v14117_v60, %s12282_s27 }
 0x268   : > { %10618 = vmatmul.mubr.msk.bf16.vlgmr.msra.gmra.mrb[16].mxu0 %vm3527_vm2, %v13162_v45 }
 0x269   : > { %4649 = vmatprep.mubr.bf16.mxu0 %v12279_v39 }
 0x2cd   : > { %v10836_v17 = vpop.permute.xlu1 %10835  ;;  %v10826_v18 = vpop.permute.xlu0 %10825 }
 0x2ce   : > { %v10828_v20 = vunpack.i.h.bf16 %v10826_v18  ;;  %v10827_v15 = vunpack.i.l.bf16 %v10826_v18  ;;  %v10838_v33 = vunpack.i.h.bf16 %v10836_v17  ;;  %v10837_v54 = vunpack.i.l.bf16 %v10836_v17 }
 0x2d0   : > { %v4488_v44 = vsel %vm4487_vm5, %v10827_v15, %v10828_v20  ;;  %v4688_v61 = vsel %vm4687_vm7, %v10837_v54, %v10838_v33 }
 0x2d1   : > { %v10841_v35 = vpop.permute.xlu1 %10840  ;;  %v10831_v28 = vpop.permute.xlu0 %10830 }
 0x2d2   : > { %v10843_v22 = vunpack.i.h.bf16 %v10841_v35  ;;  %v10833_v25 = vunpack.i.h.bf16 %v10831_v28  ;;  %v10832_v29 = vunpack.i.l.bf16 %v10831_v28  ;;  %v10842_v50 = vunpack.i.l.bf16 %v10841_v35 }
 0x2d3   : > { %v4859_v28 = vmul.f32 0.0751646, %v10649_v26 }
 0x2d4   : > { %v4489_v47 = vsel %vm4487_vm5, %v10832_v29, %v10833_v25  ;;  %v10629_v48 = vpack.c.bf16 %v10833_v25, %v10828_v20  ;;  %v10634_v52 = vpack.c.bf16 %v10843_v22, %v10838_v33  ;;  %v4689_v58 = vsel %vm4687_vm7, %v10842_v50, %v10843_v22 }
 0x2d5   : > { %v10632_v49 = vpack.c.bf16 %v4489_v47, %v4488_v44  ;;  %v10637_v62 = vpack.c.bf16 %v4689_v58, %v4688_v61  ;;  %v4667_v56 = vpop.permute.xlu1 %4666  ;;  %v4665_v1 = vpop.permute.xlu0 %4664  ;;  %v4860_v22 = vmul.f32 0.0751646, %v14089_v23  ;;  %v1294_v25 = vrot.slane %v14203_v32, %v14087_v21 }
 0x2d6   : > { %10631 = vmatprep.subr.msk.bf16.mxu1 %vm14190_vm6, %v10629_v48  ;;  %v4673_v13 = vsel %vm4672_vm8, %v4665_v1, %v4667_v56  ;;  %v4862_v48 = vmul.f32 0.0751646, %v14095_v34 }
 0x2d7   : > { %10633 = vmatpush1.bf16.xpose.msra.mxu1 %v10632_v49 }
 0x2d8   : > { %10636 = vmatprep.subr.msk.bf16.mxu1 %vm14190_vm6, %v10634_v52 }
 0x2d9   : > { %v4671_v17 = vpop.permute.xlu1 %4670  ;;  %v4669_v18 = vpop.permute.xlu0 %4668 }
 0x2da   : > { %v4674_v35 = vsel %vm4672_vm8, %v4669_v18, %v4671_v17  ;;  %v1302_v18 = vrot.slane %v14203_v32, %v14078_v16 }
 0x2de   : > { %4568 = vmatmul.mubr.f32.vlgmr.msra.gmra.mrb[16].mxu1 %v4471_v38 }
 0x2df   : > { %9986 = vmatprep.mubr.msk.f32.mxu1 %vm4492_vm3, %v14117_v60  ;;  %10638 = vmatpush1.bf16.xpose.msra.mxu1 %v10637_v62  ;;  %v10659_v60 = vadd.f32 %v14099_v46, %v1282_v63 }
 0x2e1   : > { %v4210_v2 = vpop.f32.mrb[8].mxu0  ;;  %v4339_v29 = vpop.f32.mrb[8].mxu1 }
 0x2e2   : > { %v14219_v5 = vadd.f32 %v4210_v2, %v1286_v0  ;;  %v4212_v6 = vpop.f32.mrb[9].mxu0  ;;  %4573 = vmatmul.mubr.f32.gmra.mrb[18].mxu1 %v4473_v43  ;;  %v4341_v33 = vpop.f32.mrb[9].mxu1  ;;  %v14244_v44 = vadd.f32 %v4339_v29, %v1294_v25 }
 0x2e3   : > { %v4214_v9 = vpop.f32.mrb[10].mxu0  ;;  %9990 = vmatprep.mubr.msk.f32.mxu1 %vm4492_vm3, %v4667_v56  ;;  %v10661_v8 = vadd.f32 %v4212_v6, %v1290_v37  ;;  %v10665_v24 = vadd.f32 %v4341_v33, %v1298_v30  ;;  %v4343_v42 = vpop.f32.mrb[10].mxu1 }
 0x2e4   : > { %v10844_v10 = vpack.i.bf16 %v14219_v5, %v10657_v3  ;;  %v14224_v11 = vadd.f32 %v4214_v9, %v1286_v0  ;;  %v4216_v12 = vpop.f32.mrb[11].mxu0  ;;  %v14247_v41 = vadd.f32 %v4343_v42, %v1294_v25  ;;  %v4345_v23 = vpop.f32.mrb[11].mxu1 }
 0x2e5   : > { %v10663_v14 = vadd.f32 %v4216_v12, %v1290_v37  ;;  %v10667_v47 = vadd.f32 %v4345_v23, %v1298_v30 }
 0x2e6   : > { %v10849_v20 = vpack.i.bf16 %v14224_v11, %v10659_v60  ;;  %v4601_v15 = vpack.c.bf16 %v14224_v11, %v14219_v5  ;;  %10845 = vrot.lane.b32.xlu0 %v10844_v10, %s12285_s20  ;;  %4765 = vmatmul.mubr.f32.vlgmr.msra.gmra.mrb[20].mxu1 %v4673_v13  ;;  %v4797_v49 = vpack.c.bf16 %v14247_v41, %v14244_v44 }
 0x2e7   : > { %v14231_v46 = vpack.c.bf16 %v10663_v14, %v10661_v8  ;;  %9991 = vmatprep.mubr.msk.f32.mxu1 %vm4492_vm3, %v4671_v17  ;;  %v14252_v50 = vpack.c.bf16 %v10667_v47, %v10665_v24 }
 0x2e8   : > { %10850 = vrot.lane.b32.xlu1 %v10849_v20, %s12285_s20 }
 0x2ea   : > { %10855 = vrot.lane.b32.xlu0 %v10854_v51, %s12285_s20  ;;  %4770 = vmatmul.mubr.f32.gmra.mrb[22].mxu1 %v4674_v35  ;;  %v4861_v51 = vmul.f32 0.0751646, %v10651_v36 }
 0x2ec   : > { %4869 = vrot.lane.b32.xlu1 %v4859_v28, %s12286_s22 }
 0x2ee   : > { %4871 = vrot.lane.b32.xlu0 %v4860_v22, %s12286_s22 }
 0x2f0   : > { %4867 = vrot.lane.b32.xlu1 %v14110_v55, %s12286_s22 }
 0x2f2   : > { %4875 = vrot.lane.b32.xlu0 %v4861_v51, %s12286_s22 }
 0x2f4   : > { %4877 = vrot.lane.b32.xlu1 %v4862_v48, %s12286_s22 }
 0x2f6   : > { %4873 = vrot.lane.b32.xlu0 %v14115_v59, %s12286_s22 }
 0x301   : > { %v10513_v52 = vpop.f32.mrb[12].mxu1 }
 0x302   : > { %v10514_v53 = vpop.f32.mrb[13].mxu1 }
 0x303   : > { %v10515_v54 = vadd.f32 %v10514_v53, %v10513_v52  ;;  %v10516_v57 = vpop.f32.mrb[14].mxu1  ;;  %v10491_v17 = vpop.f32.mrb[12].mxu0 }
 0x304   : > { %v10517_v55 = vpop.f32.mrb[15].mxu1  ;;  %v10492_v45 = vpop.f32.mrb[13].mxu0 }
 0x305   : > { %v10518_v58 = vadd.f32 %v10517_v55, %v10516_v57  ;;  %v10493_v20 = vadd.f32 %v10492_v45, %v10491_v17  ;;  %v10494_v35 = vpop.f32.mrb[14].mxu0 }
 0x306   : > { %v10495_v36 = vpop.f32.mrb[15].mxu0 }
 0x307   : > { %v4383_v22 = vadd.f32 %v10493_v20, %v1302_v18  ;;  %v10496_v25 = vadd.f32 %v10495_v36, %v10494_v35 }
 0x309   : > { %v4386_v29 = vadd.f32 %v10496_v25, %v1302_v18  ;;  %v4424_v30 = vadd.f32 %v10515_v54, %v4383_v22 }
 0x30b   : > { %v4427_v24 = vadd.f32 %v10518_v58, %v4386_v29 }
 0x33b   : > { %v4464_v33 = vpop.f32.mrb[16].mxu0 }
 0x33c   : > { %v14265_v42 = vadd.f32 %v4464_v33, %v4424_v30  ;;  %v10619_v51 = vpop.f32.mrb[17].mxu0 }
 0x33d   : > { %v4467_v23 = vpop.f32.mrb[18].mxu0 }
 0x33e   : > { %v14267_v32 = vadd.f32 %v4467_v23, %v4427_v24  ;;  %v10620_v47 = vpop.f32.mrb[19].mxu0 }
 0x340   : > { %v5014_v48 = vpack.c.bf16 %v14267_v32, %v14265_v42 }
 0x358   : > { %v10846_v38 = vpop.permute.xlu0 %10845 }
 0x359   : > { %v10848_v40 = vunpack.i.h.bf16 %v10846_v38  ;;  %v10847_v61 = vunpack.i.l.bf16 %v10846_v38 }
 0x35a   : > { %v10851_v34 = vpop.permute.xlu1 %10850 }
 0x35b   : > { %v10853_v62 = vunpack.i.h.bf16 %v10851_v34  ;;  %v10852_v63 = vunpack.i.l.bf16 %v10851_v34  ;;  %v4904_v43 = vsel %vm4902_vm9, %v10847_v61, %v10848_v40 }
 0x35c   : > { %v10856_v0 = vpop.permute.xlu0 %10855 }
 0x35d   : > { %v4906_v56 = vsel %vm4902_vm9, %v10852_v63, %v10853_v62  ;;  %v10858_v1 = vunpack.i.h.bf16 %v10856_v0  ;;  %v10857_v2 = vunpack.i.l.bf16 %v10856_v0 }
 0x35e   : > { %v10639_v37 = vpack.c.bf16 %v4906_v56, %v4904_v43  ;;  %v4870_v59 = vpop.permute.xlu1 %4869 }
 0x35f   : > { %v4905_v4 = vsel %vm4902_vm9, %v10858_v1, %v10852_v63  ;;  %v4903_v3 = vsel %vm4902_vm9, %v10857_v2, %v10847_v61 }
 0x360   : > { %v10642_v6 = vpack.c.bf16 %v4905_v4, %v4903_v3  ;;  %v4872_v9 = vpop.permute.xlu0 %4871  ;;  %10641 = vmatprep.subr.msk.bf16.mxu1 %vm14190_vm6, %v10639_v37 }
 0x361   : > { %v4881_v60 = vsel %vm4879_vm10, %v4870_v59, %v4872_v9 }
 0x362   : > { %v4868_v10 = vpop.permute.xlu1 %4867  ;;  %10643 = vmatpush1.bf16.xpose.msra.mxu1 %v10642_v6  ;;  %9995 = vmatprep.mubr.msk.f32.mxu1 %vm4492_vm3, %v4881_v60 }
 0x363   : > { %v4880_v8 = vsel %vm4879_vm10, %v4868_v10, %v4870_v59 }
 0x364   : > { %v4876_v12 = vpop.permute.xlu0 %4875 }
 0x366   : > { %v4878_v13 = vpop.permute.xlu1 %4877 }
 0x367   : > { %v4883_v14 = vsel %vm4879_vm10, %v4876_v12, %v4878_v13 }
 0x368   : > { %v4874_v26 = vpop.permute.xlu0 %4873 }
 0x369   : > { %4982 = vmatmul.mubr.f32.vlgmr.msra.gmra.mrb[24].mxu1 %v4880_v8  ;;  %v4882_v28 = vsel %vm4879_vm10, %v4874_v26, %v4876_v12 }
 0x36a   : > { %9996 = vmatprep.mubr.msk.f32.mxu1 %vm4492_vm3, %v4883_v14 }
 0x36d   : > { %4987 = vmatmul.mubr.f32.gmra.mrb[26].mxu1 %v4882_v28 }
 0x3b1   : > { %v4569_v52 = vpop.f32.mrb[16].mxu1 }
 0x3b2   : > { %v4571_v53 = vpop.f32.mrb[17].mxu1  ;;  %v4579_v57 = vsel %vm4578_vm11, %v4569_v52, -inf }
 0x3b3   : > { %4580 = vmax.xlane.f32.xlu1 %v4579_v57 }
 0x3b5   : > { %v4574_v55 = vpop.f32.mrb[18].mxu1 }
 0x3b6   : > { %v4576_v54 = vpop.f32.mrb[19].mxu1  ;;  %v4582_v58 = vsel %vm4578_vm11, %v4574_v55, -inf }
 0x3b7   : > { %4583 = vmax.xlane.f32.xlu0 %v4582_v58 }
 0x3b9   : > { %v4766_v38 = vpop.f32.mrb[20].mxu1 }
 0x3ba   : > { %v4768_v40 = vpop.f32.mrb[21].mxu1  ;;  %v4775_v61 = vsel %vm4578_vm11, %v4766_v38, -inf }
 0x3bb   : > { %4776 = vmax.xlane.f32.xlu0 %v4775_v61 }
 0x3bd   : > { %v4771_v34 = vpop.f32.mrb[22].mxu1 }
 0x3be   : > { %v4773_v62 = vpop.f32.mrb[23].mxu1  ;;  %v4778_v63 = vsel %vm4578_vm11, %v4771_v34, -inf }
 0x3bf   : > { %4779 = vmax.xlane.f32.xlu1 %v4778_v63 }
 0x3d0   : > { %4608 = vrot.lane.b32.xlu1 %v14231_v46, %s12287_s7 }
 0x43c   : > { %v4983_v0 = vpop.f32.mrb[24].mxu1 }
 0x43d   : > { %v4985_v43 = vpop.f32.mrb[25].mxu1  ;;  %v4992_v56 = vsel %vm4578_vm11, %v4983_v0, -inf }
 0x43e   : > { %4993 = vmax.xlane.f32.xlu0 %v4992_v56 }
 0x440   : > { %v4988_v1 = vpop.f32.mrb[26].mxu1  ;;  %v4581_v59 = vpop.xlane.xlu1 %4580 }
 0x441   : > { %v4990_v2 = vpop.f32.mrb[27].mxu1  ;;  %v4995_v37 = vsel %vm4578_vm11, %v4988_v1, -inf  ;;  %v4585_v9 = vsub.f32 %v4569_v52, %v4581_v59 }
 0x442   : > { %4996 = vmax.xlane.f32.xlu1 %v4995_v37 }
 0x443   : > { %v4587_v12 = vmul.f32 1.442695, %v4585_v9  ;;  %v11527_v9 = vld [vmem:[%s15332_s3 + $0x2c] ss:$20 sps:$4 sm:$0xff]  }
 0x444   : > { %v4584_v6 = vpop.xlane.xlu0 %4583 }
 0x445   : > { %v4586_v10 = vsub.f32 %v4574_v55, %v4584_v6  ;;  %11755 = vpow2.f32 %v4587_v12  ;;  %v11524_v6 = vld [vmem:[%s15332_s3 + $0xc] ss:$20 sps:$4 sm:$0xff]  }
 0x447   : > { %v4589_v8 = vmul.f32 1.442695, %v4586_v10 }
 0x448   : > { %v4777_v60 = vpop.xlane.xlu0 %4776 }
 0x449   : > { %v4781_v13 = vsub.f32 %v4766_v38, %v4777_v60  ;;  %11757 = vpow2.f32 %v4589_v8  ;;  %v11522_v8 = vld [vmem:[%s15332_s3 + $0x8] ss:$20 sps:$4 sm:$0xff]  }
 0x44b   : > { %v4783_v14 = vmul.f32 1.442695, %v4781_v13  ;;  %v11525_v13 = vld [vmem:[%s15332_s3 + $0x28] ss:$20 sps:$4 sm:$0xff]  }
 0x44c   : > { %v4780_v4 = vpop.xlane.xlu1 %4779 }
 0x44d   : > { %v4782_v26 = vsub.f32 %v4771_v34, %v4780_v4  ;;  %11759 = vpow2.f32 %v4783_v14  ;;  %v11519_v4 = vld [vmem:[%s15332_s3] ss:$20 sps:$4 sm:$0xff]  }
 0x44e   : > { %v11533_v14 = vld [vmem:[%s15332_s3 + $0x54] ss:$20 sps:$4 sm:$0xff]  }
 0x44f   : > { %v4785_v17 = vmul.f32 1.442695, %v4782_v26  ;;  %v11756_v44 = vpop.eup %11755 }
 0x450   : > { %v4609_v3 = vpop.permute.xlu1 %4608 }
 0x451   : > { %4617 = vmatprep.subr.bf16.mxu0 %v4609_v3  ;;  %11761 = vpow2.f32 %v4785_v17  ;;  %v11530_v17 = vld [vmem:[%s15332_s3 + $0x34] ss:$20 sps:$4 sm:$0xff]  }
 0x453   : > { %4804 = vrot.lane.b32.xlu1 %v4797_v49, %s12288_s15  ;;  %v11758_v41 = vpop.eup %11757  ;;  %v4591_v49 = vsel %vm4578_vm11, %v11756_v44, 0.0 }
 0x454   : > { %4606 = vrot.lane.b32.xlu0 %v4601_v15, %s12287_s7  ;;  %v4594_v15 = vsel %vm4578_vm11, %v11758_v41, 0.0 }
 0x457   : > { %v11760_v5 = vpop.eup %11759 }
 0x458   : > { %v4787_v11 = vsel %vm4578_vm11, %v11760_v5, 0.0 }
 0x45b   : > { %v11762_v18 = vpop.eup %11761 }
 0x45c   : > { %v4790_v45 = vsel %vm4578_vm11, %v11762_v18, 0.0 }
 0x473   : > { %4592 = vadd.xlane.f32.xlu0 %v4591_v49  ;;  %v11539_v49 = vld [vmem:[%s15332_s3 + $0x7c] ss:$20 sps:$4 sm:$0xff]  }
 0x477   : > { %4788 = vadd.xlane.f32.xlu0 %v4787_v11  ;;  %4595 = vadd.xlane.f32.xlu1 %v4594_v15  ;;  %v11537_v11 = vld [vmem:[%s15332_s3 + $0x78] ss:$20 sps:$4 sm:$0xff]  }
 0x478   : > { %v11534_v15 = vld [vmem:[%s15332_s3 + $0x58] ss:$20 sps:$4 sm:$0xff]  }
 0x47b   : > { %4791 = vadd.xlane.f32.xlu1 %v4790_v45  ;;  %v11542_v45 = vld [vmem:[%s15332_s3 + $0x84] ss:$20 sps:$4 sm:$0xff]  }
 0x48c   : > { %4802 = vrot.lane.b32.xlu1 %v14231_v46, %s12288_s15 }
 0x48d   : > { %4806 = vrot.lane.b32.xlu0 %v14252_v50, %s12288_s15 }
 0x4cb   : > { %v4994_v20 = vpop.xlane.xlu0 %4993 }
 0x4cc   : > { %v4998_v35 = vsub.f32 %v4983_v0, %v4994_v20  ;;  %v11543_v20 = vld [vmem:[%s15332_s3 + $0xa0] ss:$20 sps:$4 sm:$0xff]  }
 0x4ce   : > { %v5000_v28 = vmul.f32 1.442695, %v4998_v35  ;;  %v11540_v35 = vld [vmem:[%s15332_s3 + $0x80] ss:$20 sps:$4 sm:$0xff]  }
 0x4cf   : > { %v4607_v36 = vpop.permute.xlu0 %4606  ;;  %v4997_v22 = vpop.xlane.xlu1 %4996 }
 0x4d0   : > { %11763 = vpow2.f32 %v5000_v28  ;;  %v4611_v25 = vsel %vm4610_vm12, %v4607_v36, %v4609_v3  ;;  %v4999_v29 = vsub.f32 %v4988_v1, %v4997_v22  ;;  %v11521_v3 = vld [vmem:[%s15332_s3 + $0x4] ss:$20 sps:$4 sm:$0xff]   ;;  %v11551_v28 = vld [vmem:[%s15332_s3 + $0xcc] ss:$20 sps:$4 sm:$0xff]   ;;  %v11549_v22 = vld [vmem:[%s15332_s3 + $0xc8] ss:$20 sps:$4 sm:$0xff]  }
 0x4d1   : > { %4618 = vmatpush1.bf16.msra.mxu0 %v4611_v25  ;;  %6236 = vmatprep.subr.bf16.mxu1 %v11521_v3  ;;  %v11548_v36 = vld [vmem:[%s15332_s3 + $0xac] ss:$20 sps:$4 sm:$0xff]   ;;  %v11546_v25 = vld [vmem:[%s15332_s3 + $0xa8] ss:$20 sps:$4 sm:$0xff]  }
 0x4d2   : > { %v5002_v30 = vmul.f32 1.442695, %v4999_v29  ;;  %6237 = vmatpush1.bf16.msra.mxu1 %v11519_v4  ;;  %v11557_v29 = vld [vmem:[%s15332_s3 + $0xf4] ss:$20 sps:$4 sm:$0xff]  }
 0x4d3   : > { %v4805_v23 = vpop.permute.xlu1 %4804  ;;  %6238 = vmatprep.subr.bf16.mxu1 %v11527_v9  ;;  %v11602_v4 = vld [vmem:[%s15332_s3 + $0x214] ss:$20 sps:$4 sm:$0xff]  }
 0x4d4   : > { %11765 = vpow2.f32 %v5002_v30  ;;  %v11554_v30 = vld [vmem:[%s15332_s3 + $0xd4] ss:$20 sps:$4 sm:$0xff]  }
 0x4d5   : > { %v11597_v3 = vld [vmem:[%s15332_s3 + $0x208] ss:$20 sps:$4 sm:$0xff]  }
 0x4d6   : > { %6239 = vmatpush1.bf16.msra.mxu1 %v11525_v13  ;;  %v11605_v9 = vld [vmem:[%s15332_s3 + $0x234] ss:$20 sps:$4 sm:$0xff]  }
 0x4d7   : > { %6240 = vmatprep.subr.bf16.mxu1 %v11533_v14  ;;  %v11611_v14 = vld [vmem:[%s15332_s3 + $0x25c] ss:$20 sps:$4 sm:$0xff]  }
 0x4da   : > { %v11764_v33 = vpop.eup %11763 }
 0x4db   : > { %v5004_v24 = vsel %vm4578_vm11, %v11764_v33, 0.0 }
 0x4dc   : > { %5005 = vadd.xlane.f32.xlu0 %v5004_v24  ;;  %v11552_v24 = vld [vmem:[%s15332_s3 + $0xd0] ss:$20 sps:$4 sm:$0xff]  }
 0x4de   : > { %v11766_v51 = vpop.eup %11765 }
 0x4df   : > { %v5007_v46 = vsel %vm4578_vm11, %v11766_v51, 0.0 }
 0x4e0   : > { %5008 = vadd.xlane.f32.xlu1 %v5007_v46  ;;  %v11560_v46 = vld [vmem:[%s15332_s3 + $0xfc] ss:$20 sps:$4 sm:$0xff]  }
 0x4f1   : > { %5019 = vrot.lane.b32.xlu1 %v5014_v48, %s12289_s23 }
 0x4f2   : > { %5017 = vrot.lane.b32.xlu0 %v14252_v50, %s12289_s23 }
 0x500   : > { %v4593_v47 = vpop.xlane.xlu0 %4592 }
 0x501   : > { %11767 = vrcp.f32 %v4593_v47  ;;  %v11558_v47 = vld [vmem:[%s15332_s3 + $0xf8] ss:$20 sps:$4 sm:$0xff]  }
 0x504   : > { %v4789_v52 = vpop.xlane.xlu0 %4788  ;;  %v4596_v53 = vpop.xlane.xlu1 %4595 }
 0x505   : > { %11769 = vrcp.f32 %v4596_v53  ;;  %v11566_v53 = vld [vmem:[%s15332_s3 + $0x124] ss:$20 sps:$4 sm:$0xff]  }
 0x508   : > { %v4807_v57 = vpop.permute.xlu0 %4806  ;;  %v4792_v55 = vpop.xlane.xlu1 %4791 }
 0x509   : > { %v4810_v54 = vsel %vm4808_vm13, %v4805_v23, %v4807_v57  ;;  %11771 = vrcp.f32 %v4792_v55  ;;  %v11567_v57 = vld [vmem:[%s15332_s3 + $0x140] ss:$20 sps:$4 sm:$0xff]  }
 0x50a   : > { %4816 = vmatprep.subr.bf16.mxu0 %v4810_v54  ;;  %11773 = vrcp.f32 %v4789_v52  ;;  %v11569_v52 = vld [vmem:[%s15332_s3 + $0x144] ss:$20 sps:$4 sm:$0xff]   ;;  %v11564_v55 = vld [vmem:[%s15332_s3 + $0x120] ss:$20 sps:$4 sm:$0xff]  }
 0x50b   : > { %v11768_v58 = vpop.eup %11767  ;;  %v11572_v54 = vld [vmem:[%s15332_s3 + $0x14c] ss:$20 sps:$4 sm:$0xff]  }
 0x50c   : > { %v4599_v40 = vmul.f32 %v11768_v58, %v11756_v44  ;;  %v4803_v32 = vpop.permute.xlu1 %4802  ;;  %v11531_v44 = vld [vmem:[%s15332_s3 + $0x50] ss:$20 sps:$4 sm:$0xff]   ;;  %v11570_v58 = vld [vmem:[%s15332_s3 + $0x148] ss:$20 sps:$4 sm:$0xff]  }
 0x50d   : > { %v4809_v61 = vsel %vm4808_vm13, %v4803_v32, %v4805_v23  ;;  %6241 = vmatpush1.bf16.msra.mxu1 %v11531_v44  ;;  %v11561_v23 = vld [vmem:[%s15332_s3 + $0x118] ss:$20 sps:$4 sm:$0xff]   ;;  %v11576_v32 = vld [vmem:[%s15332_s3 + $0x170] ss:$20 sps:$4 sm:$0xff]  }
 0x50e   : > { %6242 = vmatprep.subr.bf16.mxu1 %v11539_v49  ;;  %v11609_v44 = vld [vmem:[%s15332_s3 + $0x258] ss:$20 sps:$4 sm:$0xff]  }
 0x50f   : > { %v11770_v38 = vpop.eup %11769 }
 0x510   : > { %v4600_v42 = vmul.f32 %v11770_v38, %v11758_v41  ;;  %v11528_v41 = vld [vmem:[%s15332_s3 + $0x30] ss:$20 sps:$4 sm:$0xff]   ;;  %v11575_v38 = vld [vmem:[%s15332_s3 + $0x16c] ss:$20 sps:$4 sm:$0xff]  }
 0x511   : > { %6243 = vmatpush1.bf16.msra.mxu1 %v11537_v11  ;;  %v11617_v11 = vld [vmem:[%s15332_s3 + $0x284] ss:$20 sps:$4 sm:$0xff]  }
 0x512   : > { %v4603_v48 = vpack.c.bf16 %v4600_v42, %v4599_v40  ;;  %v11578_v40 = vld [vmem:[%s15332_s3 + $0x174] ss:$20 sps:$4 sm:$0xff]  }
 0x513   : > { %v11772_v50 = vpop.eup %11771  ;;  %v11573_v42 = vld [vmem:[%s15332_s3 + $0x168] ss:$20 sps:$4 sm:$0xff]  }
 0x514   : > { %9987 = vmatmul.mubr.msk.bf16.vlgmr.msra.gmra.mrb[20].mxu0 %vm4578_vm11, %v4603_v48  ;;  %v11774_v34 = vpop.eup %11773  ;;  %v4796_v62 = vmul.f32 %v11772_v50, %v11762_v18  ;;  %v11545_v18 = vld [vmem:[%s15332_s3 + $0xa4] ss:$20 sps:$4 sm:$0xff]   ;;  %v11581_v50 = vld [vmem:[%s15332_s3 + $0x194] ss:$20 sps:$4 sm:$0xff]  }
 0x515   : > { %4817 = vmatpush1.bf16.msra.mxu0 %v4809_v61  ;;  %4848 = vmatprep.mubr.bf16.mxu0 %v12279_v39  ;;  %v4795_v63 = vmul.f32 %v11774_v34, %v11760_v5  ;;  %v11536_v5 = vld [vmem:[%s15332_s3 + $0x5c] ss:$20 sps:$4 sm:$0xff]   ;;  %v11582_v61 = vld [vmem:[%s15332_s3 + $0x198] ss:$20 sps:$4 sm:$0xff]  }
 0x516   : > { %6244 = vmatprep.subr.bf16.mxu1 %v11545_v18  ;;  %v11579_v48 = vld [vmem:[%s15332_s3 + $0x190] ss:$20 sps:$4 sm:$0xff]  }
 0x517   : > { %v4799_v0 = vpack.c.bf16 %v4796_v62, %v4795_v63  ;;  %6245 = vmatpush1.bf16.msra.mxu1 %v11543_v20  ;;  %v11584_v34 = vld [vmem:[%s15332_s3 + $0x19c] ss:$20 sps:$4 sm:$0xff]   ;;  %v11590_v63 = vld [vmem:[%s15332_s3 + $0x1c4] ss:$20 sps:$4 sm:$0xff]  }
 0x518   : > { %6246 = vmatprep.subr.bf16.mxu1 %v11551_v28  ;;  %v11587_v62 = vld [vmem:[%s15332_s3 + $0x1bc] ss:$20 sps:$4 sm:$0xff]  }
 0x51b   : > { %6247 = vmatpush1.bf16.msra.mxu1 %v11549_v22 }
 0x51c   : > { %9992 = vmatmul.mubr.msk.bf16.vlgmr.msra.gmra.mrb[24].mxu0 %vm4578_vm11, %v4799_v0  ;;  %6248 = vmatprep.subr.bf16.mxu1 %v11557_v29  ;;  %v11585_v0 = vld [vmem:[%s15332_s3 + $0x1b8] ss:$20 sps:$4 sm:$0xff]  }
 0x51d   : > { %5060 = vmatprep.mubr.bf16.mxu0 %v12279_v39 }
 0x569   : > { %v5006_v43 = vpop.xlane.xlu0 %5005 }
 0x56a   : > { %11775 = vrcp.f32 %v5006_v43  ;;  %v11588_v43 = vld [vmem:[%s15332_s3 + $0x1c0] ss:$20 sps:$4 sm:$0xff]  }
 0x56d   : > { %v5009_v56 = vpop.xlane.xlu1 %5008  ;;  %v5018_v1 = vpop.permute.xlu0 %5017 }
 0x56e   : > { %11777 = vrcp.f32 %v5009_v56  ;;  %v11593_v56 = vld [vmem:[%s15332_s3 + $0x1e4] ss:$20 sps:$4 sm:$0xff]  }
 0x571   : > { %v5020_v2 = vpop.permute.xlu1 %5019 }
 0x572   : > { %v5022_v37 = vsel %vm5021_vm14, %v5018_v1, %v5020_v2  ;;  %5028 = vmatprep.subr.bf16.mxu0 %v5020_v2  ;;  %v11596_v1 = vld [vmem:[%s15332_s3 + $0x1ec] ss:$20 sps:$4 sm:$0xff]  }
 0x573   : > { %5029 = vmatpush1.bf16.msra.mxu0 %v5022_v37  ;;  %v11591_v2 = vld [vmem:[%s15332_s3 + $0x1e0] ss:$20 sps:$4 sm:$0xff]   ;;  %v11594_v37 = vld [vmem:[%s15332_s3 + $0x1e8] ss:$20 sps:$4 sm:$0xff]  }
 0x574   : > { %v11776_v59 = vpop.eup %11775  ;;  %6365 = vmatprep.subr.bf16.mxu0 %v11524_v6  ;;  %v11600_v6 = vld [vmem:[%s15332_s3 + $0x210] ss:$20 sps:$4 sm:$0xff]  }
 0x575   : > { %v5012_v10 = vmul.f32 %v11776_v59, %v11764_v33  ;;  %v11555_v33 = vld [vmem:[%s15332_s3 + $0xf0] ss:$20 sps:$4 sm:$0xff]   ;;  %v11599_v59 = vld [vmem:[%s15332_s3 + $0x20c] ss:$20 sps:$4 sm:$0xff]  }
 0x576   : > { %6249 = vmatpush1.bf16.msra.mxu1 %v11555_v33 }
 0x578   : > { %v11778_v60 = vpop.eup %11777 }
 0x579   : > { %v5013_v12 = vmul.f32 %v11778_v60, %v11766_v51  ;;  %v11563_v51 = vld [vmem:[%s15332_s3 + $0x11c] ss:$20 sps:$4 sm:$0xff]  }
 0x57a   : > { %6250 = vmatprep.subr.bf16.mxu1 %v11563_v51  ;;  %v11608_v60 = vld [vmem:[%s15332_s3 + $0x23c] ss:$20 sps:$4 sm:$0xff]  }
 0x57b   : > { %v5015_v26 = vpack.c.bf16 %v5013_v12, %v5012_v10  ;;  %6251 = vmatpush1.bf16.msra.mxu1 %v11561_v23  ;;  %v11603_v10 = vld [vmem:[%s15332_s3 + $0x230] ss:$20 sps:$4 sm:$0xff]   ;;  %v11606_v12 = vld [vmem:[%s15332_s3 + $0x238] ss:$20 sps:$4 sm:$0xff]  }
 0x57c   : > { %6252 = vmatprep.subr.bf16.mxu1 %v11569_v52 }
 0x57d   : > { %9997 = vmatmul.mubr.msk.bf16.vlgmr.msra.gmra.mrb[28].mxu0 %vm4578_vm11, %v5015_v26  ;;  %v11614_v26 = vld [vmem:[%s15332_s3 + $0x264] ss:$20 sps:$4 sm:$0xff]  }
 0x57e   : > { %6366 = vmatpush1.bf16.msra.mxu0 %v11522_v8 }
 0x57f   : > { %6367 = vmatprep.subr.bf16.mxu0 %v11530_v17  ;;  %6253 = vmatpush1.bf16.msra.mxu1 %v11567_v57  ;;  %v11615_v57 = vld [vmem:[%s15332_s3 + $0x280] ss:$20 sps:$4 sm:$0xff]  }
 0x580   : > { %6254 = vmatprep.subr.bf16.mxu1 %v11575_v38  ;;  %v11621_v38 = vld [vmem:[%s15332_s3 + $0x2a8] ss:$20 sps:$4 sm:$0xff]  }
 0x582   : > { %6368 = vmatpush1.bf16.msra.mxu0 %v11528_v41  ;;  %v11612_v41 = vld [vmem:[%s15332_s3 + $0x260] ss:$20 sps:$4 sm:$0xff]  }
 0x583   : > { %6369 = vmatprep.subr.bf16.mxu0 %v11536_v5  ;;  %6255 = vmatpush1.bf16.msra.mxu1 %v11573_v42  ;;  %v11629_v42 = vld [vmem:[%s15332_s3 + $0x2d4] ss:$20 sps:$4 sm:$0xff]  }
 0x584   : > { %6256 = vmatprep.subr.bf16.mxu1 %v11581_v50  ;;  %v11630_v50 = vld [vmem:[%s15332_s3 + $0x2d8] ss:$20 sps:$4 sm:$0xff]  }
 0x586   : > { %6370 = vmatpush1.bf16.msra.mxu0 %v11534_v15  ;;  %v11620_v15 = vld [vmem:[%s15332_s3 + $0x28c] ss:$20 sps:$4 sm:$0xff]  }
 0x587   : > { %6371 = vmatprep.subr.bf16.mxu0 %v11542_v45  ;;  %6257 = vmatpush1.bf16.msra.mxu1 %v11579_v48  ;;  %v11627_v48 = vld [vmem:[%s15332_s3 + $0x2d0] ss:$20 sps:$4 sm:$0xff]  }
 0x588   : > { %6258 = vmatprep.subr.bf16.mxu1 %v11587_v62  ;;  %v11633_v62 = vld [vmem:[%s15332_s3 + $0x2f8] ss:$20 sps:$4 sm:$0xff]  }
 0x58a   : > { %6372 = vmatpush1.bf16.msra.mxu0 %v11540_v35 }
 0x58b   : > { %6373 = vmatprep.subr.bf16.mxu0 %v11548_v36  ;;  %6259 = vmatpush1.bf16.msra.mxu1 %v11585_v0  ;;  %v11641_v0 = vld [vmem:[%s15332_s3 + $0x324] ss:$20 sps:$4 sm:$0xff]  }
 0x58c   : > { %6260 = vmatprep.subr.bf16.mxu1 %v11593_v56  ;;  %v11639_v56 = vld [vmem:[%s15332_s3 + $0x320] ss:$20 sps:$4 sm:$0xff]  }
 0x58e   : > { %6374 = vmatpush1.bf16.msra.mxu0 %v11546_v25 }
 0x58f   : > { %6375 = vmatprep.subr.bf16.mxu0 %v11554_v30  ;;  %6261 = vmatpush1.bf16.msra.mxu1 %v11591_v2  ;;  %v11647_v2 = vld [vmem:[%s15332_s3 + $0x34c] ss:$20 sps:$4 sm:$0xff]  }
 0x590   : > { %6262 = vmatprep.subr.bf16.mxu1 %v11599_v59  ;;  %v11645_v59 = vld [vmem:[%s15332_s3 + $0x348] ss:$20 sps:$4 sm:$0xff]  }
 0x592   : > { %6376 = vmatpush1.bf16.msra.mxu0 %v11552_v24 }
 0x593   : > { %6377 = vmatprep.subr.bf16.mxu0 %v11560_v46  ;;  %6263 = vmatpush1.bf16.msra.mxu1 %v11597_v3  ;;  %v11653_v3 = vld [vmem:[%s15332_s3 + $0x374] ss:$20 sps:$4 sm:$0xff]  }
 0x594   : > { %6264 = vmatprep.subr.bf16.mxu1 %v11605_v9  ;;  %v11651_v9 = vld [vmem:[%s15332_s3 + $0x370] ss:$20 sps:$4 sm:$0xff]  }
 0x596   : > { %6378 = vmatpush1.bf16.msra.mxu0 %v11558_v47 }
 0x597   : > { %6379 = vmatprep.subr.bf16.mxu0 %v11566_v53  ;;  %6265 = vmatpush1.bf16.msra.mxu1 %v11603_v10  ;;  %v11659_v10 = vld [vmem:[%s15332_s3 + $0x39c] ss:$20 sps:$4 sm:$0xff]  }
 0x598   : > { %6266 = vmatprep.subr.bf16.mxu1 %v11611_v14  ;;  %v11665_v14 = vld [vmem:[%s15332_s3 + $0x3c4] ss:$20 sps:$4 sm:$0xff]  }
 0x59a   : > { %6380 = vmatpush1.bf16.msra.mxu0 %v11564_v55  ;;  %v11618_v55 = vld [vmem:[%s15332_s3 + $0x288] ss:$20 sps:$4 sm:$0xff]  }
 0x59b   : > { %6381 = vmatprep.subr.bf16.mxu0 %v11572_v54  ;;  %6267 = vmatpush1.bf16.msra.mxu1 %v11609_v44  ;;  %v11623_v54 = vld [vmem:[%s15332_s3 + $0x2ac] ss:$20 sps:$4 sm:$0xff]   ;;  %v11666_v44 = vld [vmem:[%s15332_s3 + $0x3c8] ss:$20 sps:$4 sm:$0xff]  }
 0x59c   : > { %6279 = vmatprep.subr.bf16.mxu1 %v11617_v11  ;;  %v11669_v11 = vld [vmem:[%s15332_s3 + $0x3e8] ss:$20 sps:$4 sm:$0xff]  }
 0x59e   : > { %6382 = vmatpush1.bf16.msra.mxu0 %v11570_v58  ;;  %v11626_v58 = vld [vmem:[%s15332_s3 + $0x2b4] ss:$20 sps:$4 sm:$0xff]  }
 0x59f   : > { %6383 = vmatprep.subr.bf16.mxu0 %v11578_v40  ;;  %v11624_v40 = vld [vmem:[%s15332_s3 + $0x2b0] ss:$20 sps:$4 sm:$0xff]  }
 0x5a2   : > { %6384 = vmatpush1.bf16.msra.mxu0 %v11576_v32  ;;  %v11632_v32 = vld [vmem:[%s15332_s3 + $0x2dc] ss:$20 sps:$4 sm:$0xff]  }
 0x5a3   : > { %6385 = vmatprep.subr.bf16.mxu0 %v11584_v34  ;;  %v11638_v34 = vld [vmem:[%s15332_s3 + $0x304] ss:$20 sps:$4 sm:$0xff]  }
 0x5a6   : > { %6386 = vmatpush1.bf16.msra.mxu0 %v11582_v61  ;;  %v11635_v61 = vld [vmem:[%s15332_s3 + $0x2fc] ss:$20 sps:$4 sm:$0xff]  }
 0x5a7   : > { %6387 = vmatprep.subr.bf16.mxu0 %v11590_v63  ;;  %v11636_v63 = vld [vmem:[%s15332_s3 + $0x300] ss:$20 sps:$4 sm:$0xff]  }
 0x5aa   : > { %6388 = vmatpush1.bf16.msra.mxu0 %v11588_v43  ;;  %v11644_v43 = vld [vmem:[%s15332_s3 + $0x32c] ss:$20 sps:$4 sm:$0xff]  }
 0x5ab   : > { %6389 = vmatprep.subr.bf16.mxu0 %v11596_v1  ;;  %v11642_v1 = vld [vmem:[%s15332_s3 + $0x328] ss:$20 sps:$4 sm:$0xff]  }
 0x5ae   : > { %6390 = vmatpush1.bf16.msra.mxu0 %v11594_v37  ;;  %v11650_v37 = vld [vmem:[%s15332_s3 + $0x354] ss:$20 sps:$4 sm:$0xff]  }
 0x5af   : > { %6391 = vmatprep.subr.bf16.mxu0 %v11602_v4  ;;  %v11648_v4 = vld [vmem:[%s15332_s3 + $0x350] ss:$20 sps:$4 sm:$0xff]  }
 0x5b2   : > { %6392 = vmatpush1.bf16.msra.mxu0 %v11600_v6  ;;  %v11656_v6 = vld [vmem:[%s15332_s3 + $0x37c] ss:$20 sps:$4 sm:$0xff]  }
 0x5b3   : > { %6393 = vmatprep.subr.bf16.mxu0 %v11608_v60  ;;  %v11654_v60 = vld [vmem:[%s15332_s3 + $0x378] ss:$20 sps:$4 sm:$0xff]  }
 0x5b6   : > { %6394 = vmatpush1.bf16.msra.mxu0 %v11606_v12  ;;  %v11662_v12 = vld [vmem:[%s15332_s3 + $0x3a4] ss:$20 sps:$4 sm:$0xff]  }
 0x5b7   : > { %6395 = vmatprep.subr.bf16.mxu0 %v11614_v26  ;;  %v11668_v26 = vld [vmem:[%s15332_s3 + $0x3cc] ss:$20 sps:$4 sm:$0xff]  }
 0x5ba   : > { %6396 = vmatpush1.bf16.msra.mxu0 %v11612_v41  ;;  %v11671_v41 = vld [vmem:[%s15332_s3 + $0x3ec] ss:$20 sps:$4 sm:$0xff]  }
 0x5bb   : > { %6408 = vmatprep.subr.bf16.mxu0 %v11620_v15  ;;  %v11672_v15 = vld [vmem:[%s15332_s3 + $0x3f0] ss:$20 sps:$4 sm:$0xff]  }
 0x5e7   : > { %v4651_v13 = vpop.f32.mrb[20].mxu0 }
 0x5e8   : > { %v4653_v8 = vpop.f32.mrb[21].mxu0 }
 0x5e9   : > { %v4655_v17 = vpop.f32.mrb[22].mxu0 }
 0x5ea   : > { %v14493_v49 = vpack.c.bf16 %v4655_v17, %v4651_v13  ;;  %v4657_v5 = vpop.f32.mrb[23].mxu0  ;;  %v11657_v13 = vld [vmem:[%s15332_s3 + $0x398] ss:$20 sps:$4 sm:$0xff]   ;;  %v11663_v17 = vld [vmem:[%s15332_s3 + $0x3c0] ss:$20 sps:$4 sm:$0xff]  }
 0x5ef   : > { %v4850_v18 = vpop.f32.mrb[24].mxu0 }
 0x5f0   : > { %v4852_v45 = vpop.f32.mrb[25].mxu0 }
 0x5f1   : > { %v4854_v20 = vpop.f32.mrb[26].mxu0 }
 0x5f2   : > { %v10859_v35 = vpack.i.bf16 %v4854_v20, %v4850_v18  ;;  %v4856_v28 = vpop.f32.mrb[27].mxu0  ;;  %v11677_v18 = vld [vmem:[%s15332_s3 + $0x414] ss:$20 sps:$4 sm:$0xff]   ;;  %v11675_v20 = vld [vmem:[%s15332_s3 + $0x410] ss:$20 sps:$4 sm:$0xff]  }
 0x5f3   : > { %v10864_v36 = vpack.i.bf16 %v4856_v28, %v4852_v45  ;;  %v11680_v45 = vld [vmem:[%s15332_s3 + $0x41c] ss:$20 sps:$4 sm:$0xff]  }
 0x5f4   : > { %10860 = vrot.lane.b32.xlu0 %v10859_v35, %s12290_s18  ;;  %v11678_v35 = vld [vmem:[%s15332_s3 + $0x418] ss:$20 sps:$4 sm:$0xff]   ;;  %v11683_v28 = vld [vmem:[%s15332_s3 + $0x43c] ss:$20 sps:$4 sm:$0xff]  }
 0x5f5   : > { %10865 = vrot.lane.b32.xlu1 %v10864_v36, %s12290_s18  ;;  %v11686_v36 = vld [vmem:[%s15332_s3 + $0x444] ss:$20 sps:$4 sm:$0xff]  }
 0x650   : > { %v5062_v22 = vpop.f32.mrb[28].mxu0 }
 0x651   : > { %v5064_v25 = vpop.f32.mrb[29].mxu0 }
 0x652   : > { %v10869_v29 = vpack.i.bf16 %v5064_v25, %v5062_v22  ;;  %v5066_v30 = vpop.f32.mrb[30].mxu0  ;;  %v11681_v22 = vld [vmem:[%s15332_s3 + $0x438] ss:$20 sps:$4 sm:$0xff]   ;;  %v11684_v25 = vld [vmem:[%s15332_s3 + $0x440] ss:$20 sps:$4 sm:$0xff]  }
 0x653   : > { %v5068_v33 = vpop.f32.mrb[31].mxu0 }
 0x654   : > { %v10874_v24 = vpack.i.bf16 %v5068_v33, %v5066_v30  ;;  %10870 = vrot.lane.b32.xlu0 %v10869_v29, %s12291_s14  ;;  %v11689_v29 = vld [vmem:[%s15332_s3 + $0x464] ss:$20 sps:$4 sm:$0xff]   ;;  %v11692_v30 = vld [vmem:[%s15332_s3 + $0x46c] ss:$20 sps:$4 sm:$0xff]  }
 0x655   : > { %v11687_v33 = vld [vmem:[%s15332_s3 + $0x460] ss:$20 sps:$4 sm:$0xff]  }
 0x656   : > { %10875 = vrot.lane.b32.xlu1 %v10874_v24, %s12291_s14  ;;  %v11690_v24 = vld [vmem:[%s15332_s3 + $0x468] ss:$20 sps:$4 sm:$0xff]  }
 0x666   : > { %v14501_v51 = vpop.permute.xlu0 %10860 }
 0x667   : > { %v10863_v46 = vunpack.i.h.bf16 %v14501_v51  ;;  %v10862_v23 = vunpack.i.l.bf16 %v14501_v51 }
 0x669   : > { %v5110_v47 = vsel %vm4492_vm3, %v4653_v8, %v10862_v23  ;;  %v5111_v52 = vsel %vm4492_vm3, %v4657_v5, %v10863_v46  ;;  %v11660_v8 = vld [vmem:[%s15332_s3 + $0x3a0] ss:$20 sps:$4 sm:$0xff]  }
 0x66a   : > { %v14511_v53 = vpack.c.bf16 %v5111_v52, %v5110_v47  ;;  %v11674_v5 = vld [vmem:[%s15332_s3 + $0x3f4] ss:$20 sps:$4 sm:$0xff]   ;;  %v11695_v47 = vld [vmem:[%s15332_s3 + $0x48c] ss:$20 sps:$4 sm:$0xff]  }
 0x66b   : > { %v11698_v52 = vld [vmem:[%s15332_s3 + $0x494] ss:$20 sps:$4 sm:$0xff]  }
 0x66c   : > { %6268 = vmatprep.mubr.bf16.mxu1 %v14511_v53  ;;  %6397 = vmatprep.mubr.bf16.mxu0 %v14511_v53 }
 0x66d   : > { %6269 = vmatmul.mubr.bf16.vlgmr.msra.gmra.mrb[28].mxu1 %v14493_v49  ;;  %6398 = vmatmul.mubr.bf16.vlgmr.msra.gmra.mrb[32].mxu0 %v14493_v49 }
 0x66e   : > { %6280 = vmatpush1.bf16.msra.mxu1 %v11615_v57  ;;  %6409 = vmatpush1.bf16.msra.mxu0 %v11618_v55  ;;  %v11693_v57 = vld [vmem:[%s15332_s3 + $0x488] ss:$20 sps:$4 sm:$0xff]   ;;  %v11696_v55 = vld [vmem:[%s15332_s3 + $0x490] ss:$20 sps:$4 sm:$0xff]  }
 0x66f   : > { %6281 = vmatprep.subr.bf16.mxu1 %v11623_v54  ;;  %6410 = vmatprep.subr.bf16.mxu0 %v11626_v58  ;;  %v11701_v54 = vld [vmem:[%s15332_s3 + $0x4b4] ss:$20 sps:$4 sm:$0xff]   ;;  %v11704_v58 = vld [vmem:[%s15332_s3 + $0x4bc] ss:$20 sps:$4 sm:$0xff]  }
 0x672   : > { %6282 = vmatpush1.bf16.msra.mxu1 %v11621_v38  ;;  %6411 = vmatpush1.bf16.msra.mxu0 %v11624_v40  ;;  %v11699_v38 = vld [vmem:[%s15332_s3 + $0x4b0] ss:$20 sps:$4 sm:$0xff]   ;;  %v11702_v40 = vld [vmem:[%s15332_s3 + $0x4b8] ss:$20 sps:$4 sm:$0xff]  }
 0x673   : > { %6283 = vmatprep.subr.bf16.mxu1 %v11629_v42  ;;  %6412 = vmatprep.subr.bf16.mxu0 %v11632_v32  ;;  %v11707_v42 = vld [vmem:[%s15332_s3 + $0x4dc] ss:$20 sps:$4 sm:$0xff]   ;;  %v11710_v32 = vld [vmem:[%s15332_s3 + $0x4e4] ss:$20 sps:$4 sm:$0xff]  }
 0x676   : > { %6284 = vmatpush1.bf16.msra.mxu1 %v11627_v48  ;;  %6413 = vmatpush1.bf16.msra.mxu0 %v11630_v50  ;;  %v11705_v48 = vld [vmem:[%s15332_s3 + $0x4d8] ss:$20 sps:$4 sm:$0xff]   ;;  %v11708_v50 = vld [vmem:[%s15332_s3 + $0x4e0] ss:$20 sps:$4 sm:$0xff]  }
 0x677   : > { %6285 = vmatprep.subr.bf16.mxu1 %v11635_v61  ;;  %6414 = vmatprep.subr.bf16.mxu0 %v11638_v34  ;;  %v11713_v61 = vld [vmem:[%s15332_s3 + $0x504] ss:$20 sps:$4 sm:$0xff]   ;;  %v11716_v34 = vld [vmem:[%s15332_s3 + $0x50c] ss:$20 sps:$4 sm:$0xff]  }
 0x67a   : > { %6286 = vmatpush1.bf16.msra.mxu1 %v11633_v62  ;;  %6415 = vmatpush1.bf16.msra.mxu0 %v11636_v63  ;;  %v10866_v62 = vpop.permute.xlu1 %10865 }
 0x67b   : > { %6287 = vmatprep.subr.bf16.mxu1 %v11641_v0  ;;  %6416 = vmatprep.subr.bf16.mxu0 %v11644_v43  ;;  %v10868_v63 = vunpack.i.h.bf16 %v10866_v62  ;;  %v10867_v0 = vunpack.i.l.bf16 %v10866_v62  ;;  %v11748_v62 = vld [vmem:[%s15332_s3 + $0x380] ss:$20 sps:$4 sm:$0xff]  }
 0x67e   : > { %6288 = vmatpush1.bf16.msra.mxu1 %v11639_v56  ;;  %6417 = vmatpush1.bf16.msra.mxu0 %v11642_v1  ;;  %v5312_v56 = vld [vmem:[%s15332_s3 + $0x528] sm:$0x33]  ;;  %v5313_v1 = vld [vmem:[%s15332_s3 + $0x530] sm:$0x33] }
 0x67f   : > { %6289 = vmatprep.subr.bf16.mxu1 %v11647_v2  ;;  %6418 = vmatprep.subr.bf16.mxu0 %v11650_v37 }
 0x682   : > { %6290 = vmatpush1.bf16.msra.mxu1 %v11645_v59  ;;  %6419 = vmatpush1.bf16.msra.mxu0 %v11648_v4 }
 0x683   : > { %6291 = vmatprep.subr.bf16.mxu1 %v11653_v3  ;;  %6420 = vmatprep.subr.bf16.mxu0 %v11656_v6  ;;  %v10164_v6 = vcombine.high %v5312_v56, %v5312_v56 }
 0x685   : > { %v6225_v51 = vand.u32 %v10164_v6, %v13126_v27 }
 0x686   : > { %6292 = vmatpush1.bf16.msra.mxu1 %v11651_v9  ;;  %6421 = vmatpush1.bf16.msra.mxu0 %v11654_v60  ;;  %v10166_v9 = vcombine.high %v5313_v1, %v5313_v1  ;;  %v5084_v60 = vsel %vm4492_vm3, %v10863_v46, %v10868_v63  ;;  %v10163_v46 = vcombine.low %v5312_v56, %v5312_v56  ;;  %v11749_v63 = vld [vmem:[%s15332_s3 + $0x268] ss:$20 sps:$4 sm:$0xff]  }
 0x687   : > { %6293 = vmatprep.subr.bf16.mxu1 %v11659_v10  ;;  %6422 = vmatprep.subr.bf16.mxu0 %v11662_v12  ;;  %v5083_v10 = vsel %vm4492_vm3, %v10862_v23, %v10867_v0  ;;  %v11750_v0 = vld [vmem:[%s15332_s3 + $0x4e8] ss:$20 sps:$4 sm:$0xff]  }
 0x688   : > { %v6231_v23 = vand.u32 %v10166_v9, %v13126_v27  ;;  %v11752_v56 = vld [vmem:[%s15332_s3 + $0x3a8] ss:$20 sps:$4 sm:$0xff]  }
 0x68a   : > { %6294 = vmatpush1.bf16.msra.mxu1 %v11657_v13  ;;  %6423 = vmatpush1.bf16.msra.mxu0 %v11660_v8 }
 0x68b   : > { %6295 = vmatprep.subr.bf16.mxu1 %v11665_v14  ;;  %6424 = vmatprep.subr.bf16.mxu0 %v11668_v26 }
 0x68e   : > { %6296 = vmatpush1.bf16.msra.mxu1 %v11663_v17  ;;  %6425 = vmatpush1.bf16.msra.mxu0 %v11666_v44  ;;  %v11711_v44 = vld [vmem:[%s15332_s3 + $0x500] ss:$20 sps:$4 sm:$0xff]  }
 0x68f   : > { %6297 = vmatprep.subr.bf16.mxu1 %v11671_v41  ;;  %6426 = vmatprep.subr.bf16.mxu0 %v11674_v5  ;;  %v11714_v41 = vld [vmem:[%s15332_s3 + $0x508] ss:$20 sps:$4 sm:$0xff]   ;;  %v10165_v5 = vcombine.low %v5313_v1, %v5313_v1  ;;  %v11753_v1 = vld [vmem:[%s15332_s3 + $0x510] ss:$20 sps:$4 sm:$0xff]  }
 0x692   : > { %6298 = vmatpush1.bf16.msra.mxu1 %v11669_v11  ;;  %6427 = vmatpush1.bf16.msra.mxu0 %v11672_v15  ;;  %v6222_v11 = vand.u32 %v10163_v46, %v13126_v27  ;;  %v6228_v15 = vand.u32 %v10165_v5, %v13126_v27  ;;  %v11784_v46 = vld [vmem:[%s15329_s0] sm:$0xff] }
 0x693   : > { %6299 = vmatprep.subr.bf16.mxu1 %v11677_v18  ;;  %6428 = vmatprep.subr.bf16.mxu0 %v11680_v45  ;;  %v11721_v18 = vld [vmem:[%s15332_s3 + $0x150] ss:$20 sps:$4 sm:$0xff]  }
 0x694   : > { %v11722_v45 = vld [vmem:[%s15332_s3 + $0x3d0] ss:$20 sps:$4 sm:$0xff]  }
 0x696   : > { %6300 = vmatpush1.bf16.msra.mxu1 %v11675_v20  ;;  %6429 = vmatpush1.bf16.msra.mxu0 %v11678_v35  ;;  %v11723_v20 = vld [vmem:[%s15332_s3 + $0x10] ss:$20 sps:$4 sm:$0xff]  }
 0x697   : > { %6301 = vmatprep.subr.bf16.mxu1 %v11683_v28  ;;  %6430 = vmatprep.subr.bf16.mxu0 %v11686_v36  ;;  %v11724_v35 = vld [vmem:[%s15332_s3 + $0x290] ss:$20 sps:$4 sm:$0xff]   ;;  %v11725_v36 = vld [vmem:[%s15332_s3 + $0x178] ss:$20 sps:$4 sm:$0xff]  }
 0x69a   : > { %6302 = vmatpush1.bf16.msra.mxu1 %v11681_v22  ;;  %6431 = vmatpush1.bf16.msra.mxu0 %v11684_v25  ;;  %v11727_v22 = vld [vmem:[%s15332_s3 + $0x38] ss:$20 sps:$4 sm:$0xff]  }
 0x69b   : > { %6303 = vmatprep.subr.bf16.mxu1 %v11689_v29  ;;  %6432 = vmatprep.subr.bf16.mxu0 %v11692_v30  ;;  %v11728_v25 = vld [vmem:[%s15332_s3 + $0x2b8] ss:$20 sps:$4 sm:$0xff]   ;;  %v11729_v29 = vld [vmem:[%s15332_s3 + $0x1a0] ss:$20 sps:$4 sm:$0xff]  }
 0x69c   : > { %v11730_v30 = vld [vmem:[%s15332_s3 + $0x420] ss:$20 sps:$4 sm:$0xff]  }
 0x69e   : > { %6304 = vmatpush1.bf16.msra.mxu1 %v11687_v33  ;;  %6433 = vmatpush1.bf16.msra.mxu0 %v11690_v24  ;;  %v11731_v33 = vld [vmem:[%s15332_s3 + $0x60] ss:$20 sps:$4 sm:$0xff]   ;;  %v11733_v24 = vld [vmem:[%s15332_s3 + $0x1c8] ss:$20 sps:$4 sm:$0xff]  }
 0x69f   : > { %6305 = vmatprep.subr.bf16.mxu1 %v11695_v47  ;;  %6434 = vmatprep.subr.bf16.mxu0 %v11698_v52  ;;  %v11734_v47 = vld [vmem:[%s15332_s3 + $0x448] ss:$20 sps:$4 sm:$0xff]  }
 0x6a0   : > { %v11735_v52 = vld [vmem:[%s15332_s3 + $0x88] ss:$20 sps:$4 sm:$0xff]  }
 0x6a2   : > { %6306 = vmatpush1.bf16.msra.mxu1 %v11693_v57  ;;  %6435 = vmatpush1.bf16.msra.mxu0 %v11696_v55  ;;  %v11736_v57 = vld [vmem:[%s15332_s3 + $0x308] ss:$20 sps:$4 sm:$0xff]   ;;  %v11737_v55 = vld [vmem:[%s15332_s3 + $0x1f0] ss:$20 sps:$4 sm:$0xff]  }
 0x6a3   : > { %6307 = vmatprep.subr.bf16.mxu1 %v11701_v54  ;;  %6436 = vmatprep.subr.bf16.mxu0 %v11704_v58  ;;  %v11738_v54 = vld [vmem:[%s15332_s3 + $0x470] ss:$20 sps:$4 sm:$0xff]  }
 0x6a4   : > { %v11739_v58 = vld [vmem:[%s15332_s3 + $0xb0] ss:$20 sps:$4 sm:$0xff]  }
 0x6a6   : > { %6308 = vmatpush1.bf16.msra.mxu1 %v11699_v38  ;;  %6437 = vmatpush1.bf16.msra.mxu0 %v11702_v40  ;;  %v11740_v38 = vld [vmem:[%s15332_s3 + $0x330] ss:$20 sps:$4 sm:$0xff]   ;;  %v11741_v40 = vld [vmem:[%s15332_s3 + $0x218] ss:$20 sps:$4 sm:$0xff]  }
 0x6a7   : > { %6309 = vmatprep.subr.bf16.mxu1 %v11707_v42  ;;  %6438 = vmatprep.subr.bf16.mxu0 %v11710_v32  ;;  %v11742_v42 = vld [vmem:[%s15332_s3 + $0x498] ss:$20 sps:$4 sm:$0xff]  }
 0x6a8   : > { %v11743_v32 = vld [vmem:[%s15332_s3 + $0xd8] ss:$20 sps:$4 sm:$0xff]  }
 0x6aa   : > { %6310 = vmatpush1.bf16.msra.mxu1 %v11705_v48  ;;  %6439 = vmatpush1.bf16.msra.mxu0 %v11708_v50  ;;  %v11744_v48 = vld [vmem:[%s15332_s3 + $0x358] ss:$20 sps:$4 sm:$0xff]   ;;  %v11745_v50 = vld [vmem:[%s15332_s3 + $0x240] ss:$20 sps:$4 sm:$0xff]  }
 0x6ab   : > { %6322 = vmatprep.subr.bf16.mxu1 %v11713_v61  ;;  %6451 = vmatprep.subr.bf16.mxu0 %v11716_v34  ;;  %v11746_v61 = vld [vmem:[%s15332_s3 + $0x4c0] ss:$20 sps:$4 sm:$0xff]  }
 0x6ac   : > { %v11747_v34 = vld [vmem:[%s15332_s3 + $0x100] ss:$20 sps:$4 sm:$0xff]  }
 0x6c6   : > { %v10871_v43 = vpop.permute.xlu0 %10870 }
 0x6c7   : > { %v10873_v2 = vunpack.i.h.bf16 %v10871_v43  ;;  %v10872_v37 = vunpack.i.l.bf16 %v10871_v43  ;;  %v11751_v43 = vld [vmem:[%s15332_s3 + $0x128] ss:$20 sps:$4 sm:$0xff]  }
 0x6c8   : > { %v10876_v59 = vpop.permute.xlu1 %10875 }
 0x6c9   : > { %v10878_v4 = vunpack.i.h.bf16 %v10876_v59  ;;  %v10877_v3 = vunpack.i.l.bf16 %v10876_v59  ;;  %v5112_v12 = vsel %vm5101_vm15, %v5083_v10, %v10872_v37  ;;  %v5102_v8 = vsel %vm5101_vm15, %v10872_v37, %v10873_v2  ;;  %v11783_v37 = vld [vmem:[#allocation3] sm:$0xff] }
 0x6cb   : > { %v5113_v13 = vsel %vm5101_vm15, %v5084_v60, %v10877_v3  ;;  %v5103_v14 = vsel %vm5101_vm15, %v10877_v3, %v10878_v4  ;;  %v14749_v28 = vpack.c.bf16 %v10878_v4, %v10873_v2  ;;  %v11754_v2 = vld [vmem:[%s15332_s3 + $0x538] ss:$0 sps:$4 sm:$0x33]  }
 0x6cc   : > { %v14721_v26 = vpack.c.bf16 %v5113_v13, %v5112_v12  ;;  %v5318_v17 = vpack.c.bf16 %v5103_v14, %v5102_v8  ;;  %v6234_v59 = vand.u32 %v11754_v2, %v13126_v27  ;;  %v5320_v13 = vld [vmem:[%s15333_s4] sm:$0x1f]  ;;  %v11790_v2 = vld [vmem:[%s15329_s0 + $0x18] sm:$0xff] }
 0x6cd   : > { %v5325_v27 = vrot.slane %v5320_v13, %v14184_v19  ;;  %v5329_v8 = vrot.slane %v5320_v13, %v14056_v7 }
 0x6ce   : > { %6311 = vmatprep.mubr.bf16.mxu1 %v5318_v17  ;;  %6440 = vmatprep.mubr.bf16.mxu0 %v5318_v17 }
 0x6cf   : > { %6312 = vmatmul.mubr.bf16.vlgmr.msra.gmra.mrb[28].mxu1 %v14721_v26  ;;  %6441 = vmatmul.mubr.bf16.vlgmr.msra.gmra.mrb[32].mxu0 %v14721_v26 }
 0x6d0   : > { %6323 = vmatpush1.bf16.msra.mxu1 %v11711_v44  ;;  %6452 = vmatpush1.bf16.msra.mxu0 %v11714_v41 }
 0x6d1   : > { %6324 = vmatprep.subr.bf16.mxu1 %v6225_v51  ;;  %6453 = vmatprep.subr.bf16.mxu0 %v6231_v23  ;;  %v11785_v51 = vld [vmem:[%s15329_s0 + $0x8] sm:$0xff] }
 0x6d2   : > { %6354 = vmatprep.mubr.bf16.mxu1 %v12279_v39  ;;  %6483 = vmatprep.mubr.bf16.mxu0 %v12279_v39  ;;  %v11726_v39 = vld [vmem:[%s15332_s3 + $0x3f8] ss:$20 sps:$4 sm:$0xff]  }
 0x6d4   : > { %6325 = vmatpush1.bf16.msra.mxu1 %v6222_v11  ;;  %6454 = vmatpush1.bf16.msra.mxu0 %v6228_v15 }
 0x6d5   : > { %10522 = vmatprep.subr.bf16.mxu1 %v11721_v18  ;;  %10544 = vmatprep.subr.bf16.mxu0 %v11722_v45  ;;  %v5341_v18 = vrot.slane %v5320_v13, %v14078_v16 }
 0x6db   : > { %10168 = vmatmul.mubr.msk.bf16.vlgmr.msra.gmra.mrb[28].mxu1 %vm3527_vm2, %v14749_v28  ;;  %10169 = vmatmul.mubr.msk.bf16.vlgmr.msra.gmra.mrb[32].mxu0 %vm3527_vm2, %v14749_v28 }
 0x6dc   : > { %10523 = vmatpush3.bf16.msra.mxu1 %v11723_v20  ;;  %10545 = vmatpush3.bf16.msra.mxu0 %v11724_v35  ;;  %v5337_v20 = vrot.slane %v5320_v13, %v14207_v31 }
 0x6dd   : > { %6526 = vmatprep.mubr.bf16.mxu1 %v14511_v53  ;;  %6567 = vmatprep.mubr.bf16.mxu0 %v5318_v17  ;;  %v11732_v53 = vld [vmem:[%s15332_s3 + $0x2e0] ss:$20 sps:$4 sm:$0xff]   ;;  %v5333_v17 = vrot.slane %v5320_v13, %v14087_v21  ;;  %v11793_v13 = vld [vmem:[%s15329_s0 + $0x48] sm:$0xff] }
 0x6de   : > { %10524 = vmatprep.subr.bf16.mxu1 %v11725_v36  ;;  %10546 = vmatprep.subr.bf16.mxu0 %v11726_v39  ;;  %v11786_v36 = vld [vmem:[%s15329_s0 + $0x28] sm:$0xff] }
 0x6e0   : > { %10525 = vmatpush3.bf16.msra.mxu1 %v11727_v22  ;;  %10547 = vmatpush3.bf16.msra.mxu0 %v11728_v25  ;;  %v11787_v22 = vld [vmem:[%s15329_s0 + $0x30] sm:$0xff] }
 0x6e1   : > { %10526 = vmatprep.subr.bf16.mxu1 %v11729_v29  ;;  %10548 = vmatprep.subr.bf16.mxu0 %v11730_v30 }
 0x6e4   : > { %10527 = vmatpush3.bf16.msra.mxu1 %v11731_v33  ;;  %10549 = vmatpush3.bf16.msra.mxu0 %v11732_v53 }
 0x6e5   : > { %10528 = vmatprep.subr.bf16.mxu1 %v11733_v24  ;;  %10550 = vmatprep.subr.bf16.mxu0 %v11734_v47 }
 0x6e8   : > { %10529 = vmatpush3.bf16.msra.mxu1 %v11735_v52  ;;  %10551 = vmatpush3.bf16.msra.mxu0 %v11736_v57 }
 0x6e9   : > { %10530 = vmatprep.subr.bf16.mxu1 %v11737_v55  ;;  %10552 = vmatprep.subr.bf16.mxu0 %v11738_v54 }
 0x6ec   : > { %10531 = vmatpush3.bf16.msra.mxu1 %v11739_v58  ;;  %10553 = vmatpush3.bf16.msra.mxu0 %v11740_v38 }
 0x6ed   : > { %10532 = vmatprep.subr.bf16.mxu1 %v11741_v40  ;;  %10554 = vmatprep.subr.bf16.mxu0 %v11742_v42  ;;  %v11788_v40 = vld [vmem:[%s15329_s0 + $0x10] sm:$0xff] }
 0x6f0   : > { %10533 = vmatpush3.bf16.msra.mxu1 %v11743_v32  ;;  %10555 = vmatpush3.bf16.msra.mxu0 %v11744_v48 }
 0x6f1   : > { %10534 = vmatprep.subr.bf16.mxu1 %v11745_v50  ;;  %10556 = vmatprep.subr.bf16.mxu0 %v11746_v61  ;;  %v11789_v61 = vld [vmem:[%s15329_s0 + $0x38] sm:$0xff] }
 0x6f4   : > { %10535 = vmatpush3.bf16.msra.mxu1 %v11747_v34  ;;  %10557 = vmatpush3.bf16.msra.mxu0 %v11748_v62 }
 0x6f5   : > { %10536 = vmatprep.subr.bf16.mxu1 %v11749_v63  ;;  %10558 = vmatprep.subr.bf16.mxu0 %v11750_v0 }
 0x6f8   : > { %10537 = vmatpush3.bf16.msra.mxu1 %v11751_v43  ;;  %10559 = vmatpush3.bf16.msra.mxu0 %v11752_v56 }
 0x6f9   : > { %10621 = vmatprep.subr.bf16.mxu1 %v11783_v37 }
 0x6fb   : > { %6527 = vmatmul.mubr.bf16.vlgmr.msra.gmra.mrb[32].mxu1 %v14493_v49  ;;  %6568 = vmatmul.mubr.bf16.vlgmr.msra.gmra.mrb[36].mxu0 %v14721_v26 }
 0x6fc   : > { %10622 = vmatpush3.bf16.msra.mxu1 %v11753_v1  ;;  %10625 = vmatprep.mubr.msk.bf16.mxu1 %vm12284_vm4, %v11783_v37 }
 0x6fd   : > { %10623 = vmatprep.subr.bf16.mxu1 %v11783_v37 }
 0x700   : > { %10624 = vmatpush3.bf16.msra.mxu1 %v6234_v59 }
 0x703   : > { %10626 = vmatmul.mubr.msk.bf16.vlgmr.msra.gmra.mrb[36].mxu1 %vm3527_vm2, %v14749_v28 }
 0x7ae   : > { %v6356_v4 = vpop.f32.mrb[28].mxu1  ;;  %v6485_v3 = vpop.f32.mrb[32].mxu0 }
 0x7af   : > { %v6358_v6 = vpop.f32.mrb[29].mxu1  ;;  %v6487_v9 = vpop.f32.mrb[33].mxu0  ;;  %v10668_v14 = vadd.f32 %v6356_v4, %v5325_v27  ;;  %v10672_v45 = vadd.f32 %v6485_v3, %v5333_v17  ;;  %v11791_v3 = vld [vmem:[%s15329_s0 + $0x20] sm:$0xff] }
 0x7b0   : > { %v6360_v60 = vpop.f32.mrb[30].mxu1  ;;  %v6489_v10 = vpop.f32.mrb[34].mxu0  ;;  %v10669_v26 = vadd.f32 %v6358_v6, %v5329_v8  ;;  %v10673_v38 = vadd.f32 %v6487_v9, %v5337_v20 }
 0x7b1   : > { %v6362_v12 = vpop.f32.mrb[31].mxu1  ;;  %v6491_v49 = vpop.f32.mrb[35].mxu0  ;;  %v10670_v44 = vadd.f32 %v6360_v60, %v5325_v27  ;;  %v14861_v5 = vadd.f32 %v11784_v46, %v10668_v14  ;;  %v10674_v24 = vadd.f32 %v6489_v10, %v5333_v17  ;;  %v6619_v42 = vadd.f32 %v11788_v40, %v10672_v45  ;;  %v11792_v10 = vld [vmem:[%s15329_s0 + $0x40] sm:$0xff] }
 0x7b2   : > { %v10671_v41 = vadd.f32 %v6362_v12, %v5329_v8  ;;  %v6618_v23 = vadd.f32 %v11785_v51, %v10669_v26  ;;  %v10675_v62 = vadd.f32 %v6491_v49, %v5337_v20  ;;  %v6620_v37 = vadd.f32 %v11790_v2, %v10673_v38  ;;  %v6628_v2 = vld [vmem:[%s15335_s6] sm:$0x1f] }
 0x7b3   : > { %v6622_v39 = vadd.f32 %v11786_v36, %v10670_v44  ;;  %v6624_v34 = vadd.f32 %v11789_v61, %v10674_v24 }
 0x7b4   : > { %v6623_v25 = vadd.f32 %v11787_v22, %v10671_v41  ;;  %v6629_v57 = vadd.f32 %v6618_v23, %v14861_v5  ;;  %v6625_v12 = vadd.f32 %v11792_v10, %v10675_v62  ;;  %v6740_v10 = vrot.slane %v6628_v2, %v14056_v7 }
 0x7b6   : > { %v6636_v32 = vadd.f32 %v6623_v25, %v6622_v39  ;;  %v6630_v43 = vadd.f32 %v6629_v57, %v6619_v42 }
 0x7b8   : > { %v6637_v4 = vadd.f32 %v6636_v32, %v6624_v34  ;;  %v6631_v49 = vadd.f32 %v6630_v43, %v6620_v37 }
 0x7ba   : > { %v6638_v26 = vadd.f32 %v6637_v4, %v6625_v12 }
 0x7ce   : > { %v10538_v11 = vpop.f32.mrb[32].mxu1  ;;  %v10560_v15 = vpop.f32.mrb[36].mxu0 }
 0x7cf   : > { %v10539_v35 = vpop.f32.mrb[33].mxu1  ;;  %v10561_v28 = vpop.f32.mrb[37].mxu0 }
 0x7d0   : > { %v10540_v29 = vadd.f32 %v10539_v35, %v10538_v11  ;;  %v10562_v30 = vadd.f32 %v10561_v28, %v10560_v15  ;;  %v10541_v33 = vpop.f32.mrb[34].mxu1  ;;  %v10563_v53 = vpop.f32.mrb[38].mxu0 }
 0x7d1   : > { %v10542_v47 = vpop.f32.mrb[35].mxu1  ;;  %v10564_v52 = vpop.f32.mrb[39].mxu0 }
 0x7d2   : > { %v6529_v55 = vadd.f32 %v10540_v29, %v5341_v18  ;;  %v10543_v54 = vadd.f32 %v10542_v47, %v10541_v33  ;;  %v10565_v58 = vadd.f32 %v10564_v52, %v10563_v53 }
 0x7d4   : > { %v6532_v48 = vadd.f32 %v10543_v54, %v5341_v18  ;;  %v6570_v50 = vadd.f32 %v10562_v30, %v6529_v55 }
 0x7d6   : > { %v6610_v63 = vpop.f32.mrb[36].mxu1  ;;  %v6573_v0 = vadd.f32 %v10565_v58, %v6532_v48 }
 0x7d7   : > { %v6611_v56 = vadd.f32 %v6610_v63, %v6570_v50  ;;  %v10627_v1 = vpop.f32.mrb[37].mxu1 }
 0x7d8   : > { %v6613_v59 = vpop.f32.mrb[38].mxu1  ;;  %v6627_v1 = vld [vmem:[%s15334_s5] sm:$0x1f] }
 0x7d9   : > { %v6621_v6 = vadd.f32 %v11791_v3, %v6611_v56  ;;  %v6614_v9 = vadd.f32 %v6613_v59, %v6573_v0  ;;  %v10628_v60 = vpop.f32.mrb[39].mxu1  ;;  %v6736_v59 = vrot.slane %v6628_v2, %v14184_v19  ;;  %v6708_v4 = vrot.slane %v6627_v1, %v14087_v21 }
 0x7da   : > { %v6704_v3 = vrot.slane %v6627_v1, %v14056_v7  ;;  %v6744_v60 = vrot.slane %v6628_v2, %v14087_v21 }
 0x7db   : > { %v6626_v27 = vadd.f32 %v11793_v13, %v6614_v9  ;;  %v6632_v8 = vsel %vm3527_vm2, %v6621_v6, 0.0 }
 0x7dc   : > { %v6633_v14 = vadd.f32 %v6632_v8, %v6631_v49  ;;  %v6716_v49 = vrot.slane %v6627_v1, %v14078_v16 }
 0x7dd   : > { %v6639_v17 = vsel %vm3527_vm2, %v6626_v27, 0.0 }
 0x7de   : > { %6634 = vadd.xlane.f32.xlu0 %v6633_v14  ;;  %v6640_v44 = vadd.f32 %v6639_v17, %v6638_v26 }
 0x7e0   : > { %6641 = vadd.xlane.f32.xlu1 %v6640_v44 }
 0x86b   : > { %v6635_v41 = vpop.xlane.xlu0 %6634 }
 0x86c   : > { %v6644_v46 = vmul.f32 0.0018832391, %v6635_v41 }
 0x86d   : > { %v6642_v51 = vpop.xlane.xlu1 %6641 }
 0x86e   : > { %v6645_v11 = vmul.f32 0.0018832391, %v6642_v51  ;;  %v6646_v15 = vsub.f32 %v14861_v5, %v6644_v46  ;;  %v6647_v18 = vsub.f32 %v6618_v23, %v6644_v46  ;;  %v6648_v45 = vsub.f32 %v6619_v42, %v6644_v46 }
 0x86f   : > { %v6650_v20 = vsub.f32 %v6621_v6, %v6644_v46  ;;  %v6649_v35 = vsub.f32 %v6620_v37, %v6644_v46  ;;  %v6700_v37 = vrot.slane %v6627_v1, %v14184_v19  ;;  %v6712_v6 = vrot.slane %v6627_v1, %v14207_v31 }
 0x870   : > { %v6656_v28 = vmul.f32 %v6646_v15, %v6646_v15  ;;  %v6657_v36 = vmul.f32 %v6647_v18, %v6647_v18  ;;  %v6651_v22 = vsub.f32 %v6622_v39, %v6645_v11  ;;  %v6652_v29 = vsub.f32 %v6623_v25, %v6645_v11 }
 0x871   : > { %v6653_v30 = vsub.f32 %v6624_v34, %v6645_v11  ;;  %v6658_v33 = vmul.f32 %v6648_v45, %v6648_v45  ;;  %v6660_v47 = vmul.f32 %v6650_v20, %v6650_v20  ;;  %v6654_v52 = vsub.f32 %v6625_v12, %v6645_v11 }
 0x872   : > { %v6666_v53 = vadd.f32 %v6657_v36, %v6656_v28  ;;  %v6661_v24 = vmul.f32 %v6651_v22, %v6651_v22  ;;  %v6655_v57 = vsub.f32 %v6626_v27, %v6645_v11  ;;  %v6662_v55 = vmul.f32 %v6652_v29, %v6652_v29 }
 0x873   : > { %v6659_v54 = vmul.f32 %v6649_v35, %v6649_v35  ;;  %v6663_v38 = vmul.f32 %v6653_v30, %v6653_v30  ;;  %v6669_v40 = vsel %vm3527_vm2, %v6660_v47, 0.0  ;;  %v6664_v42 = vmul.f32 %v6654_v52, %v6654_v52 }
 0x874   : > { %v6667_v58 = vadd.f32 %v6666_v53, %v6658_v33  ;;  %v6673_v5 = vadd.f32 %v6662_v55, %v6661_v24  ;;  %v6665_v32 = vmul.f32 %v6655_v57, %v6655_v57  ;;  %v6748_v12 = vrot.slane %v6628_v2, %v14207_v31 }
 0x875   : > { %v6752_v19 = vrot.slane %v6628_v2, %v14078_v16 }
 0x876   : > { %v6668_v23 = vadd.f32 %v6667_v58, %v6659_v54  ;;  %v6674_v48 = vadd.f32 %v6673_v5, %v6663_v38  ;;  %v6676_v50 = vsel %vm3527_vm2, %v6665_v32, 0.0 }
 0x878   : > { %v6670_v39 = vadd.f32 %v6669_v40, %v6668_v23  ;;  %v6675_v25 = vadd.f32 %v6674_v48, %v6664_v42 }
 0x87a   : > { %6671 = vadd.xlane.f32.xlu0 %v6670_v39  ;;  %v6677_v61 = vadd.f32 %v6676_v50, %v6675_v25 }
 0x87e   : > { %6678 = vadd.xlane.f32.xlu0 %v6677_v61 }
 0x907   : > { %v6672_v34 = vpop.xlane.xlu0 %6671 }
 0x908   : > { %v6680_v62 = vmul.f32 0.0018832391, %v6672_v34 }
 0x90a   : > { %v6682_v63 = vadd.f32 1e-05, %v6680_v62 }
 0x90b   : > { %v6679_v0 = vpop.xlane.xlu0 %6678 }
 0x90c   : > { %11779 = vrsqrt.f32 %v6682_v63  ;;  %v6681_v43 = vmul.f32 0.0018832391, %v6679_v0 }
 0x90e   : > { %v6683_v56 = vadd.f32 1e-05, %v6681_v43 }
 0x910   : > { %11781 = vrsqrt.f32 %v6683_v56 }
 0x916   : > { %v11780_v9 = vpop.eup %11779 }
 0x917   : > { %v6686_v13 = vmul.f32 %v11780_v9, %v6646_v15  ;;  %v6687_v27 = vmul.f32 %v11780_v9, %v6647_v18  ;;  %v6688_v8 = vmul.f32 %v11780_v9, %v6648_v45  ;;  %v6689_v14 = vmul.f32 %v11780_v9, %v6649_v35 }
 0x918   : > { %v6690_v26 = vmul.f32 %v11780_v9, %v6650_v20 }
 0x919   : > { %v6722_v17 = vmul.f32 %v6700_v37, %v6686_v13  ;;  %v6723_v44 = vmul.f32 %v6704_v3, %v6687_v27  ;;  %v6724_v41 = vmul.f32 %v6708_v4, %v6688_v8  ;;  %v6725_v46 = vmul.f32 %v6712_v6, %v6689_v14 }
 0x91a   : > { %v11782_v51 = vpop.eup %11781  ;;  %v6726_v11 = vmul.f32 %v6716_v49, %v6690_v26 }
 0x91b   : > { %v6758_v21 = vadd.f32 %v6736_v59, %v6722_v17  ;;  %v6759_v28 = vadd.f32 %v6740_v10, %v6723_v44  ;;  %v6760_v7 = vadd.f32 %v6744_v60, %v6724_v41  ;;  %v6761_v36 = vadd.f32 %v6748_v12, %v6725_v46 }
 0x91c   : > { %v6762_v31 = vadd.f32 %v6752_v19, %v6726_v11  ;;  %v6691_v33 = vmul.f32 %v11782_v51, %v6651_v22  ;;  %v6692_v53 = vmul.f32 %v11782_v51, %v6652_v29  ;;  %v6693_v15 = vmul.f32 %v11782_v51, %v6653_v30 }
 0x91d   : > { %6768 = vst [vmem:[#allocation2] sm:$0xff] %v6758_v21  ;;  %6769 = vst [vmem:[#allocation2 + $0x8] sm:$0xff] %v6759_v28  ;;  %v6694_v16 = vmul.f32 %v11782_v51, %v6654_v52  ;;  %v6695_v18 = vmul.f32 %v11782_v51, %v6655_v57 }
 0x91e   : > { %6770 = vst [vmem:[#allocation2 + $0x10] sm:$0xff] %v6760_v7  ;;  %6771 = vst [vmem:[#allocation2 + $0x18] sm:$0xff] %v6761_v36  ;;  %v6727_v45 = vmul.f32 %v6700_v37, %v6691_v33  ;;  %v6728_v20 = vmul.f32 %v6704_v3, %v6692_v53  ;;  %v6729_v35 = vmul.f32 %v6708_v4, %v6693_v15 }
 0x91f   : > { %6772 = vst.msk [vmem:[#allocation2 + $0x20] sm:$0xff] %vm3527_vm2, %v6762_v31  ;;  %v6730_v24 = vmul.f32 %v6712_v6, %v6694_v16  ;;  %v6731_v47 = vmul.f32 %v6716_v49, %v6695_v18 }
 0x920   : > { %v6763_v55 = vadd.f32 %v6736_v59, %v6727_v45  ;;  %v6764_v54 = vadd.f32 %v6740_v10, %v6728_v20  ;;  %v6765_v58 = vadd.f32 %v6744_v60, %v6729_v35 }
 0x921   : > { %v6766_v38 = vadd.f32 %v6748_v12, %v6730_v24  ;;  %v6767_v22 = vadd.f32 %v6752_v19, %v6731_v47 }
 0x922   : > { %6773 = vst [vmem:[#allocation2 + $0x28] sm:$0xff] %v6763_v55  ;;  %6774 = vst [vmem:[#allocation2 + $0x30] sm:$0xff] %v6764_v54 }
 0x923   : > { %6775 = vst [vmem:[#allocation2 + $0x38] sm:$0xff] %v6765_v58  ;;  %6776 = vst [vmem:[#allocation2 + $0x40] sm:$0xff] %v6766_v38 }
 0x924   : > { %6777 = vst.msk [vmem:[#allocation2 + $0x48] sm:$0xff] %vm3527_vm2, %v6767_v22 }
 0x925 PF: > { %v11794_v29 = vld [vmem:[%s12691_s25 + $0x4] ss:$16 sps:$4 sm:$0xff]   ;;  %v11796_v30 = vld [vmem:[%s12691_s25 + $0xc] ss:$16 sps:$4 sm:$0xff]   ;;  %v11798_v52 = vld [vmem:[%s12691_s25] ss:$16 sps:$4 sm:$0xff]   ;;  %s15348_s30 = scalar_lea.vmem %s15337_s8, %s15354_s24 }
 0x926   : > { %7649 = vmatprep.subr.bf16.mxu0 %v11794_v29  ;;  %v11799_v57 = vld [vmem:[%s12691_s25 + $0x8] ss:$16 sps:$4 sm:$0xff]   ;;  %7778 = vmatprep.subr.bf16.mxu1 %v11796_v30  ;;  %v11800_v5 = vld [vmem:[%s12691_s25 + $0x24] ss:$16 sps:$4 sm:$0xff]   ;;  %v11802_v23 = vld [vmem:[%s12691_s25 + $0x2c] ss:$16 sps:$4 sm:$0xff]  }
 0x927   : > { %7650 = vmatpush1.bf16.msra.mxu0 %v11798_v52  ;;  %7779 = vmatpush1.bf16.msra.mxu1 %v11799_v57  ;;  %v11804_v40 = vld [vmem:[%s12691_s25 + $0x20] ss:$16 sps:$4 sm:$0xff]   ;;  %v11805_v42 = vld [vmem:[%s12691_s25 + $0x28] ss:$16 sps:$4 sm:$0xff]   ;;  %v11806_v32 = vld [vmem:[%s12691_s25 + $0x44] ss:$16 sps:$4 sm:$0xff]  }
 0x928   : > { %7651 = vmatprep.subr.bf16.mxu0 %v11800_v5  ;;  %7780 = vmatprep.subr.bf16.mxu1 %v11802_v23  ;;  %v11808_v48 = vld [vmem:[%s12691_s25 + $0x4c] ss:$16 sps:$4 sm:$0xff]   ;;  %v11810_v39 = vld [vmem:[%s12691_s25 + $0x40] ss:$16 sps:$4 sm:$0xff]   ;;  %v11811_v25 = vld [vmem:[%s12691_s25 + $0x48] ss:$16 sps:$4 sm:$0xff]  }
 0x929   : > { %v11812_v50 = vld [vmem:[%s12691_s25 + $0x64] ss:$16 sps:$4 sm:$0xff]   ;;  %v11814_v61 = vld [vmem:[%s12691_s25 + $0x6c] ss:$16 sps:$4 sm:$0xff]   ;;  %v11816_v34 = vld [vmem:[%s12691_s25 + $0x60] ss:$16 sps:$4 sm:$0xff]  }
 0x92a   : > { %v11817_v62 = vld [vmem:[%s12691_s25 + $0x68] ss:$16 sps:$4 sm:$0xff]   ;;  %v11818_v63 = vld [vmem:[%s12691_s25 + $0x84] ss:$16 sps:$4 sm:$0xff]   ;;  %v11820_v0 = vld [vmem:[%s12691_s25 + $0x8c] ss:$16 sps:$4 sm:$0xff]  }
 0x92b   : > { %7652 = vmatpush1.bf16.msra.mxu0 %v11804_v40  ;;  %7781 = vmatpush1.bf16.msra.mxu1 %v11805_v42  ;;  %v11822_v43 = vld [vmem:[%s12691_s25 + $0x80] ss:$16 sps:$4 sm:$0xff]   ;;  %v11823_v56 = vld [vmem:[%s12691_s25 + $0x88] ss:$16 sps:$4 sm:$0xff]   ;;  %v11824_v1 = vld [vmem:[%s12691_s25 + $0xa4] ss:$16 sps:$4 sm:$0xff]  }
 0x92c   : > { %7653 = vmatprep.subr.bf16.mxu0 %v11806_v32  ;;  %7782 = vmatprep.subr.bf16.mxu1 %v11808_v48  ;;  %v11826_v2 = vld [vmem:[%s12691_s25 + $0xac] ss:$16 sps:$4 sm:$0xff]   ;;  %v11828_v37 = vld [vmem:[%s12691_s25 + $0xa0] ss:$16 sps:$4 sm:$0xff]   ;;  %v11829_v59 = vld [vmem:[%s12691_s25 + $0xa8] ss:$16 sps:$4 sm:$0xff]  }
 0x92d   : > { %v11830_v4 = vld [vmem:[%s12691_s25 + $0xc4] ss:$16 sps:$4 sm:$0xff]   ;;  %v11832_v3 = vld [vmem:[%s12691_s25 + $0xcc] ss:$16 sps:$4 sm:$0xff]   ;;  %v11834_v6 = vld [vmem:[%s12691_s25 + $0xc0] ss:$16 sps:$4 sm:$0xff]  }
 0x92e   : > { %v11835_v9 = vld [vmem:[%s12691_s25 + $0xc8] ss:$16 sps:$4 sm:$0xff]   ;;  %v11836_v60 = vld [vmem:[%s12691_s25 + $0xe4] ss:$16 sps:$4 sm:$0xff]   ;;  %v11838_v10 = vld [vmem:[%s12691_s25 + $0xec] ss:$16 sps:$4 sm:$0xff]  }
 0x92f   : > { %7654 = vmatpush1.bf16.msra.mxu0 %v11810_v39  ;;  %7783 = vmatpush1.bf16.msra.mxu1 %v11811_v25  ;;  %v11840_v12 = vld [vmem:[%s12691_s25 + $0xe0] ss:$16 sps:$4 sm:$0xff]   ;;  %v11841_v49 = vld [vmem:[%s12691_s25 + $0xe8] ss:$16 sps:$4 sm:$0xff]   ;;  %v11842_v13 = vld [vmem:[%s12691_s25 + $0x104] ss:$16 sps:$4 sm:$0xff]  }
 0x930   : > { %7655 = vmatprep.subr.bf16.mxu0 %v11812_v50  ;;  %7784 = vmatprep.subr.bf16.mxu1 %v11814_v61  ;;  %v11844_v27 = vld [vmem:[%s12691_s25 + $0x10c] ss:$16 sps:$4 sm:$0xff]   ;;  %v11846_v8 = vld [vmem:[%s12691_s25 + $0x100] ss:$16 sps:$4 sm:$0xff]   ;;  %v11847_v14 = vld [vmem:[%s12691_s25 + $0x108] ss:$16 sps:$4 sm:$0xff]  }
 0x931   : > { %v11848_v19 = vld [vmem:[%s12691_s25 + $0x124] ss:$16 sps:$4 sm:$0xff]   ;;  %v11850_v26 = vld [vmem:[%s12691_s25 + $0x12c] ss:$16 sps:$4 sm:$0xff]   ;;  %v11852_v17 = vld [vmem:[%s12691_s25 + $0x120] ss:$16 sps:$4 sm:$0xff]  }
 0x932   : > { %v11853_v44 = vld [vmem:[%s12691_s25 + $0x128] ss:$16 sps:$4 sm:$0xff]   ;;  %v11854_v41 = vld [vmem:[%s12691_s25 + $0x144] ss:$16 sps:$4 sm:$0xff]   ;;  %v11856_v46 = vld [vmem:[%s12691_s25 + $0x14c] ss:$16 sps:$4 sm:$0xff]  }
 0x933   : > { %7656 = vmatpush1.bf16.msra.mxu0 %v11816_v34  ;;  %7785 = vmatpush1.bf16.msra.mxu1 %v11817_v62  ;;  %v11858_v51 = vld [vmem:[%s12691_s25 + $0x140] ss:$16 sps:$4 sm:$0xff]   ;;  %v11859_v11 = vld [vmem:[%s12691_s25 + $0x148] ss:$16 sps:$4 sm:$0xff]   ;;  %v11860_v21 = vld [vmem:[%s12691_s25 + $0x164] ss:$16 sps:$4 sm:$0xff]  }
 0x934   : > { %7657 = vmatprep.subr.bf16.mxu0 %v11818_v63  ;;  %7786 = vmatprep.subr.bf16.mxu1 %v11820_v0  ;;  %v11862_v28 = vld [vmem:[%s12691_s25 + $0x16c] ss:$16 sps:$4 sm:$0xff]   ;;  %v6794_v36 = vld [vmem:[#allocation2 + $0x30] sm:$0xff]  ;;  %v11865_v33 = vld [vmem:[%s12691_s25 + $0x168] ss:$16 sps:$4 sm:$0xff]   ;;  %vm7633_vm0 = vcmask 1040384  }
 0x935   : > { %v6789_v7 = vld [vmem:[#allocation2 + $0x8] sm:$0xff]  ;;  %v11864_v31 = vld [vmem:[%s12691_s25 + $0x160] ss:$16 sps:$4 sm:$0xff]   ;;  %v11866_v15 = vld [vmem:[%s12691_s25 + $0x184] ss:$16 sps:$4 sm:$0xff]   ;;  %vm7634_vm1 = vcmask 1041408  }
 0x936   : > { %v6933_v53 = vpack.c.bf16 %v6794_v36, %v6789_v7  ;;  %v11868_v16 = vld [vmem:[%s12691_s25 + $0x18c] ss:$16 sps:$4 sm:$0xff]   ;;  %v11870_v18 = vld [vmem:[%s12691_s25 + $0x180] ss:$16 sps:$4 sm:$0xff]   ;;  %v11871_v45 = vld [vmem:[%s12691_s25 + $0x188] ss:$16 sps:$4 sm:$0xff]  }
 0x937   : > { %7658 = vmatpush1.bf16.msra.mxu0 %v11822_v43  ;;  %7787 = vmatpush1.bf16.msra.mxu1 %v11823_v56  ;;  %v11872_v20 = vld [vmem:[%s12691_s25 + $0x1a4] ss:$16 sps:$4 sm:$0xff]   ;;  %v11874_v35 = vld [vmem:[%s12691_s25 + $0x1ac] ss:$16 sps:$4 sm:$0xff]   ;;  %v11876_v24 = vld [vmem:[%s12691_s25 + $0x1a0] ss:$16 sps:$4 sm:$0xff]  }
 0x938   : > { %7659 = vmatprep.subr.bf16.mxu0 %v11824_v1  ;;  %7788 = vmatprep.subr.bf16.mxu1 %v11826_v2  ;;  %v11877_v47 = vld [vmem:[%s12691_s25 + $0x1a8] ss:$16 sps:$4 sm:$0xff]   ;;  %v11878_v55 = vld [vmem:[%s12691_s25 + $0x1c4] ss:$16 sps:$4 sm:$0xff]   ;;  %v11880_v54 = vld [vmem:[%s12691_s25 + $0x1cc] ss:$16 sps:$4 sm:$0xff]  }
 0x939   : > { %7681 = vmatprep.mubr.bf16.mxu0 %v6933_v53  ;;  %7810 = vmatprep.mubr.bf16.mxu1 %v6933_v53  ;;  %v11882_v58 = vld [vmem:[%s12691_s25 + $0x1c0] ss:$16 sps:$4 sm:$0xff]   ;;  %v11883_v38 = vld [vmem:[%s12691_s25 + $0x1c8] ss:$16 sps:$4 sm:$0xff]   ;;  %v11884_v22 = vld [vmem:[%s12691_s25 + $0x1e4] ss:$16 sps:$4 sm:$0xff]  }
 0x93a   : > { %v11886_v29 = vld [vmem:[%s12691_s25 + $0x1ec] ss:$16 sps:$4 sm:$0xff]   ;;  %v11888_v30 = vld [vmem:[%s12691_s25 + $0x1e0] ss:$16 sps:$4 sm:$0xff]   ;;  %v11889_v52 = vld [vmem:[%s12691_s25 + $0x1e8] ss:$16 sps:$4 sm:$0xff]  }
 0x93b   : > { %7660 = vmatpush1.bf16.msra.mxu0 %v11828_v37  ;;  %7789 = vmatpush1.bf16.msra.mxu1 %v11829_v59  ;;  %v11892_v57 = vld [vmem:[%s12691_s25 + $0x204] ss:$16 sps:$4 sm:$0xff]   ;;  %v6793_v23 = vld [vmem:[#allocation2 + $0x28] sm:$0xff]  ;;  %v11890_v42 = vld [vmem:[%s12691_s25 + $0x200] ss:$16 sps:$4 sm:$0xff]   ;;  %vm7629_vm2 = vcmask 154624  }
 0x93c   : > { %7661 = vmatprep.subr.bf16.mxu0 %v11830_v4  ;;  %7790 = vmatprep.subr.bf16.mxu1 %v11832_v3  ;;  %v6788_v5 = vld [vmem:[#allocation2] sm:$0xff]  ;;  %v11895_v40 = vld [vmem:[%s12691_s25 + $0x20c] ss:$16 sps:$4 sm:$0xff]   ;;  %v11893_v32 = vld [vmem:[%s12691_s25 + $0x208] ss:$16 sps:$4 sm:$0xff]   ;;  %p10469_p11 = scmp.ne.s32.totalorder %s12383_s28, 3 }
 0x93d   : > { %v6932_v48 = vpack.c.bf16 %v6793_v23, %v6788_v5  ;;  %v11898_v39 = vld [vmem:[%s12691_s25 + $0x224] ss:$16 sps:$4 sm:$0xff]   ;;  %v11901_v25 = vld [vmem:[%s12691_s25 + $0x22c] ss:$16 sps:$4 sm:$0xff]   ;;  %v11896_v50 = vld [vmem:[%s12691_s25 + $0x220] ss:$16 sps:$4 sm:$0xff]  }
 0x93e   : > { %v11899_v61 = vld [vmem:[%s12691_s25 + $0x228] ss:$16 sps:$4 sm:$0xff]   ;;  %v11904_v34 = vld [vmem:[%s12691_s25 + $0x244] ss:$16 sps:$4 sm:$0xff]   ;;  %v11907_v62 = vld [vmem:[%s12691_s25 + $0x24c] ss:$16 sps:$4 sm:$0xff]  }
 0x93f   : > { %7662 = vmatpush1.bf16.msra.mxu0 %v11834_v6  ;;  %7791 = vmatpush1.bf16.msra.mxu1 %v11835_v9  ;;  %v11902_v63 = vld [vmem:[%s12691_s25 + $0x240] ss:$16 sps:$4 sm:$0xff]   ;;  %v11905_v0 = vld [vmem:[%s12691_s25 + $0x248] ss:$16 sps:$4 sm:$0xff]   ;;  %v11910_v43 = vld [vmem:[%s12691_s25 + $0x264] ss:$16 sps:$4 sm:$0xff]  }
 0x940   : > { %7663 = vmatprep.subr.bf16.mxu0 %v11836_v60  ;;  %7792 = vmatprep.subr.bf16.mxu1 %v11838_v10  ;;  %v11913_v56 = vld [vmem:[%s12691_s25 + $0x26c] ss:$16 sps:$4 sm:$0xff]   ;;  %v11908_v1 = vld [vmem:[%s12691_s25 + $0x260] ss:$16 sps:$4 sm:$0xff]   ;;  %v11911_v2 = vld [vmem:[%s12691_s25 + $0x268] ss:$16 sps:$4 sm:$0xff]  }
 0x941   : > { %v11916_v37 = vld [vmem:[%s12691_s25 + $0x284] ss:$16 sps:$4 sm:$0xff]   ;;  %v11919_v59 = vld [vmem:[%s12691_s25 + $0x28c] ss:$16 sps:$4 sm:$0xff]   ;;  %v11914_v4 = vld [vmem:[%s12691_s25 + $0x280] ss:$16 sps:$4 sm:$0xff]  }
 0x942   : > { %v11917_v3 = vld [vmem:[%s12691_s25 + $0x288] ss:$16 sps:$4 sm:$0xff]   ;;  %v11922_v6 = vld [vmem:[%s12691_s25 + $0x2a4] ss:$16 sps:$4 sm:$0xff]   ;;  %v11925_v9 = vld [vmem:[%s12691_s25 + $0x2ac] ss:$16 sps:$4 sm:$0xff]  }
 0x943   : > { %7664 = vmatpush1.bf16.msra.mxu0 %v11840_v12  ;;  %7793 = vmatpush1.bf16.msra.mxu1 %v11841_v49  ;;  %v11920_v60 = vld [vmem:[%s12691_s25 + $0x2a0] ss:$16 sps:$4 sm:$0xff]   ;;  %v11923_v10 = vld [vmem:[%s12691_s25 + $0x2a8] ss:$16 sps:$4 sm:$0xff]   ;;  %v11928_v12 = vld [vmem:[%s12691_s25 + $0x2c4] ss:$16 sps:$4 sm:$0xff]  }
 0x944   : > { %7665 = vmatprep.subr.bf16.mxu0 %v11842_v13  ;;  %7794 = vmatprep.subr.bf16.mxu1 %v11844_v27  ;;  %v11931_v49 = vld [vmem:[%s12691_s25 + $0x2cc] ss:$16 sps:$4 sm:$0xff]   ;;  %v11926_v27 = vld [vmem:[%s12691_s25 + $0x2c0] ss:$16 sps:$4 sm:$0xff]   ;;  %v11977_v5 = vld [vmem:[%s12691_s25 + $0x3c8] ss:$16 sps:$4 sm:$0xff]  }
 0x945   : > { %v6791_v13 = vld [vmem:[#allocation2 + $0x18] sm:$0xff]  ;;  %v11944_v36 = vld [vmem:[%s12691_s25 + $0x320] ss:$16 sps:$4 sm:$0xff]   ;;  %v11982_v23 = vld [vmem:[%s12691_s25 + $0x3e4] ss:$16 sps:$4 sm:$0xff]  }
 0x946   : > { %v11949_v7 = vld [vmem:[%s12691_s25 + $0x32c] ss:$16 sps:$4 sm:$0xff]  }
 0x947   : > { %7666 = vmatpush1.bf16.msra.mxu0 %v11846_v8  ;;  %7795 = vmatpush1.bf16.msra.mxu1 %v11847_v14  ;;  %v11929_v8 = vld [vmem:[%s12691_s25 + $0x2c8] ss:$16 sps:$4 sm:$0xff]   ;;  %v6796_v14 = vld [vmem:[#allocation2 + $0x40] sm:$0xff]  ;;  %v11955_v53 = vld [vmem:[%s12691_s25 + $0x34c] ss:$16 sps:$4 sm:$0xff]  }
 0x948   : > { %7667 = vmatprep.subr.bf16.mxu0 %v11848_v19  ;;  %7796 = vmatprep.subr.bf16.mxu1 %v11850_v26  ;;  %v11934_v19 = vld [vmem:[%s12691_s25 + $0x2e4] ss:$16 sps:$4 sm:$0xff]   ;;  %v6935_v26 = vpack.c.bf16 %v6796_v14, %v6791_v13  ;;  %v11999_v14 = vld [vmem:[%s12689_s21 + $0x8] ss:$20 sps:$4 sm:$0xff]  }
 0x949   : > { %v6792_v13 = vld [vmem:[#allocation2 + $0x20] sm:$0xff] }
 0x94b   : > { %7668 = vmatpush1.bf16.msra.mxu0 %v11852_v17  ;;  %7797 = vmatpush1.bf16.msra.mxu1 %v11853_v44  ;;  %v11937_v17 = vld [vmem:[%s12691_s25 + $0x2ec] ss:$16 sps:$4 sm:$0xff]   ;;  %v11932_v44 = vld [vmem:[%s12691_s25 + $0x2e0] ss:$16 sps:$4 sm:$0xff]  }
 0x94c   : > { %7669 = vmatprep.subr.bf16.mxu0 %v11854_v41  ;;  %7798 = vmatprep.subr.bf16.mxu1 %v11856_v46  ;;  %v11935_v41 = vld [vmem:[%s12691_s25 + $0x2e8] ss:$16 sps:$4 sm:$0xff]   ;;  %v11940_v46 = vld [vmem:[%s12691_s25 + $0x304] ss:$16 sps:$4 sm:$0xff]  }
 0x94f   : > { %7670 = vmatpush1.bf16.msra.mxu0 %v11858_v51  ;;  %7799 = vmatpush1.bf16.msra.mxu1 %v11859_v11  ;;  %v11943_v51 = vld [vmem:[%s12691_s25 + $0x30c] ss:$16 sps:$4 sm:$0xff]   ;;  %v11938_v11 = vld [vmem:[%s12691_s25 + $0x300] ss:$16 sps:$4 sm:$0xff]  }
 0x950   : > { %7671 = vmatprep.subr.bf16.mxu0 %v11860_v21  ;;  %7800 = vmatprep.subr.bf16.mxu1 %v11862_v28  ;;  %v11941_v21 = vld [vmem:[%s12691_s25 + $0x308] ss:$16 sps:$4 sm:$0xff]   ;;  %v11946_v28 = vld [vmem:[%s12691_s25 + $0x324] ss:$16 sps:$4 sm:$0xff]  }
 0x953   : > { %7672 = vmatpush1.bf16.msra.mxu0 %v11864_v31  ;;  %7801 = vmatpush1.bf16.msra.mxu1 %v11865_v33  ;;  %v11947_v31 = vld [vmem:[%s12691_s25 + $0x328] ss:$16 sps:$4 sm:$0xff]   ;;  %v11952_v33 = vld [vmem:[%s12691_s25 + $0x344] ss:$16 sps:$4 sm:$0xff]  }
 0x954   : > { %7673 = vmatprep.subr.bf16.mxu0 %v11866_v15  ;;  %7802 = vmatprep.subr.bf16.mxu1 %v11868_v16  ;;  %v11950_v15 = vld [vmem:[%s12691_s25 + $0x340] ss:$16 sps:$4 sm:$0xff]   ;;  %v11953_v16 = vld [vmem:[%s12691_s25 + $0x348] ss:$16 sps:$4 sm:$0xff]  }
 0x957   : > { %7674 = vmatpush1.bf16.msra.mxu0 %v11870_v18  ;;  %7803 = vmatpush1.bf16.msra.mxu1 %v11871_v45  ;;  %v11958_v18 = vld [vmem:[%s12691_s25 + $0x364] ss:$16 sps:$4 sm:$0xff]   ;;  %v11961_v45 = vld [vmem:[%s12691_s25 + $0x36c] ss:$16 sps:$4 sm:$0xff]  }
 0x958   : > { %7675 = vmatprep.subr.bf16.mxu0 %v11872_v20  ;;  %7804 = vmatprep.subr.bf16.mxu1 %v11874_v35  ;;  %v11956_v20 = vld [vmem:[%s12691_s25 + $0x360] ss:$16 sps:$4 sm:$0xff]   ;;  %v11959_v35 = vld [vmem:[%s12691_s25 + $0x368] ss:$16 sps:$4 sm:$0xff]  }
 0x95b   : > { %7676 = vmatpush1.bf16.msra.mxu0 %v11876_v24  ;;  %7805 = vmatpush1.bf16.msra.mxu1 %v11877_v47  ;;  %v11964_v24 = vld [vmem:[%s12691_s25 + $0x384] ss:$16 sps:$4 sm:$0xff]   ;;  %v11967_v47 = vld [vmem:[%s12691_s25 + $0x38c] ss:$16 sps:$4 sm:$0xff]  }
 0x95c   : > { %7677 = vmatprep.subr.bf16.mxu0 %v11878_v55  ;;  %7806 = vmatprep.subr.bf16.mxu1 %v11880_v54  ;;  %v11962_v55 = vld [vmem:[%s12691_s25 + $0x380] ss:$16 sps:$4 sm:$0xff]   ;;  %v11965_v54 = vld [vmem:[%s12691_s25 + $0x388] ss:$16 sps:$4 sm:$0xff]  }
 0x95f   : > { %7678 = vmatpush1.bf16.msra.mxu0 %v11882_v58  ;;  %7807 = vmatpush1.bf16.msra.mxu1 %v11883_v38  ;;  %v11970_v58 = vld [vmem:[%s12691_s25 + $0x3a4] ss:$16 sps:$4 sm:$0xff]   ;;  %v11973_v38 = vld [vmem:[%s12691_s25 + $0x3ac] ss:$16 sps:$4 sm:$0xff]  }
 0x960   : > { %7679 = vmatprep.subr.bf16.mxu0 %v11884_v22  ;;  %7808 = vmatprep.subr.bf16.mxu1 %v11886_v29  ;;  %v11968_v22 = vld [vmem:[%s12691_s25 + $0x3a0] ss:$16 sps:$4 sm:$0xff]   ;;  %v11971_v29 = vld [vmem:[%s12691_s25 + $0x3a8] ss:$16 sps:$4 sm:$0xff]  }
 0x963   : > { %7680 = vmatpush1.bf16.msra.mxu0 %v11888_v30  ;;  %7809 = vmatpush1.bf16.msra.mxu1 %v11889_v52  ;;  %v11976_v30 = vld [vmem:[%s12691_s25 + $0x3c4] ss:$16 sps:$4 sm:$0xff]   ;;  %v11979_v52 = vld [vmem:[%s12691_s25 + $0x3cc] ss:$16 sps:$4 sm:$0xff]  }
 0x964   : > { %7692 = vmatprep.subr.bf16.mxu0 %v11892_v57  ;;  %7821 = vmatprep.subr.bf16.mxu1 %v11895_v40  ;;  %v11974_v57 = vld [vmem:[%s12691_s25 + $0x3c0] ss:$16 sps:$4 sm:$0xff]   ;;  %v11985_v40 = vld [vmem:[%s12691_s25 + $0x3ec] ss:$16 sps:$4 sm:$0xff]  }
 0x966   : > { %7682 = vmatmul.mubr.bf16.vlgmr.msra.gmra.mrb[0].mxu0 %v6932_v48  ;;  %7811 = vmatmul.mubr.bf16.vlgmr.msra.gmra.mrb[0].mxu1 %v6932_v48  ;;  %v6930_v48 = vld [vmem:[%s12691_s25 + $0x420] sm:$0x33] }
 0x967   : > { %7693 = vmatpush1.bf16.msra.mxu0 %v11890_v42  ;;  %7822 = vmatpush1.bf16.msra.mxu1 %v11893_v32  ;;  %v11980_v42 = vld [vmem:[%s12691_s25 + $0x3e0] ss:$16 sps:$4 sm:$0xff]   ;;  %v11983_v32 = vld [vmem:[%s12691_s25 + $0x3e8] ss:$16 sps:$4 sm:$0xff]  }
 0x968   : > { %7694 = vmatprep.subr.bf16.mxu0 %v11898_v39  ;;  %7823 = vmatprep.subr.bf16.mxu1 %v11901_v25  ;;  %v6931_v39 = vld [vmem:[%s12691_s25 + $0x428] sm:$0x33]  ;;  %v6790_v25 = vld [vmem:[#allocation2 + $0x10] sm:$0xff] }
 0x969   : > { %7724 = vmatprep.mubr.bf16.mxu0 %v6935_v26  ;;  %7853 = vmatprep.mubr.bf16.mxu1 %v6935_v26  ;;  %v12004_v26 = vld [vmem:[%s12689_s21 + $0x2c] ss:$20 sps:$4 sm:$0xff]  }
 0x96b   : > { %7695 = vmatpush1.bf16.msra.mxu0 %v11896_v50  ;;  %7824 = vmatpush1.bf16.msra.mxu1 %v11899_v61  ;;  %v6795_v50 = vld [vmem:[#allocation2 + $0x38] sm:$0xff]  ;;  %v12292_v61 = vmov 65535  }
 0x96c   : > { %7696 = vmatprep.subr.bf16.mxu0 %v11904_v34  ;;  %7825 = vmatprep.subr.bf16.mxu1 %v11907_v62  ;;  %v7635_v34 = vsel %vm7633_vm0, 4294967295, %v12292_v61  ;;  %v11988_v62 = vld [vmem:[%s12691_s25 + $0x404] ss:$16 sps:$4 sm:$0xff]   ;;  %v12064_v61 = vld [vmem:[%s12689_s21 + $0x1bc] ss:$20 sps:$4 sm:$0xff]  }
 0x96f   : > { %7697 = vmatpush1.bf16.msra.mxu0 %v11902_v63  ;;  %7826 = vmatpush1.bf16.msra.mxu1 %v11905_v0  ;;  %v11991_v63 = vld [vmem:[%s12691_s25 + $0x40c] ss:$16 sps:$4 sm:$0xff]   ;;  %v10304_v0 = vcombine.high %v6930_v48, %v6930_v48 }
 0x970   : > { %7698 = vmatprep.subr.bf16.mxu0 %v11910_v43  ;;  %7827 = vmatprep.subr.bf16.mxu1 %v11913_v56  ;;  %v10306_v43 = vcombine.high %v6931_v39, %v6931_v39  ;;  %v7636_v56 = vsel %vm7634_vm1, %v7635_v34, 0  ;;  %v12067_v34 = vld [vmem:[%s12689_s21 + $0x1c4] ss:$20 sps:$4 sm:$0xff]  }
 0x973   : > { %7699 = vmatpush1.bf16.msra.mxu0 %v11908_v1  ;;  %7828 = vmatpush1.bf16.msra.mxu1 %v11911_v2  ;;  %v6934_v1 = vpack.c.bf16 %v6795_v50, %v6790_v25  ;;  %v11986_v2 = vld [vmem:[%s12691_s25 + $0x400] ss:$16 sps:$4 sm:$0xff]   ;;  %v12059_v50 = vld [vmem:[%s12689_s21 + $0x198] ss:$20 sps:$4 sm:$0xff]  }
 0x974   : > { %7700 = vmatprep.subr.bf16.mxu0 %v11916_v37  ;;  %7829 = vmatprep.subr.bf16.mxu1 %v11919_v59  ;;  %v11989_v37 = vld [vmem:[%s12691_s25 + $0x408] ss:$16 sps:$4 sm:$0xff]   ;;  %v10303_v59 = vcombine.low %v6930_v48, %v6930_v48  ;;  %v12056_v25 = vld [vmem:[%s12689_s21 + $0x190] ss:$20 sps:$4 sm:$0xff]  }
 0x975   : > { %v12058_v48 = vld [vmem:[%s12689_s21 + $0x194] ss:$20 sps:$4 sm:$0xff]  }
 0x977   : > { %7701 = vmatpush1.bf16.msra.mxu0 %v11914_v4  ;;  %7830 = vmatpush1.bf16.msra.mxu1 %v11917_v3  ;;  %v10305_v4 = vcombine.low %v6931_v39, %v6931_v39  ;;  %v7641_v3 = vand.u32 %v10304_v0, %v7636_v56  ;;  %v12061_v39 = vld [vmem:[%s12689_s21 + $0x19c] ss:$20 sps:$4 sm:$0xff]   ;;  %v12070_v0 = vld [vmem:[%s12689_s21 + $0x1e4] ss:$20 sps:$4 sm:$0xff]  }
 0x978   : > { %7702 = vmatprep.subr.bf16.mxu0 %v11922_v6  ;;  %7831 = vmatprep.subr.bf16.mxu1 %v11925_v9  ;;  %v7647_v6 = vand.u32 %v10306_v43, %v7636_v56  ;;  %v11998_v9 = vld [vmem:[%s12689_s21 + $0x4] ss:$20 sps:$4 sm:$0xff]   ;;  %v12073_v43 = vld [vmem:[%s12689_s21 + $0x1ec] ss:$20 sps:$4 sm:$0xff]  }
 0x97b   : > { %7703 = vmatpush1.bf16.msra.mxu0 %v11920_v60  ;;  %7832 = vmatpush1.bf16.msra.mxu1 %v11923_v10  ;;  %v12001_v60 = vld [vmem:[%s12689_s21 + $0xc] ss:$20 sps:$4 sm:$0xff]   ;;  %v7638_v10 = vand.u32 %v10303_v59, %v7636_v56  ;;  %v12074_v59 = vld [vmem:[%s12689_s21 + $0x208] ss:$20 sps:$4 sm:$0xff]  }
 0x97c   : > { %7704 = vmatprep.subr.bf16.mxu0 %v11928_v12  ;;  %7833 = vmatprep.subr.bf16.mxu1 %v11931_v49  ;;  %v7644_v12 = vand.u32 %v10305_v4, %v7636_v56  ;;  %v12293_v49 = vmov 0   ;;  %v12068_v56 = vld [vmem:[%s12689_s21 + $0x1e0] ss:$20 sps:$4 sm:$0xff]   ;;  %v12077_v4 = vld [vmem:[%s12689_s21 + $0x210] ss:$20 sps:$4 sm:$0xff]  }
 0x97f   : > { %7705 = vmatpush1.bf16.msra.mxu0 %v11926_v27  ;;  %7834 = vmatpush1.bf16.msra.mxu1 %v11929_v8  ;;  %v6797_v27 = vld [vmem:[#allocation2 + $0x48] sm:$0xff]  ;;  %v11996_v8 = vld [vmem:[%s12689_s21] ss:$20 sps:$4 sm:$0xff]  }
 0x980   : > { %7706 = vmatprep.subr.bf16.mxu0 %v11934_v19  ;;  %7835 = vmatprep.subr.bf16.mxu1 %v11937_v17  ;;  %v6936_v19 = vpack.c.bf16 %v6797_v27, %v6792_v13  ;;  %v12007_v17 = vld [vmem:[%s12689_s21 + $0x34] ss:$20 sps:$4 sm:$0xff]   ;;  %v12094_v27 = vld [vmem:[%s12689_s21 + $0x284] ss:$20 sps:$4 sm:$0xff]  }
 0x981   : > { %v12089_v13 = vld [vmem:[%s12689_s21 + $0x260] ss:$20 sps:$4 sm:$0xff]  }
 0x983   : > { %7707 = vmatpush1.bf16.msra.mxu0 %v11932_v44  ;;  %7836 = vmatpush1.bf16.msra.mxu1 %v11935_v41  ;;  %v12002_v44 = vld [vmem:[%s12689_s21 + $0x28] ss:$20 sps:$4 sm:$0xff]   ;;  %v12005_v41 = vld [vmem:[%s12689_s21 + $0x30] ss:$20 sps:$4 sm:$0xff]  }
 0x984   : > { %7708 = vmatprep.subr.bf16.mxu0 %v11940_v46  ;;  %7837 = vmatprep.subr.bf16.mxu1 %v11943_v51  ;;  %v12010_v46 = vld [vmem:[%s12689_s21 + $0x54] ss:$20 sps:$4 sm:$0xff]   ;;  %v12013_v51 = vld [vmem:[%s12689_s21 + $0x5c] ss:$20 sps:$4 sm:$0xff]  }
 0x987   : > { %7709 = vmatpush1.bf16.msra.mxu0 %v11938_v11  ;;  %7838 = vmatpush1.bf16.msra.mxu1 %v11941_v21  ;;  %v12008_v11 = vld [vmem:[%s12689_s21 + $0x50] ss:$20 sps:$4 sm:$0xff]   ;;  %v12011_v21 = vld [vmem:[%s12689_s21 + $0x58] ss:$20 sps:$4 sm:$0xff]  }
 0x988   : > { %7710 = vmatprep.subr.bf16.mxu0 %v11946_v28  ;;  %7839 = vmatprep.subr.bf16.mxu1 %v11949_v7  ;;  %v12016_v28 = vld [vmem:[%s12689_s21 + $0x7c] ss:$20 sps:$4 sm:$0xff]   ;;  %v12019_v7 = vld [vmem:[%s12689_s21 + $0x84] ss:$20 sps:$4 sm:$0xff]  }
 0x98b   : > { %7711 = vmatpush1.bf16.msra.mxu0 %v11944_v36  ;;  %7840 = vmatpush1.bf16.msra.mxu1 %v11947_v31  ;;  %v12014_v36 = vld [vmem:[%s12689_s21 + $0x78] ss:$20 sps:$4 sm:$0xff]   ;;  %v12017_v31 = vld [vmem:[%s12689_s21 + $0x80] ss:$20 sps:$4 sm:$0xff]  }
 0x98c   : > { %7712 = vmatprep.subr.bf16.mxu0 %v11952_v33  ;;  %7841 = vmatprep.subr.bf16.mxu1 %v11955_v53  ;;  %v12022_v33 = vld [vmem:[%s12689_s21 + $0xa4] ss:$20 sps:$4 sm:$0xff]   ;;  %v12025_v53 = vld [vmem:[%s12689_s21 + $0xac] ss:$20 sps:$4 sm:$0xff]  }
 0x98f   : > { %7713 = vmatpush1.bf16.msra.mxu0 %v11950_v15  ;;  %7842 = vmatpush1.bf16.msra.mxu1 %v11953_v16  ;;  %v12020_v15 = vld [vmem:[%s12689_s21 + $0xa0] ss:$20 sps:$4 sm:$0xff]   ;;  %v12023_v16 = vld [vmem:[%s12689_s21 + $0xa8] ss:$20 sps:$4 sm:$0xff]  }
 0x990   : > { %7714 = vmatprep.subr.bf16.mxu0 %v11958_v18  ;;  %7843 = vmatprep.subr.bf16.mxu1 %v11961_v45  ;;  %v12028_v18 = vld [vmem:[%s12689_s21 + $0xcc] ss:$20 sps:$4 sm:$0xff]   ;;  %v12031_v45 = vld [vmem:[%s12689_s21 + $0xd4] ss:$20 sps:$4 sm:$0xff]  }
 0x993   : > { %7715 = vmatpush1.bf16.msra.mxu0 %v11956_v20  ;;  %7844 = vmatpush1.bf16.msra.mxu1 %v11959_v35  ;;  %v12026_v20 = vld [vmem:[%s12689_s21 + $0xc8] ss:$20 sps:$4 sm:$0xff]   ;;  %v12029_v35 = vld [vmem:[%s12689_s21 + $0xd0] ss:$20 sps:$4 sm:$0xff]  }
 0x994   : > { %7716 = vmatprep.subr.bf16.mxu0 %v11964_v24  ;;  %7845 = vmatprep.subr.bf16.mxu1 %v11967_v47  ;;  %v12034_v24 = vld [vmem:[%s12689_s21 + $0xf4] ss:$20 sps:$4 sm:$0xff]   ;;  %v12037_v47 = vld [vmem:[%s12689_s21 + $0xfc] ss:$20 sps:$4 sm:$0xff]  }
 0x997   : > { %7717 = vmatpush1.bf16.msra.mxu0 %v11962_v55  ;;  %7846 = vmatpush1.bf16.msra.mxu1 %v11965_v54  ;;  %v12032_v55 = vld [vmem:[%s12689_s21 + $0xf0] ss:$20 sps:$4 sm:$0xff]   ;;  %v12035_v54 = vld [vmem:[%s12689_s21 + $0xf8] ss:$20 sps:$4 sm:$0xff]  }
 0x998   : > { %7718 = vmatprep.subr.bf16.mxu0 %v11970_v58  ;;  %7847 = vmatprep.subr.bf16.mxu1 %v11973_v38  ;;  %v12040_v58 = vld [vmem:[%s12689_s21 + $0x11c] ss:$20 sps:$4 sm:$0xff]   ;;  %v12043_v38 = vld [vmem:[%s12689_s21 + $0x124] ss:$20 sps:$4 sm:$0xff]  }
 0x99b   : > { %7719 = vmatpush1.bf16.msra.mxu0 %v11968_v22  ;;  %7848 = vmatpush1.bf16.msra.mxu1 %v11971_v29  ;;  %v12038_v22 = vld [vmem:[%s12689_s21 + $0x118] ss:$20 sps:$4 sm:$0xff]   ;;  %v12041_v29 = vld [vmem:[%s12689_s21 + $0x120] ss:$20 sps:$4 sm:$0xff]  }
 0x99c   : > { %7720 = vmatprep.subr.bf16.mxu0 %v11976_v30  ;;  %7849 = vmatprep.subr.bf16.mxu1 %v11979_v52  ;;  %v12046_v30 = vld [vmem:[%s12689_s21 + $0x144] ss:$20 sps:$4 sm:$0xff]   ;;  %v12049_v52 = vld [vmem:[%s12689_s21 + $0x14c] ss:$20 sps:$4 sm:$0xff]  }
 0x99f   : > { %7721 = vmatpush1.bf16.msra.mxu0 %v11974_v57  ;;  %7850 = vmatpush1.bf16.msra.mxu1 %v11977_v5  ;;  %v12044_v57 = vld [vmem:[%s12689_s21 + $0x140] ss:$20 sps:$4 sm:$0xff]   ;;  %v12047_v5 = vld [vmem:[%s12689_s21 + $0x148] ss:$20 sps:$4 sm:$0xff]  }
 0x9a0   : > { %7722 = vmatprep.subr.bf16.mxu0 %v11982_v23  ;;  %7851 = vmatprep.subr.bf16.mxu1 %v11985_v40  ;;  %v12052_v23 = vld [vmem:[%s12689_s21 + $0x16c] ss:$20 sps:$4 sm:$0xff]   ;;  %v12055_v40 = vld [vmem:[%s12689_s21 + $0x174] ss:$20 sps:$4 sm:$0xff]  }
 0x9a3   : > { %7723 = vmatpush1.bf16.msra.mxu0 %v11980_v42  ;;  %7852 = vmatpush1.bf16.msra.mxu1 %v11983_v32  ;;  %v12050_v42 = vld [vmem:[%s12689_s21 + $0x168] ss:$20 sps:$4 sm:$0xff]   ;;  %v12053_v32 = vld [vmem:[%s12689_s21 + $0x170] ss:$20 sps:$4 sm:$0xff]  }
 0x9a4   : > { %7735 = vmatprep.subr.bf16.mxu0 %v11988_v62  ;;  %7864 = vmatprep.subr.bf16.mxu1 %v11991_v63  ;;  %v12062_v62 = vld [vmem:[%s12689_s21 + $0x1b8] ss:$20 sps:$4 sm:$0xff]   ;;  %v12065_v63 = vld [vmem:[%s12689_s21 + $0x1c0] ss:$20 sps:$4 sm:$0xff]  }
 0x9a6   : > { %7725 = vmatmul.mubr.bf16.vlgmr.msra.gmra.mrb[0].mxu0 %v6934_v1  ;;  %7854 = vmatmul.mubr.bf16.vlgmr.msra.gmra.mrb[0].mxu1 %v6934_v1  ;;  %v12071_v1 = vld [vmem:[%s12689_s21 + $0x1e8] ss:$20 sps:$4 sm:$0xff]  }
 0x9a7   : > { %7736 = vmatpush1.bf16.msra.mxu0 %v11986_v2  ;;  %7865 = vmatpush1.bf16.msra.mxu1 %v11989_v37  ;;  %v12076_v2 = vld [vmem:[%s12689_s21 + $0x20c] ss:$20 sps:$4 sm:$0xff]   ;;  %v12079_v37 = vld [vmem:[%s12689_s21 + $0x214] ss:$20 sps:$4 sm:$0xff]  }
 0x9a8   : > { %7737 = vmatprep.subr.bf16.mxu0 %v7641_v3  ;;  %7866 = vmatprep.subr.bf16.mxu1 %v7647_v6  ;;  %v12082_v3 = vld [vmem:[%s12689_s21 + $0x234] ss:$20 sps:$4 sm:$0xff]   ;;  %v12085_v6 = vld [vmem:[%s12689_s21 + $0x23c] ss:$20 sps:$4 sm:$0xff]  }
 0x9a9   : > { %7767 = vmatprep.mubr.bf16.mxu0 %v12293_v49  ;;  %7896 = vmatprep.mubr.bf16.mxu1 %v12293_v49  ;;  %v12086_v49 = vld [vmem:[%s12689_s21 + $0x258] ss:$20 sps:$4 sm:$0xff]  }
 0x9ab   : > { %7738 = vmatpush1.bf16.msra.mxu0 %v7638_v10  ;;  %7867 = vmatpush1.bf16.msra.mxu1 %v7644_v12  ;;  %v12088_v10 = vld [vmem:[%s12689_s21 + $0x25c] ss:$20 sps:$4 sm:$0xff]   ;;  %v12091_v12 = vld [vmem:[%s12689_s21 + $0x264] ss:$20 sps:$4 sm:$0xff]  }
 0x9ac   : > { %8953 = vmatprep.subr.bf16.mxu0 %v11998_v9  ;;  %9039 = vmatprep.subr.bf16.mxu1 %v12001_v60  ;;  %v12080_v9 = vld [vmem:[%s12689_s21 + $0x230] ss:$20 sps:$4 sm:$0xff]   ;;  %v12083_v60 = vld [vmem:[%s12689_s21 + $0x238] ss:$20 sps:$4 sm:$0xff]  }
 0x9b2   : > { %10307 = vmatmul.mubr.msk.bf16.vlgmr.msra.gmra.mrb[0].mxu0 %vm7629_vm2, %v6936_v19  ;;  %10308 = vmatmul.mubr.msk.bf16.vlgmr.msra.gmra.mrb[0].mxu1 %vm7629_vm2, %v6936_v19 }
 0x9b3   : > { %8954 = vmatpush1.bf16.msra.mxu0 %v11996_v8  ;;  %9040 = vmatpush1.bf16.msra.mxu1 %v11999_v14  ;;  %v12097_v8 = vld [vmem:[%s12689_s21 + $0x28c] ss:$20 sps:$4 sm:$0xff]   ;;  %v6939_v14 = vlaneseq }
 0x9b4   : > { %8955 = vmatprep.subr.bf16.mxu0 %v12004_v26  ;;  %9041 = vmatprep.subr.bf16.mxu1 %v12007_v17 }
 0x9b5   : > { %v15118_v19 = vshrl.u32 %v6939_v14, 7  ;;  %v12131_v14 = vld [vmem:[%s12689_s21 + $0x378] ss:$20 sps:$4 sm:$0xff]  }
 0x9b7   : > { %8956 = vmatpush1.bf16.msra.mxu0 %v12002_v44  ;;  %9042 = vmatpush1.bf16.msra.mxu1 %v12005_v41  ;;  %v15121_v26 = vsub.s32 0, %v15118_v19  ;;  %v15124_v17 = vsub.s32 2, %v15118_v19  ;;  %v6937_v44 = vld [vmem:[%s15348_s30] sm:$0xf]  ;;  %v15132_v41 = vsub.s32 1, %v15118_v19 }
 0x9b8   : > { %8957 = vmatprep.subr.bf16.mxu0 %v12010_v46  ;;  %9043 = vmatprep.subr.bf16.mxu1 %v12013_v51  ;;  %v15135_v46 = vsub.s32 3, %v15118_v19 }
 0x9b9   : > { %v6942_v51 = vrot.slane %v6937_v44, %v15121_v26 }
 0x9bb   : > { %8958 = vmatpush1.bf16.msra.mxu0 %v12008_v11  ;;  %9044 = vmatpush1.bf16.msra.mxu1 %v12011_v21  ;;  %v6950_v11 = vrot.slane %v6937_v44, %v15124_v17  ;;  %v6946_v21 = vrot.slane %v6937_v44, %v15132_v41 }
 0x9bc   : > { %8959 = vmatprep.subr.bf16.mxu0 %v12016_v28  ;;  %9045 = vmatprep.subr.bf16.mxu1 %v12019_v7  ;;  %v6954_v28 = vrot.slane %v6937_v44, %v15135_v46  ;;  %v12136_v44 = vld [vmem:[%s12689_s21 + $0x39c] ss:$20 sps:$4 sm:$0xff]  }
 0x9bf   : > { %8960 = vmatpush1.bf16.msra.mxu0 %v12014_v36  ;;  %9046 = vmatpush1.bf16.msra.mxu1 %v12017_v31 }
 0x9c0   : > { %8961 = vmatprep.subr.bf16.mxu0 %v12022_v33  ;;  %9047 = vmatprep.subr.bf16.mxu1 %v12025_v53 }
 0x9c3   : > { %8962 = vmatpush1.bf16.msra.mxu0 %v12020_v15  ;;  %9048 = vmatpush1.bf16.msra.mxu1 %v12023_v16 }
 0x9c4   : > { %8963 = vmatprep.subr.bf16.mxu0 %v12028_v18  ;;  %9049 = vmatprep.subr.bf16.mxu1 %v12031_v45 }
 0x9c7   : > { %8964 = vmatpush1.bf16.msra.mxu0 %v12026_v20  ;;  %9050 = vmatpush1.bf16.msra.mxu1 %v12029_v35 }
 0x9c8   : > { %8965 = vmatprep.subr.bf16.mxu0 %v12034_v24  ;;  %9051 = vmatprep.subr.bf16.mxu1 %v12037_v47 }
 0x9cb   : > { %8966 = vmatpush1.bf16.msra.mxu0 %v12032_v55  ;;  %9052 = vmatpush1.bf16.msra.mxu1 %v12035_v54 }
 0x9cc   : > { %8967 = vmatprep.subr.bf16.mxu0 %v12040_v58  ;;  %9053 = vmatprep.subr.bf16.mxu1 %v12043_v38 }
 0x9cf   : > { %8968 = vmatpush1.bf16.msra.mxu0 %v12038_v22  ;;  %9054 = vmatpush1.bf16.msra.mxu1 %v12041_v29 }
 0x9d0   : > { %8969 = vmatprep.subr.bf16.mxu0 %v12046_v30  ;;  %9055 = vmatprep.subr.bf16.mxu1 %v12049_v52 }
 0x9d3   : > { %8970 = vmatpush1.bf16.msra.mxu0 %v12044_v57  ;;  %9056 = vmatpush1.bf16.msra.mxu1 %v12047_v5 }
 0x9d4   : > { %8971 = vmatprep.subr.bf16.mxu0 %v12052_v23  ;;  %9057 = vmatprep.subr.bf16.mxu1 %v12055_v40 }
 0x9d7   : > { %8972 = vmatpush1.bf16.msra.mxu0 %v12050_v42  ;;  %9058 = vmatpush1.bf16.msra.mxu1 %v12053_v32 }
 0x9d8   : > { %8973 = vmatprep.subr.bf16.mxu0 %v12058_v48  ;;  %9059 = vmatprep.subr.bf16.mxu1 %v12061_v39  ;;  %v12092_v39 = vld [vmem:[%s12689_s21 + $0x280] ss:$20 sps:$4 sm:$0xff]  }
 0x9db   : > { %8974 = vmatpush1.bf16.msra.mxu0 %v12056_v25  ;;  %9060 = vmatpush1.bf16.msra.mxu1 %v12059_v50  ;;  %v12095_v25 = vld [vmem:[%s12689_s21 + $0x288] ss:$20 sps:$4 sm:$0xff]   ;;  %v12100_v50 = vld [vmem:[%s12689_s21 + $0x2ac] ss:$20 sps:$4 sm:$0xff]  }
 0x9dc   : > { %8975 = vmatprep.subr.bf16.mxu0 %v12064_v61  ;;  %9061 = vmatprep.subr.bf16.mxu1 %v12067_v34  ;;  %v12103_v61 = vld [vmem:[%s12689_s21 + $0x2b4] ss:$20 sps:$4 sm:$0xff]  }
 0x9dd   : > { %v12098_v34 = vld [vmem:[%s12689_s21 + $0x2a8] ss:$20 sps:$4 sm:$0xff]  }
 0x9df   : > { %8976 = vmatpush1.bf16.msra.mxu0 %v12062_v62  ;;  %9062 = vmatpush1.bf16.msra.mxu1 %v12065_v63  ;;  %v12101_v62 = vld [vmem:[%s12689_s21 + $0x2b0] ss:$20 sps:$4 sm:$0xff]   ;;  %v12106_v63 = vld [vmem:[%s12689_s21 + $0x2d4] ss:$20 sps:$4 sm:$0xff]  }
 0x9e0   : > { %8977 = vmatprep.subr.bf16.mxu0 %v12070_v0  ;;  %9063 = vmatprep.subr.bf16.mxu1 %v12073_v43  ;;  %v12109_v0 = vld [vmem:[%s12689_s21 + $0x2dc] ss:$20 sps:$4 sm:$0xff]  }
 0x9e1   : > { %v12104_v43 = vld [vmem:[%s12689_s21 + $0x2d0] ss:$20 sps:$4 sm:$0xff]  }
 0x9e3   : > { %8978 = vmatpush1.bf16.msra.mxu0 %v12068_v56  ;;  %9064 = vmatpush1.bf16.msra.mxu1 %v12071_v1  ;;  %v12107_v56 = vld [vmem:[%s12689_s21 + $0x2d8] ss:$20 sps:$4 sm:$0xff]   ;;  %v12112_v1 = vld [vmem:[%s12689_s21 + $0x2fc] ss:$20 sps:$4 sm:$0xff]  }
 0x9e4   : > { %8979 = vmatprep.subr.bf16.mxu0 %v12076_v2  ;;  %9065 = vmatprep.subr.bf16.mxu1 %v12079_v37  ;;  %v12115_v2 = vld [vmem:[%s12689_s21 + $0x304] ss:$20 sps:$4 sm:$0xff]  }
 0x9e5   : > { %v12110_v37 = vld [vmem:[%s12689_s21 + $0x2f8] ss:$20 sps:$4 sm:$0xff]  }
 0x9e7   : > { %8980 = vmatpush1.bf16.msra.mxu0 %v12074_v59  ;;  %9066 = vmatpush1.bf16.msra.mxu1 %v12077_v4  ;;  %v12113_v59 = vld [vmem:[%s12689_s21 + $0x300] ss:$20 sps:$4 sm:$0xff]   ;;  %v12118_v4 = vld [vmem:[%s12689_s21 + $0x324] ss:$20 sps:$4 sm:$0xff]  }
 0x9e8   : > { %8981 = vmatprep.subr.bf16.mxu0 %v12082_v3  ;;  %9067 = vmatprep.subr.bf16.mxu1 %v12085_v6  ;;  %v12121_v3 = vld [vmem:[%s12689_s21 + $0x32c] ss:$20 sps:$4 sm:$0xff]  }
 0x9e9   : > { %v12116_v6 = vld [vmem:[%s12689_s21 + $0x320] ss:$20 sps:$4 sm:$0xff]  }
 0x9eb   : > { %8982 = vmatpush1.bf16.msra.mxu0 %v12080_v9  ;;  %9068 = vmatpush1.bf16.msra.mxu1 %v12083_v60  ;;  %v12119_v9 = vld [vmem:[%s12689_s21 + $0x328] ss:$20 sps:$4 sm:$0xff]   ;;  %v12124_v60 = vld [vmem:[%s12689_s21 + $0x34c] ss:$20 sps:$4 sm:$0xff]  }
 0x9ec   : > { %8983 = vmatprep.subr.bf16.mxu0 %v12088_v10  ;;  %9069 = vmatprep.subr.bf16.mxu1 %v12091_v12  ;;  %v12127_v10 = vld [vmem:[%s12689_s21 + $0x354] ss:$20 sps:$4 sm:$0xff]  }
 0x9ed   : > { %v12122_v12 = vld [vmem:[%s12689_s21 + $0x348] ss:$20 sps:$4 sm:$0xff]  }
 0x9ef   : > { %8984 = vmatpush1.bf16.msra.mxu0 %v12086_v49  ;;  %9070 = vmatpush1.bf16.msra.mxu1 %v12089_v13  ;;  %v12125_v49 = vld [vmem:[%s12689_s21 + $0x350] ss:$20 sps:$4 sm:$0xff]   ;;  %v12130_v13 = vld [vmem:[%s12689_s21 + $0x374] ss:$20 sps:$4 sm:$0xff]  }
 0x9f0   : > { %8996 = vmatprep.subr.bf16.mxu0 %v12094_v27  ;;  %9082 = vmatprep.subr.bf16.mxu1 %v12097_v8  ;;  %v12133_v27 = vld [vmem:[%s12689_s21 + $0x37c] ss:$20 sps:$4 sm:$0xff]  }
 0x9f1   : > { %v12128_v8 = vld [vmem:[%s12689_s21 + $0x370] ss:$20 sps:$4 sm:$0xff]  }
 0xa85   : > { %v7769_v7 = vpop.f32.mrb[0].mxu0  ;;  %v7898_v36 = vpop.f32.mrb[0].mxu1 }
 0xa86   : > { %v10740_v31 = vadd.f32 %v7769_v7, %v6942_v51  ;;  %v10744_v33 = vadd.f32 %v7898_v36, %v6950_v11  ;;  %v7771_v53 = vpop.f32.mrb[1].mxu0  ;;  %v7900_v15 = vpop.f32.mrb[1].mxu1  ;;  %v12145_v7 = vld [vmem:[%s12689_s21 + $0x3cc] ss:$20 sps:$4 sm:$0xff]  }
 0xa87   : > { %v10741_v16 = vadd.f32 %v7771_v53, %v6946_v21  ;;  %v10745_v18 = vadd.f32 %v7900_v15, %v6954_v28  ;;  %v7773_v45 = vpop.f32.mrb[2].mxu0  ;;  %v7902_v20 = vpop.f32.mrb[2].mxu1  ;;  %v12140_v36 = vld [vmem:[%s12689_s21 + $0x3c0] ss:$20 sps:$4 sm:$0xff]   ;;  %v12146_v15 = vld [vmem:[%s12689_s21 + $0x3e8] ss:$20 sps:$4 sm:$0xff]  }
 0xa88   : > { %v10742_v35 = vadd.f32 %v7773_v45, %v6942_v51  ;;  %v10746_v24 = vadd.f32 %v7902_v20, %v6950_v11  ;;  %v7775_v47 = vpop.f32.mrb[3].mxu0  ;;  %v7904_v55 = vpop.f32.mrb[3].mxu1  ;;  %v7907_v38 = vmax.f32 %v10740_v31, 0.0  ;;  %v7909_v22 = vmax.f32 %v10744_v33, 0.0  ;;  %v12139_v51 = vld [vmem:[%s12689_s21 + $0x3a4] ss:$20 sps:$4 sm:$0xff]  }
 0xa89   : > { %v10743_v54 = vadd.f32 %v7775_v47, %v6946_v21  ;;  %v10747_v58 = vadd.f32 %v7904_v55, %v6954_v28  ;;  %v7908_v52 = vmax.f32 %v10741_v16, 0.0  ;;  %v7910_v57 = vmax.f32 %v10745_v18, 0.0  ;;  %v12134_v11 = vld [vmem:[%s12689_s21 + $0x398] ss:$20 sps:$4 sm:$0xff]   ;;  %v12137_v21 = vld [vmem:[%s12689_s21 + $0x3a0] ss:$20 sps:$4 sm:$0xff]  }
 0xa8a   : > { %v7911_v29 = vmax.f32 %v10742_v35, 0.0  ;;  %v7913_v30 = vmax.f32 %v10746_v24, 0.0  ;;  %v12142_v28 = vld [vmem:[%s12689_s21 + $0x3c4] ss:$20 sps:$4 sm:$0xff]   ;;  %v12143_v31 = vld [vmem:[%s12689_s21 + $0x3c8] ss:$20 sps:$4 sm:$0xff]  }
 0xa8b   : > { %v7912_v5 = vmax.f32 %v10743_v54, 0.0  ;;  %v7914_v23 = vmax.f32 %v10747_v58, 0.0  ;;  %v12148_v33 = vld [vmem:[%s12689_s21 + $0x3ec] ss:$20 sps:$4 sm:$0xff]   ;;  %v12151_v53 = vld [vmem:[%s12689_s21 + $0x3f4] ss:$20 sps:$4 sm:$0xff]  }
 0xa8c   : > { %v15141_v40 = vpack.c.bf16 %v7911_v29, %v7907_v38  ;;  %v15143_v42 = vpack.c.bf16 %v7913_v30, %v7909_v22  ;;  %v12149_v16 = vld [vmem:[%s12689_s21 + $0x3f0] ss:$20 sps:$4 sm:$0xff]   ;;  %v12154_v18 = vld [vmem:[%s12689_s21 + $0x414] ss:$20 sps:$4 sm:$0xff]   ;;  %v12155_v35 = vld [vmem:[%s12689_s21 + $0x418] ss:$20 sps:$4 sm:$0xff]  }
 0xa8d   : > { %v15145_v32 = vpack.c.bf16 %v7912_v5, %v7908_v52  ;;  %v15147_v48 = vpack.c.bf16 %v7914_v23, %v7910_v57  ;;  %v12157_v45 = vld [vmem:[%s12689_s21 + $0x41c] ss:$20 sps:$4 sm:$0xff]   ;;  %v12163_v47 = vld [vmem:[%s12689_s21 + $0x444] ss:$20 sps:$4 sm:$0xff]   ;;  %v12161_v54 = vld [vmem:[%s12689_s21 + $0x440] ss:$20 sps:$4 sm:$0xff]  }
 0xa8e   : > { %v12152_v20 = vld [vmem:[%s12689_s21 + $0x410] ss:$20 sps:$4 sm:$0xff]   ;;  %v12158_v55 = vld [vmem:[%s12689_s21 + $0x438] ss:$20 sps:$4 sm:$0xff]   ;;  %v12164_v22 = vld [vmem:[%s12689_s21 + $0x460] ss:$20 sps:$4 sm:$0xff]  }
 0xa8f   : > { %8985 = vmatprep.mubr.bf16.mxu0 %v15145_v32  ;;  %9071 = vmatprep.mubr.bf16.mxu1 %v15145_v32  ;;  %v12160_v24 = vld [vmem:[%s12689_s21 + $0x43c] ss:$20 sps:$4 sm:$0xff]   ;;  %v12166_v58 = vld [vmem:[%s12689_s21 + $0x464] ss:$20 sps:$4 sm:$0xff]   ;;  %v12169_v38 = vld [vmem:[%s12689_s21 + $0x46c] ss:$20 sps:$4 sm:$0xff]  }
 0xa90   : > { %8986 = vmatmul.mubr.bf16.vlgmr.msra.gmra.mrb[4].mxu0 %v15141_v40  ;;  %9072 = vmatmul.mubr.bf16.vlgmr.msra.gmra.mrb[4].mxu1 %v15141_v40  ;;  %v12167_v29 = vld [vmem:[%s12689_s21 + $0x468] ss:$20 sps:$4 sm:$0xff]   ;;  %v12172_v30 = vld [vmem:[%s12689_s21 + $0x48c] ss:$20 sps:$4 sm:$0xff]   ;;  %v12173_v5 = vld [vmem:[%s12689_s21 + $0x490] ss:$20 sps:$4 sm:$0xff]  }
 0xa91   : > { %8997 = vmatpush1.bf16.msra.mxu0 %v12092_v39  ;;  %9083 = vmatpush1.bf16.msra.mxu1 %v12095_v25  ;;  %v12175_v52 = vld [vmem:[%s12689_s21 + $0x494] ss:$20 sps:$4 sm:$0xff]   ;;  %v12181_v39 = vld [vmem:[%s12689_s21 + $0x4bc] ss:$20 sps:$4 sm:$0xff]  }
 0xa92   : > { %9028 = vmatprep.mubr.bf16.mxu0 %v15147_v48  ;;  %9114 = vmatprep.mubr.bf16.mxu1 %v15147_v48  ;;  %v12170_v57 = vld [vmem:[%s12689_s21 + $0x488] ss:$20 sps:$4 sm:$0xff]   ;;  %v12176_v25 = vld [vmem:[%s12689_s21 + $0x4b0] ss:$20 sps:$4 sm:$0xff]  }
 0xa93   : > { %8998 = vmatprep.subr.bf16.mxu0 %v12100_v50  ;;  %9084 = vmatprep.subr.bf16.mxu1 %v12103_v61  ;;  %v12178_v23 = vld [vmem:[%s12689_s21 + $0x4b4] ss:$20 sps:$4 sm:$0xff]   ;;  %v12179_v50 = vld [vmem:[%s12689_s21 + $0x4b8] ss:$20 sps:$4 sm:$0xff]   ;;  %v12184_v61 = vld [vmem:[%s12689_s21 + $0x4dc] ss:$20 sps:$4 sm:$0xff]  }
 0xa95   : > { %8999 = vmatpush1.bf16.msra.mxu0 %v12098_v34  ;;  %9085 = vmatpush1.bf16.msra.mxu1 %v12101_v62  ;;  %v12187_v34 = vld [vmem:[%s12689_s21 + $0x4e4] ss:$20 sps:$4 sm:$0xff]  }
 0xa96   : > { %9000 = vmatprep.subr.bf16.mxu0 %v12106_v63  ;;  %9086 = vmatprep.subr.bf16.mxu1 %v12109_v0  ;;  %v12182_v62 = vld [vmem:[%s12689_s21 + $0x4d8] ss:$20 sps:$4 sm:$0xff]   ;;  %v12185_v63 = vld [vmem:[%s12689_s21 + $0x4e0] ss:$20 sps:$4 sm:$0xff]   ;;  %v12188_v0 = vld [vmem:[%s12689_s21 + $0x150] ss:$20 sps:$4 sm:$0xff]  }
 0xa99   : > { %9001 = vmatpush1.bf16.msra.mxu0 %v12104_v43  ;;  %9087 = vmatpush1.bf16.msra.mxu1 %v12107_v56  ;;  %v12189_v43 = vld [vmem:[%s12689_s21 + $0x3d0] ss:$20 sps:$4 sm:$0xff]  }
 0xa9a   : > { %9002 = vmatprep.subr.bf16.mxu0 %v12112_v1  ;;  %9088 = vmatprep.subr.bf16.mxu1 %v12115_v2  ;;  %v12190_v56 = vld [vmem:[%s12689_s21 + $0x10] ss:$20 sps:$4 sm:$0xff]   ;;  %v12192_v2 = vld [vmem:[%s12689_s21 + $0x178] ss:$20 sps:$4 sm:$0xff]  }
 0xa9b   : > { %v12191_v1 = vld [vmem:[%s12689_s21 + $0x290] ss:$20 sps:$4 sm:$0xff]  }
 0xa9d   : > { %9003 = vmatpush1.bf16.msra.mxu0 %v12110_v37  ;;  %9089 = vmatpush1.bf16.msra.mxu1 %v12113_v59  ;;  %v12193_v37 = vld [vmem:[%s12689_s21 + $0x3f8] ss:$20 sps:$4 sm:$0xff]  }
 0xa9e   : > { %9004 = vmatprep.subr.bf16.mxu0 %v12118_v4  ;;  %9090 = vmatprep.subr.bf16.mxu1 %v12121_v3  ;;  %v12194_v59 = vld [vmem:[%s12689_s21 + $0x38] ss:$20 sps:$4 sm:$0xff]   ;;  %v12196_v3 = vld [vmem:[%s12689_s21 + $0x1a0] ss:$20 sps:$4 sm:$0xff]  }
 0xa9f   : > { %v12195_v4 = vld [vmem:[%s12689_s21 + $0x2b8] ss:$20 sps:$4 sm:$0xff]  }
 0xaa1   : > { %9005 = vmatpush1.bf16.msra.mxu0 %v12116_v6  ;;  %9091 = vmatpush1.bf16.msra.mxu1 %v12119_v9  ;;  %v12197_v6 = vld [vmem:[%s12689_s21 + $0x420] ss:$20 sps:$4 sm:$0xff]  }
 0xaa2   : > { %9006 = vmatprep.subr.bf16.mxu0 %v12124_v60  ;;  %9092 = vmatprep.subr.bf16.mxu1 %v12127_v10  ;;  %v12198_v9 = vld [vmem:[%s12689_s21 + $0x60] ss:$20 sps:$4 sm:$0xff]   ;;  %v12200_v60 = vld [vmem:[%s12689_s21 + $0x1c8] ss:$20 sps:$4 sm:$0xff]  }
 0xaa3   : > { %v12201_v10 = vld [vmem:[%s12689_s21 + $0x448] ss:$20 sps:$4 sm:$0xff]  }
 0xaa5   : > { %9007 = vmatpush1.bf16.msra.mxu0 %v12122_v12  ;;  %9093 = vmatpush1.bf16.msra.mxu1 %v12125_v49  ;;  %v12203_v12 = vld [vmem:[%s12689_s21 + $0x308] ss:$20 sps:$4 sm:$0xff]   ;;  %v12204_v49 = vld [vmem:[%s12689_s21 + $0x1f0] ss:$20 sps:$4 sm:$0xff]  }
 0xaa6   : > { %9008 = vmatprep.subr.bf16.mxu0 %v12130_v13  ;;  %9094 = vmatprep.subr.bf16.mxu1 %v12133_v27  ;;  %v12205_v13 = vld [vmem:[%s12689_s21 + $0x470] ss:$20 sps:$4 sm:$0xff]  }
 0xaa7   : > { %v12206_v27 = vld [vmem:[%s12689_s21 + $0xb0] ss:$20 sps:$4 sm:$0xff]  }
 0xaa9   : > { %9009 = vmatpush1.bf16.msra.mxu0 %v12128_v8  ;;  %9095 = vmatpush1.bf16.msra.mxu1 %v12131_v14  ;;  %v12207_v8 = vld [vmem:[%s12689_s21 + $0x330] ss:$20 sps:$4 sm:$0xff]   ;;  %v12208_v14 = vld [vmem:[%s12689_s21 + $0x218] ss:$20 sps:$4 sm:$0xff]  }
 0xaaa   : > { %9010 = vmatprep.subr.bf16.mxu0 %v12136_v44  ;;  %9096 = vmatprep.subr.bf16.mxu1 %v12139_v51  ;;  %v12209_v44 = vld [vmem:[%s12689_s21 + $0x498] ss:$20 sps:$4 sm:$0xff]  }
 0xaab   : > { %v12210_v51 = vld [vmem:[%s12689_s21 + $0xd8] ss:$20 sps:$4 sm:$0xff]  }
 0xaad   : > { %9011 = vmatpush1.bf16.msra.mxu0 %v12134_v11  ;;  %9097 = vmatpush1.bf16.msra.mxu1 %v12137_v21  ;;  %v12211_v11 = vld [vmem:[%s12689_s21 + $0x358] ss:$20 sps:$4 sm:$0xff]   ;;  %v12212_v21 = vld [vmem:[%s12689_s21 + $0x240] ss:$20 sps:$4 sm:$0xff]  }
 0xaae   : > { %9012 = vmatprep.subr.bf16.mxu0 %v12142_v28  ;;  %9098 = vmatprep.subr.bf16.mxu1 %v12145_v7  ;;  %v12213_v28 = vld [vmem:[%s12689_s21 + $0x4c0] ss:$20 sps:$4 sm:$0xff]  }
 0xaaf   : > { %v12214_v7 = vld [vmem:[%s12689_s21 + $0x100] ss:$20 sps:$4 sm:$0xff]  }
 0xab1   : > { %9013 = vmatpush1.bf16.msra.mxu0 %v12140_v36  ;;  %9099 = vmatpush1.bf16.msra.mxu1 %v12143_v31  ;;  %v12215_v36 = vld [vmem:[%s12689_s21 + $0x380] ss:$20 sps:$4 sm:$0xff]   ;;  %v12216_v31 = vld [vmem:[%s12689_s21 + $0x268] ss:$20 sps:$4 sm:$0xff]  }
 0xab2   : > { %9014 = vmatprep.subr.bf16.mxu0 %v12148_v33  ;;  %9100 = vmatprep.subr.bf16.mxu1 %v12151_v53  ;;  %v12217_v33 = vld [vmem:[%s12689_s21 + $0x4e8] ss:$20 sps:$4 sm:$0xff]  }
 0xab3   : > { %v12218_v53 = vld [vmem:[%s12689_s21 + $0x128] ss:$20 sps:$4 sm:$0xff]  }
 0xab5   : > { %9015 = vmatpush1.bf16.msra.mxu0 %v12146_v15  ;;  %9101 = vmatpush1.bf16.msra.mxu1 %v12149_v16  ;;  %v12219_v15 = vld [vmem:[%s12689_s21 + $0x3a8] ss:$20 sps:$4 sm:$0xff]   ;;  %v7915_v16 = vld [vmem:[#allocation3] sm:$0xff] }
 0xab6   : > { %9016 = vmatprep.subr.bf16.mxu0 %v12154_v18  ;;  %9102 = vmatprep.subr.bf16.mxu1 %v12157_v45  ;;  %v7917_v18 = vld [vmem:[#allocation3 + $0x10] sm:$0xff]  ;;  %v7916_v45 = vld [vmem:[#allocation3 + $0x8] sm:$0xff] }
 0xab9   : > { %9017 = vmatpush1.bf16.msra.mxu0 %v12152_v20  ;;  %9103 = vmatpush1.bf16.msra.mxu1 %v12155_v35  ;;  %v7918_v20 = vld [vmem:[#allocation3 + $0x18] sm:$0xff] }
 0xaba   : > { %9018 = vmatprep.subr.bf16.mxu0 %v12160_v24  ;;  %9104 = vmatprep.subr.bf16.mxu1 %v12163_v47  ;;  %v7920_v47 = vld [vmem:[#allocation3 + $0x28] sm:$0xff] }
 0xabd   : > { %9019 = vmatpush1.bf16.msra.mxu0 %v12158_v55  ;;  %9105 = vmatpush1.bf16.msra.mxu1 %v12161_v54  ;;  %v7922_v55 = vld [vmem:[#allocation3 + $0x38] sm:$0xff] }
 0xabe   : > { %9020 = vmatprep.subr.bf16.mxu0 %v12166_v58  ;;  %9106 = vmatprep.subr.bf16.mxu1 %v12169_v38 }
 0xac1   : > { %9021 = vmatpush1.bf16.msra.mxu0 %v12164_v22  ;;  %9107 = vmatpush1.bf16.msra.mxu1 %v12167_v29  ;;  %v7921_v29 = vld [vmem:[#allocation3 + $0x30] sm:$0xff] }
 0xac2   : > { %9022 = vmatprep.subr.bf16.mxu0 %v12172_v30  ;;  %9108 = vmatprep.subr.bf16.mxu1 %v12175_v52  ;;  %v7923_v30 = vld [vmem:[#allocation3 + $0x40] sm:$0xff] }
 0xac5   : > { %9023 = vmatpush1.bf16.msra.mxu0 %v12170_v57  ;;  %9109 = vmatpush1.bf16.msra.mxu1 %v12173_v5 }
 0xac6   : > { %9024 = vmatprep.subr.bf16.mxu0 %v12178_v23  ;;  %9110 = vmatprep.subr.bf16.mxu1 %v12181_v39 }
 0xac9   : > { %9025 = vmatpush1.bf16.msra.mxu0 %v12176_v25  ;;  %9111 = vmatpush1.bf16.msra.mxu1 %v12179_v50 }
 0xaca   : > { %9026 = vmatprep.subr.bf16.mxu0 %v12184_v61  ;;  %9112 = vmatprep.subr.bf16.mxu1 %v12187_v34 }
 0xacd   : > { %9027 = vmatpush1.bf16.msra.mxu0 %v12182_v62  ;;  %9113 = vmatpush1.bf16.msra.mxu1 %v12185_v63 }
 0xace   : > { %10569 = vmatprep.subr.bf16.mxu0 %v12188_v0  ;;  %10591 = vmatprep.subr.bf16.mxu1 %v12189_v43 }
 0xad0   : > { %9029 = vmatmul.mubr.bf16.vlgmr.msra.gmra.mrb[4].mxu0 %v15143_v42  ;;  %9115 = vmatmul.mubr.bf16.vlgmr.msra.gmra.mrb[4].mxu1 %v15143_v42 }
 0xad1   : > { %10570 = vmatpush3.bf16.msra.mxu0 %v12190_v56  ;;  %9157 = vmatprep.mubr.bf16.mxu0 %v15145_v32  ;;  %v12199_v32 = vld [vmem:[%s12689_s21 + $0x2e0] ss:$20 sps:$4 sm:$0xff]  }
 0xad2   : > { %10592 = vmatpush3.bf16.msra.mxu1 %v12191_v1  ;;  %9198 = vmatprep.mubr.bf16.mxu1 %v15147_v48  ;;  %v12202_v48 = vld [vmem:[%s12689_s21 + $0x88] ss:$20 sps:$4 sm:$0xff]  }
 0xad3   : > { %10571 = vmatprep.subr.bf16.mxu0 %v12192_v2  ;;  %10593 = vmatprep.subr.bf16.mxu1 %v12193_v37 }
 0xad5   : > { %10572 = vmatpush3.bf16.msra.mxu0 %v12194_v59  ;;  %v7919_v59 = vld [vmem:[#allocation3 + $0x20] sm:$0xff] }
 0xad6   : > { %10594 = vmatpush3.bf16.msra.mxu1 %v12195_v4  ;;  %10573 = vmatprep.subr.bf16.mxu0 %v12196_v3 }
 0xad7   : > { %10595 = vmatprep.subr.bf16.mxu1 %v12197_v6 }
 0xad9   : > { %10574 = vmatpush3.bf16.msra.mxu0 %v12198_v9 }
 0xada   : > { %10596 = vmatpush3.bf16.msra.mxu1 %v12199_v32  ;;  %10575 = vmatprep.subr.bf16.mxu0 %v12200_v60  ;;  %v7924_v32 = vld [vmem:[#allocation3 + $0x48] sm:$0xff] }
 0xadb   : > { %10597 = vmatprep.subr.bf16.mxu1 %v12201_v10 }
 0xadd   : > { %10576 = vmatpush3.bf16.msra.mxu0 %v12202_v48 }
 0xade   : > { %10598 = vmatpush3.bf16.msra.mxu1 %v12203_v12  ;;  %10577 = vmatprep.subr.bf16.mxu0 %v12204_v49  ;;  %v9231_v12 = vld [vmem:[#allocation2] sm:$0xff] (!%p10469_p11)  ;;  %v9232_v49 = vld [vmem:[#allocation2 + $0x8] sm:$0xff] (!%p10469_p11) }
 0xadf   : > { %10599 = vmatprep.subr.bf16.mxu1 %v12205_v13  ;;  %v9233_v13 = vld [vmem:[#allocation2 + $0x10] sm:$0xff] (!%p10469_p11) }
 0xae1   : > { %10578 = vmatpush3.bf16.msra.mxu0 %v12206_v27  ;;  %v9234_v27 = vld [vmem:[#allocation2 + $0x18] sm:$0xff] (!%p10469_p11) }
 0xae2   : > { %10600 = vmatpush3.bf16.msra.mxu1 %v12207_v8  ;;  %10579 = vmatprep.subr.bf16.mxu0 %v12208_v14  ;;  %v9235_v8 = vld [vmem:[#allocation2 + $0x20] sm:$0xff] (!%p10469_p11) }
 0xae3   : > { %10601 = vmatprep.subr.bf16.mxu1 %v12209_v44  ;;  %v15259_v44 = vsub.s32 (!%p10469_p11), 4, %v15118_v19 }
 0xae5   : > { %10580 = vmatpush3.bf16.msra.mxu0 %v12210_v51 }
 0xae6   : > { %10602 = vmatpush3.bf16.msra.mxu1 %v12211_v11  ;;  %10581 = vmatprep.subr.bf16.mxu0 %v12212_v21 }
 0xae7   : > { %10603 = vmatprep.subr.bf16.mxu1 %v12213_v28 }
 0xae9   : > { %10582 = vmatpush3.bf16.msra.mxu0 %v12214_v7 }
 0xaea   : > { %10604 = vmatpush3.bf16.msra.mxu1 %v12215_v36  ;;  %10583 = vmatprep.subr.bf16.mxu0 %v12216_v31 }
 0xaeb   : > { %10605 = vmatprep.subr.bf16.mxu1 %v12217_v33 }
 0xaed   : > { %10584 = vmatpush3.bf16.msra.mxu0 %v12218_v53  ;;  %v9261_v53 = vld [vmem:[%s15339_s10] sm:$0x1f] (!%p10469_p11) }
 0xaee   : > { %10606 = vmatpush3.bf16.msra.mxu1 %v12219_v15  ;;  %v9274_v19 = vrot.slane (!%p10469_p11), %v9261_v53, %v15124_v17 }
 0xaf0   : > { %9158 = vmatmul.mubr.bf16.vlgmr.msra.gmra.mrb[8].mxu0 %v15141_v40 }
 0xaf1   : > { %9199 = vmatmul.mubr.bf16.vlgmr.msra.gmra.mrb[8].mxu1 %v15143_v42 }
 0xba3   : > { %v9030_v35 = vpop.f32.mrb[4].mxu0  ;;  %v9116_v24 = vpop.f32.mrb[4].mxu1 }
 0xba4   : > { %v9207_v54 = vadd.f32 %v9030_v35, %v7915_v16  ;;  %v9209_v58 = vadd.f32 %v9116_v24, %v7917_v18  ;;  %v9032_v38 = vpop.f32.mrb[5].mxu0  ;;  %v9118_v22 = vpop.f32.mrb[5].mxu1  ;;  %v9266_v16 = vrot.slane (!%p10469_p11), %v9261_v53, %v15121_v26  ;;  %v9270_v18 = vrot.slane (!%p10469_p11), %v9261_v53, %v15132_v41  ;;  %v9236_v35 = vld [vmem:[#allocation2 + $0x28] sm:$0xff] (!%p10469_p11)  ;;  %v9237_v24 = vld [vmem:[#allocation2 + $0x30] sm:$0xff] (!%p10469_p11) }
 0xba5   : > { %v9208_v52 = vadd.f32 %v9032_v38, %v7916_v45  ;;  %v9210_v57 = vadd.f32 %v9118_v22, %v7918_v20  ;;  %v9034_v5 = vpop.f32.mrb[6].mxu0  ;;  %v9120_v40 = vpop.f32.mrb[6].mxu1  ;;  %v9278_v45 = vrot.slane (!%p10469_p11), %v9261_v53, %v15135_v46  ;;  %v9282_v20 = vrot.slane (!%p10469_p11), %v9261_v53, %v15259_v44  ;;  %v9239_v38 = vld [vmem:[#allocation2 + $0x40] sm:$0xff] (!%p10469_p11) }
 0xba6   : > { %9217 = vst [vmem:[#allocation3] sm:$0xff] %v9207_v54  ;;  %9219 = vst [vmem:[#allocation3 + $0x10] sm:$0xff] %v9209_v58  ;;  %v9212_v42 = vadd.f32 %v9034_v5, %v7920_v47  ;;  %v9214_v23 = vadd.f32 %v9120_v40, %v7922_v55  ;;  %v9036_v39 = vpop.f32.mrb[7].mxu0  ;;  %v9122_v25 = vpop.f32.mrb[7].mxu1  ;;  %v9238_v58 = vld [vmem:[#allocation2 + $0x38] sm:$0xff] (!%p10469_p11) }
 0xba7   : > { %9218 = vst [vmem:[#allocation3 + $0x8] sm:$0xff] %v9208_v52  ;;  %9220 = vst [vmem:[#allocation3 + $0x18] sm:$0xff] %v9210_v57  ;;  %v9213_v50 = vadd.f32 %v9036_v39, %v7921_v29  ;;  %v9215_v61 = vadd.f32 %v9122_v25, %v7923_v30 }
 0xba8   : > { %9222 = vst [vmem:[#allocation3 + $0x28] sm:$0xff] %v9212_v42  ;;  %9224 = vst [vmem:[#allocation3 + $0x38] sm:$0xff] %v9214_v23  ;;  %v9240_v42 = vld [vmem:[#allocation2 + $0x48] sm:$0xff] (!%p10469_p11) }
 0xba9   : > { %9223 = vst [vmem:[#allocation3 + $0x30] sm:$0xff] %v9213_v50  ;;  %9225 = vst [vmem:[#allocation3 + $0x40] sm:$0xff] %v9215_v61 }
 0xbad   : > { %v9241_v14 = vld [vmem:[#allocation3] sm:$0xff] (!%p10469_p11)  ;;  %v9243_v11 = vld [vmem:[#allocation3 + $0x10] sm:$0xff] (!%p10469_p11) }
 0xbae   : > { %v9242_v51 = vld [vmem:[#allocation3 + $0x8] sm:$0xff] (!%p10469_p11)  ;;  %v9244_v21 = vld [vmem:[#allocation3 + $0x18] sm:$0xff] (!%p10469_p11)  ;;  %v9251_v28 = vadd.f32 (!%p10469_p11), %v9241_v14, %v9231_v12  ;;  %v9253_v31 = vadd.f32 (!%p10469_p11), %v9243_v11, %v9233_v13 }
 0xbaf   : > { %v9252_v36 = vadd.f32 (!%p10469_p11), %v9242_v51, %v9232_v49  ;;  %v9254_v33 = vadd.f32 (!%p10469_p11), %v9244_v21, %v9234_v27  ;;  %v9246_v22 = vld [vmem:[#allocation3 + $0x28] sm:$0xff] (!%p10469_p11)  ;;  %v9248_v52 = vld [vmem:[#allocation3 + $0x38] sm:$0xff] (!%p10469_p11) }
 0xbb0   : > { %v9288_v47 = vadd.f32 (!%p10469_p11), %v9266_v16, %v9251_v28  ;;  %v9290_v54 = vadd.f32 (!%p10469_p11), %v9274_v19, %v9253_v31  ;;  %v9247_v30 = vld [vmem:[#allocation3 + $0x30] sm:$0xff] (!%p10469_p11)  ;;  %v9249_v57 = vld [vmem:[#allocation3 + $0x40] sm:$0xff] (!%p10469_p11)  ;;  %v9256_v39 = vadd.f32 (!%p10469_p11), %v9246_v22, %v9236_v35  ;;  %v9258_v61 = vadd.f32 (!%p10469_p11), %v9248_v52, %v9238_v58 }
 0xbb1   : > { %v9289_v55 = vadd.f32 (!%p10469_p11), %v9270_v18, %v9252_v36  ;;  %v9291_v5 = vadd.f32 (!%p10469_p11), %v9278_v45, %v9254_v33  ;;  %v9257_v50 = vadd.f32 (!%p10469_p11), %v9247_v30, %v9237_v24 }
 0xbb3   : > { %v9300_v40 = vadd.f32 (!%p10469_p11), %v9289_v55, %v9288_v47 }
 0xbb5   : > { %v9301_v25 = vadd.f32 (!%p10469_p11), %v9300_v40, %v9290_v54 }
 0xbc3   : > { %v10585_v34 = vpop.f32.mrb[8].mxu0 }
 0xbc4   : > { %v10607_v62 = vpop.f32.mrb[8].mxu1  ;;  %v10586_v63 = vpop.f32.mrb[9].mxu0 }
 0xbc5   : > { %v10587_v0 = vadd.f32 %v10586_v63, %v10585_v34  ;;  %v10608_v43 = vpop.f32.mrb[9].mxu1  ;;  %v10588_v56 = vpop.f32.mrb[10].mxu0  ;;  %v9259_v34 = vadd.f32 (!%p10469_p11), %v9249_v57, %v9239_v38 }
 0xbc6   : > { %v10609_v1 = vadd.f32 %v10608_v43, %v10607_v62  ;;  %v10610_v2 = vpop.f32.mrb[10].mxu1  ;;  %v10589_v37 = vpop.f32.mrb[11].mxu0  ;;  %v9302_v43 = vadd.f32 (!%p10469_p11), %v9301_v25, %v9291_v5  ;;  %v9299_v25 = vld [vmem:[%s15341_s12] sm:$0x1f] (!%p10469_p11) }
 0xbc7   : > { %v10590_v4 = vadd.f32 %v10589_v37, %v10588_v56  ;;  %v10611_v3 = vpop.f32.mrb[11].mxu1  ;;  %v9294_v56 = vadd.f32 (!%p10469_p11), %v9270_v18, %v9257_v50 }
 0xbc8   : > { %v9201_v6 = vadd.f32 %v10609_v1, %v10587_v0  ;;  %v10612_v9 = vadd.f32 %v10611_v3, %v10610_v2  ;;  %9230 = sbr.rel (%p10469_p11) target bundleno = 3362 (0xd22), region = 103  ;;  %v9293_v0 = vadd.f32 (!%p10469_p11), %v9266_v16, %v9256_v39  ;;  %v9295_v1 = vadd.f32 (!%p10469_p11), %v9274_v19, %v9258_v61  ;;  %v9298_v39 = vld [vmem:[%s15340_s11] sm:$0x1f] (!%p10469_p11) }
 0xbc9   : > { %v9371_v50 = vrot.slane (!%p10469_p11), %v9298_v39, %v15121_v26  ;;  %v9375_v61 = vrot.slane (!%p10469_p11), %v9298_v39, %v15132_v41 }
 0xbca   : > { %v9211_v60 = vadd.f32 %v9201_v6, %v7919_v59  ;;  %v9204_v10 = vadd.f32 %v10612_v9, %v10590_v4  ;;  %v9296_v59 = vadd.f32 (!%p10469_p11), %v9278_v45, %v9259_v34  ;;  %v9307_v4 = vadd.f32 (!%p10469_p11), %v9294_v56, %v9293_v0 }
 0xbcb   : > { %v9379_v34 = vrot.slane (!%p10469_p11), %v9298_v39, %v15124_v17 }
 0xbcc   : > { %9221 = vst.msk [vmem:[#allocation3 + $0x20] sm:$0xff] %vm7629_vm2, %v9211_v60  ;;  %v9216_v48 = vadd.f32 %v9204_v10, %v7924_v32  ;;  %v9308_v3 = vadd.f32 (!%p10469_p11), %v9307_v4, %v9295_v1 }
 0xbce   : > { %9226 = vst.msk [vmem:[#allocation3 + $0x48] sm:$0xff] %vm7629_vm2, %v9216_v48  ;;  %v9309_v9 = vadd.f32 (!%p10469_p11), %v9308_v3, %v9296_v59 }
 0xbd3   : > { %v9245_v7 = vld [vmem:[#allocation3 + $0x20] sm:$0xff] }
 0xbd4   : > { %v9255_v15 = vadd.f32 %v9245_v7, %v9235_v8 }
 0xbd5   : > { %v9250_v23 = vld [vmem:[#allocation3 + $0x48] sm:$0xff] }
 0xbd6   : > { %v9292_v29 = vadd.f32 %v9282_v20, %v9255_v15  ;;  %v9260_v63 = vadd.f32 %v9250_v23, %v9240_v42 }
 0xbd8   : > { %v9303_v62 = vsel %vm7629_vm2, %v9292_v29, 0.0  ;;  %v9297_v2 = vadd.f32 %v9282_v20, %v9260_v63  ;;  %v9387_v63 = vrot.slane %v9298_v39, %v15259_v44 }
 0xbd9   : > { %v9304_v37 = vadd.f32 %v9303_v62, %v9302_v43  ;;  %v9383_v62 = vrot.slane %v9298_v39, %v15135_v46  ;;  %v9407_v43 = vrot.slane %v9299_v25, %v15121_v26 }
 0xbda   : > { %v9310_v6 = vsel %vm7629_vm2, %v9297_v2, 0.0 }
 0xbdb   : > { %9305 = vadd.xlane.f32.xlu0 %v9304_v37  ;;  %v9311_v32 = vadd.f32 %v9310_v6, %v9309_v9  ;;  %v9423_v6 = vrot.slane %v9299_v25, %v15259_v44 }
 0xbdf   : > { %9312 = vadd.xlane.f32.xlu0 %v9311_v32 }
 0xc68   : > { %v9306_v60 = vpop.xlane.xlu0 %9305 }
 0xc69   : > { %v9315_v10 = vmul.f32 0.0018832391, %v9306_v60 }
 0xc6b   : > { %v9317_v48 = vsub.f32 %v9288_v47, %v9315_v10  ;;  %v9318_v12 = vsub.f32 %v9289_v55, %v9315_v10  ;;  %v9319_v49 = vsub.f32 %v9290_v54, %v9315_v10  ;;  %v9320_v13 = vsub.f32 %v9291_v5, %v9315_v10 }
 0xc6c   : > { %v9321_v27 = vsub.f32 %v9292_v29, %v9315_v10  ;;  %v9313_v51 = vpop.xlane.xlu0 %9312 }
 0xc6d   : > { %v9327_v8 = vmul.f32 %v9317_v48, %v9317_v48  ;;  %v9328_v14 = vmul.f32 %v9318_v12, %v9318_v12  ;;  %v9316_v11 = vmul.f32 0.0018832391, %v9313_v51  ;;  %v9329_v21 = vmul.f32 %v9319_v49, %v9319_v49 }
 0xc6e   : > { %v9330_v7 = vmul.f32 %v9320_v13, %v9320_v13  ;;  %v9331_v36 = vmul.f32 %v9321_v27, %v9321_v27 }
 0xc6f   : > { %v9337_v28 = vadd.f32 %v9328_v14, %v9327_v8  ;;  %v9322_v33 = vsub.f32 %v9293_v0, %v9316_v11  ;;  %v9323_v53 = vsub.f32 %v9294_v56, %v9316_v11  ;;  %v9324_v15 = vsub.f32 %v9295_v1, %v9316_v11 }
 0xc70   : > { %v15271_v16 = vsub.f32 %v9297_v2, %v9316_v11  ;;  %v9325_v19 = vsub.f32 %v9296_v59, %v9316_v11  ;;  %v9340_v35 = vsel %vm7629_vm2, %v9331_v36, 0.0  ;;  %v9411_v56 = vrot.slane %v9299_v25, %v15132_v41 }
 0xc71   : > { %v9338_v31 = vadd.f32 %v9337_v28, %v9329_v21  ;;  %v9332_v45 = vmul.f32 %v9322_v33, %v9322_v33  ;;  %v9333_v20 = vmul.f32 %v9323_v53, %v9323_v53  ;;  %v9334_v47 = vmul.f32 %v9324_v15, %v9324_v15 }
 0xc72   : > { %v9336_v54 = vmul.f32 %v15271_v16, %v15271_v16  ;;  %v9335_v58 = vmul.f32 %v9325_v19, %v9325_v19  ;;  %v9415_v1 = vrot.slane %v9299_v25, %v15124_v17  ;;  %v9419_v2 = vrot.slane %v9299_v25, %v15135_v46 }
 0xc73   : > { %v9339_v18 = vadd.f32 %v9338_v31, %v9330_v7  ;;  %v9344_v55 = vadd.f32 %v9333_v20, %v9332_v45 }
 0xc74   : > { %v9347_v29 = vsel %vm7629_vm2, %v9336_v54, 0.0 }
 0xc75   : > { %v9341_v24 = vadd.f32 %v9340_v35, %v9339_v18  ;;  %v9345_v38 = vadd.f32 %v9344_v55, %v9334_v47 }
 0xc77   : > { %9342 = vadd.xlane.f32.xlu1 %v9341_v24  ;;  %v9346_v22 = vadd.f32 %v9345_v38, %v9335_v58 }
 0xc79   : > { %v9348_v30 = vadd.f32 %v9347_v29, %v9346_v22 }
 0xc7b   : > { %9349 = vadd.xlane.f32.xlu1 %v9348_v30 }
 0xd04   : > { %v9343_v52 = vpop.xlane.xlu1 %9342 }
 0xd05   : > { %v9351_v57 = vmul.f32 0.0018832391, %v9343_v52 }
 0xd07   : > { %v9353_v5 = vadd.f32 1e-05, %v9351_v57 }
 0xd08   : > { %v9350_v40 = vpop.xlane.xlu1 %9349 }
 0xd09   : > { %12220 = vrsqrt.f32 %v9353_v5  ;;  %v9352_v42 = vmul.f32 0.0018832391, %v9350_v40 }
 0xd0b   : > { %v9354_v23 = vadd.f32 1e-05, %v9352_v42 }
 0xd0d   : > { %12222 = vrsqrt.f32 %v9354_v23 }
 0xd13   : > { %v12221_v0 = vpop.eup %12220 }
 0xd14   : > { %v9357_v37 = vmul.f32 %v12221_v0, %v9317_v48  ;;  %v9358_v59 = vmul.f32 %v12221_v0, %v9318_v12  ;;  %v9359_v4 = vmul.f32 %v12221_v0, %v9319_v49  ;;  %v9360_v3 = vmul.f32 %v12221_v0, %v9320_v13 }
 0xd15   : > { %v9361_v9 = vmul.f32 %v12221_v0, %v9321_v27 }
 0xd16   : > { %v9393_v32 = vmul.f32 %v9371_v50, %v9357_v37  ;;  %v9394_v60 = vmul.f32 %v9375_v61, %v9358_v59  ;;  %v9395_v10 = vmul.f32 %v9379_v34, %v9359_v4  ;;  %v9396_v8 = vmul.f32 %v9383_v62, %v9360_v3 }
 0xd17   : > { %v9397_v14 = vmul.f32 %v9387_v63, %v9361_v9  ;;  %v12223_v21 = vpop.eup %12222 }
 0xd18   : > { %v9429_v51 = vadd.f32 %v9407_v43, %v9393_v32  ;;  %v9430_v26 = vadd.f32 %v9411_v56, %v9394_v60  ;;  %v9431_v11 = vadd.f32 %v9415_v1, %v9395_v10  ;;  %v9432_v41 = vadd.f32 %v9419_v2, %v9396_v8 }
 0xd19   : > { %v9433_v17 = vadd.f32 %v9423_v6, %v9397_v14  ;;  %v9362_v46 = vmul.f32 %v12223_v21, %v9322_v33  ;;  %v9363_v48 = vmul.f32 %v12223_v21, %v9323_v53  ;;  %v9364_v12 = vmul.f32 %v12223_v21, %v9324_v15 }
 0xd1a   : > { %9439 = vst [vmem:[#allocation5] sm:$0xff] %v9429_v51  ;;  %9440 = vst [vmem:[#allocation5 + $0x8] sm:$0xff] %v9430_v26  ;;  %v9365_v44 = vmul.f32 %v12223_v21, %v9325_v19  ;;  %v9366_v49 = vmul.f32 %v12223_v21, %v15271_v16 }
 0xd1b   : > { %9441 = vst [vmem:[#allocation5 + $0x10] sm:$0xff] %v9431_v11  ;;  %9442 = vst [vmem:[#allocation5 + $0x18] sm:$0xff] %v9432_v41  ;;  %v9398_v13 = vmul.f32 %v9371_v50, %v9362_v46  ;;  %v9399_v27 = vmul.f32 %v9375_v61, %v9363_v48  ;;  %v9400_v28 = vmul.f32 %v9379_v34, %v9364_v12 }
 0xd1c   : > { %9443 = vst.msk [vmem:[#allocation5 + $0x20] sm:$0xff] %vm7629_vm2, %v9433_v17  ;;  %v9401_v7 = vmul.f32 %v9383_v62, %v9365_v44  ;;  %v9402_v36 = vmul.f32 %v9387_v63, %v9366_v49 }
 0xd1d   : > { %v9434_v31 = vadd.f32 %v9407_v43, %v9398_v13  ;;  %v9435_v18 = vadd.f32 %v9411_v56, %v9399_v27  ;;  %v9436_v45 = vadd.f32 %v9415_v1, %v9400_v28 }
 0xd1e   : > { %v9437_v20 = vadd.f32 %v9419_v2, %v9401_v7  ;;  %v9438_v35 = vadd.f32 %v9423_v6, %v9402_v36 }
 0xd1f   : > { %9444 = vst [vmem:[#allocation5 + $0x28] sm:$0xff] %v9434_v31  ;;  %9445 = vst [vmem:[#allocation5 + $0x30] sm:$0xff] %v9435_v18 }
 0xd20   : > { %9446 = vst [vmem:[#allocation5 + $0x38] sm:$0xff] %v9436_v45  ;;  %9447 = vst [vmem:[#allocation5 + $0x40] sm:$0xff] %v9437_v20 }
 0xd21   : > { %9448 = vst.msk [vmem:[#allocation5 + $0x48] sm:$0xff] %vm7629_vm2, %v9438_v35 }
 0xd22 PF: > { %p10779_p12 = scmp.eq.s32.totalorder %s12383_s28, 3  ;;  %s12294_s15 = smov [#allocation5]  }
 0xd23   : > { %s9455_s23 = sshll.u32 %s12294_s15, 4  ;;  %s9456_s23 = int_to_ptr.vmem [resolvable:$true] %s9455_s23 }
 0xd24   : > { %s12224_s18 = scalar_lea.vmem %s9456_s23, 1280  ;;  %p12231_p2 = scmp.lt.s32.totalorder %s9456_s23, %s9456_s23 }
 0xd25   : > { %p12225_p13 = scmp.ne.s32.totalorder %s9456_s23, %s12224_s18  ;;  %p12232_p3 = scmp.lt.s32.totalorder %s12224_s18, %s12224_s18 }
 0xd27   : > { %p12226_p0 = pnand %p12225_p13, %p10779_p12  ;;  %p12233_p4 = por %p12232_p3, %p12231_p2 }
 0xd29   : > { %p12227_p1 = pneg %p12226_p0 }
 0xd2b   : > { %p12234_p5 = pnand %p12233_p4, %p12227_p1 }
 0xd2d   : > { %12237 = shalt.err (!%p12234_p5)
}
 0xd2e   : > { %s12238_s17 = scalar_lea.hbm %s15342_s13, 1280 }
 0xd2f   : > { %p12239_p6 = scmp.ne.s32.totalorder %s15342_s13, %s12238_s17  ;;  %p12244_p9 = scmp.lt.u32.totalorder %s12238_s17, %s15342_s13 }
 0xd31   : > { %p12240_p7 = pnand %p12239_p6, %p10779_p12 }
 0xd33   : > { %p12241_p8 = pneg %p12240_p7 }
 0xd35   : > { %p12246_p10 = pnand %p12244_p9, %p12241_p8 }
 0xd37   : > { %12249 = shalt.err (!%p12246_p10)
}
 0xd38   : > { %s12295_s21 = smov 640   ;;  %s12296_s19 = smov 40  }
 0xd39   : > { %10776 = dma.vmem_to_hbm [thread:$0]  (%p10779_p12), %s9456_s23, 1280, %s15342_s13, [#allocation6], %s12295_s21, %s12295_s21, %s12296_s19  }
 0xd3a   : > { %12263 = dma.done.wait (%p10779_p12), [#allocation6], 1280  }
 0xd3b   : > { %12265 = vsyncadd (%p10779_p12), [#allocation6], 4294966016 }
 0xd3c PF: > { %s15349_s7 = sld [smem:[#allocation8_spill]]  ;;  %p21_p11 = scmp.ge.s32.totalorder %s12386_s29, 6  }
 0xd3d   : > { %s15350_s25 = smov %s12272_s26  ;;  %s15352_s27 = smov %s12386_s29 }
 0xd3e   :  { %23 = sbr.rel (!%p21_p11) target bundleno = 4 (0x4), region = 141 }
 0xd42   : > { %s15351_s26 = smov %s15349_s7 }
 0xd45   :  { %9471 = vsyncpa [#allocation6], 1 }
 0xd46   :  { %9473 = vsyncpa [#allocation6 + $0x1], 1 }

</bundles_post_ra>
